<compile_context>
chip_gen: v7x
topology: tpu7x:2x2x1
jax: 0.10.0
libtpu: 0.0.40
codegen_flags: <defaults>
</compile_context>

<pallas_src>
import math
from functools import partial

import jax
import jax.numpy as jnp
from jax import lax
from jax.experimental import pallas as pl
from jax.experimental.pallas import tpu as pltpu

# ---- synthetic mini-BERT config backing SentenceBERT ----
VOCAB = 64
HIDDEN = 32
NUM_LAYERS = 2
NUM_HEADS = 4
HEAD_DIM = HIDDEN // NUM_HEADS
INTERMEDIATE = 64
MAX_POS = 16
PAD_TOKEN_ID = 0
BATCH = 2
SEQ = 8

# ---- row offsets inside the packed embedding/head table slab [80, H] ----
_TAB_WORD = 0
_TAB_POS = VOCAB                      # 64
_TAB_TYPE = _TAB_POS + SEQ            # 72
_TAB_EMB_G = _TAB_TYPE + 2            # 74
_TAB_EMB_B = _TAB_EMB_G + 1           # 75
_TAB_CLS_W = _TAB_EMB_B + 1           # 76 .. 78
_TAB_CLS_B = _TAB_CLS_W + 3           # 79
_TAB_ROWS = _TAB_CLS_B + 1            # 80

# ---- row indices inside the per-layer vector slab [L, 8, 3H] ----
(_V_QKV_B, _V_O_B, _V_LN1_G, _V_LN1_B,
 _V_I_B, _V_FO_B, _V_LN2_G, _V_LN2_B) = range(8)


# --------------------------------------------------------------------------
# Kernel helpers
# --------------------------------------------------------------------------
def _layernorm(x, g, b):
    mean = jnp.mean(x, axis=-1, keepdims=True)
    var = jnp.mean(jnp.square(x - mean), axis=-1, keepdims=True)
    return (x - mean) * lax.rsqrt(var + 1e-12) * g + b


def _gelu(x):
    # TODO(synk): HuggingFace BERT default is exact erf-GELU; tanh approx used here.
    c = math.sqrt(2.0 / math.pi)
    return 0.5 * x * (1.0 + jnp.tanh(c * (x + 0.044715 * x * x * x)))


# --------------------------------------------------------------------------
# Fused Pallas kernel: embeddings -> encoder layers -> pooling -> classifier
# --------------------------------------------------------------------------
def _fused_sbert_kernel(ids_ref, tty_ref, mask_col_ref, mask_key_ref,
                        tab_ref, qkv_w_ref, o_w_ref, i_w_ref, fo_w_ref, vec_ref,
                        o_ref, *, pairs):
    f32 = jnp.float32
    P = pairs
    NS = 2 * P                       # sentences handled in this step
    R = NS * SEQ                     # token rows handled in this step
    H = HIDDEN
    scale = 1.0 / math.sqrt(HEAD_DIM)

    ids = ids_ref[...].reshape(R, 1)         # int32 token ids, one per row
    tty = tty_ref[...].reshape(R, 1)         # int32 token-type ids

    # ---- embeddings in-kernel: one-hot matmuls against the resident table ----
    word_tab = tab_ref[_TAB_WORD:_TAB_WORD + VOCAB, :]          # [V, H]
    pos_tab = tab_ref[_TAB_POS:_TAB_POS + SEQ, :]               # [S, H]
    type_tab = tab_ref[_TAB_TYPE:_TAB_TYPE + 2, :]              # [2, H]

    word_oh = (ids == lax.broadcasted_iota(jnp.int32, (R, VOCAB), 1)).astype(f32)
    h = jnp.dot(word_oh, word_tab, preferred_element_type=f32)              # [R, H]
    h = h + jnp.where(tty == 0, type_tab[0:1, :], type_tab[1:2, :])
    # positions repeat per sentence: add via a broadcast over the 3D view
    h = (h.reshape(NS, SEQ, H) + pos_tab).reshape(R, H)
    h = _layernorm(h,
                   tab_ref[_TAB_EMB_G:_TAB_EMB_G + 1, :],
                   tab_ref[_TAB_EMB_B:_TAB_EMB_B + 1, :])

    # key-side additive attention bias: [NS, 1, S] (keys stay in lanes)
    mk = mask_key_ref[...].reshape(NS, SEQ)
    bias = (1.0 - mk)[:, None, :] * -1e9

    for l in range(NUM_LAYERS):
        vec = vec_ref[l]                                         # [8, 3H]
        qkv_b = vec[_V_QKV_B:_V_QKV_B + 1, :]                    # [1, 3H]
        o_b = vec[_V_O_B:_V_O_B + 1, :H]
        ln1_g = vec[_V_LN1_G:_V_LN1_G + 1, :H]
        ln1_b = vec[_V_LN1_B:_V_LN1_B + 1, :H]
        i_b = vec[_V_I_B:_V_I_B + 1, :INTERMEDIATE]
        fo_b = vec[_V_FO_B:_V_FO_B + 1, :H]
        ln2_g = vec[_V_LN2_G:_V_LN2_G + 1, :H]
        ln2_b = vec[_V_LN2_B:_V_LN2_B + 1, :H]
        ow = o_w_ref[l]                                          # [H, H]

        x = h
        # fused Q/K/V projection: one [R, H] x [H, 3H] MXU push
        qkv = jnp.dot(x, qkv_w_ref[l], preferred_element_type=f32) + qkv_b  # [R, 3H]
        qkv3 = qkv.reshape(NS, SEQ, 3 * H)

        # per-head attention; output projection folded into the loop so no
        # 4-way lane concat of the heads is needed.
        attn = None
        for hh in range(NUM_HEADS):
            lo = hh * HEAD_DIM
            qh = qkv3[:, :, lo:lo + HEAD_DIM]                               # [NS, S, D]
            kh = qkv3[:, :, H + lo:H + lo + HEAD_DIM]
            vh = qkv3[:, :, 2 * H + lo:2 * H + lo + HEAD_DIM]
            s = jnp.einsum('bqd,bkd->bqk', qh, kh,
                           preferred_element_type=f32) * scale + bias       # [NS, S, S]
            s = s - jnp.max(s, axis=-1, keepdims=True)
            p = jnp.exp(s)
            p = p * pl.reciprocal(jnp.sum(p, axis=-1, keepdims=True), approx=True)
            ctx = jnp.einsum('bqk,bkd->bqd', p, vh,
                             preferred_element_type=f32)                    # [NS, S, D]
            contrib = jnp.dot(ctx.reshape(R, HEAD_DIM),
                              ow[lo:lo + HEAD_DIM, :],
                              preferred_element_type=f32)                   # [R, H]
            attn = contrib if attn is None else attn + contrib
        attn = attn + o_b
        h = _layernorm(x + attn, ln1_g, ln1_b)

        inter = _gelu(jnp.dot(h, i_w_ref[l], preferred_element_type=f32) + i_b)
        ffn = jnp.dot(inter, fo_w_ref[l], preferred_element_type=f32) + fo_b
        h = _layernorm(h + ffn, ln2_g, ln2_b)

    # ---- masked mean pooling per sentence (exact division) ----
    m = mask_col_ref[...].reshape(NS, SEQ, 1)
    h3 = h.reshape(NS, SEQ, H)
    sums = jnp.sum(h3 * m, axis=1)                               # [NS, H]
    lens = jnp.maximum(jnp.sum(m, axis=1), 1.0)                  # [NS, 1]
    emb = sums / lens

    embp = emb.reshape(P, 2, H)
    ea = embp[:, 0, :]                                           # [P, H]
    eb = embp[:, 1, :]

    # ---- SBERT head without the [1, 3H] lane concat ----
    w_a = tab_ref[_TAB_CLS_W + 0:_TAB_CLS_W + 1, :]
    w_b = tab_ref[_TAB_CLS_W + 1:_TAB_CLS_W + 2, :]
    w_d = tab_ref[_TAB_CLS_W + 2:_TAB_CLS_W + 3, :]
    cls_b = tab_ref[_TAB_CLS_B:_TAB_CLS_B + 1, 0:1]

    contrib = ea * w_a + eb * w_b + jnp.abs(ea - eb) * w_d       # [P, H]
    logits = jnp.sum(contrib, axis=-1, keepdims=True) + cls_b    # [P, 1]
    o_ref[...] = logits.reshape(P, 1, 1)


# --------------------------------------------------------------------------
# Wrapper around the fused pallas_call
# --------------------------------------------------------------------------
def _num_grid_steps(batch):
    # v7x has 2 TensorCores per chip -> 2 parallel steps; v5e/v6e -> 1 step.
    try:
        kind = jax.devices()[0].device_kind.lower()
        if ("v7" in kind or "7x" in kind) and batch % 2 == 0:
            return 2
    except Exception:
        pass
    return 1


def _run_fused(ids_col, tty_col, mask_col, mask_key, weights, num_steps):
    B = ids_col.shape[0]
    P = B // num_steps

    def act_spec(shape):
        nd = len(shape)
        return pl.BlockSpec((P,) + tuple(shape[1:]),
                            lambda i, _nd=nd: (i,) + (0,) * (_nd - 1))

    def full_spec(shape):
        nd = len(shape)
        return pl.BlockSpec(tuple(shape), lambda i, _nd=nd: (0,) * _nd)

    in_specs = ([act_spec(ids_col.shape), act_spec(tty_col.shape),
                 act_spec(mask_col.shape), act_spec(mask_key.shape)]
                + [full_spec(w.shape) for w in weights])

    out = pl.pallas_call(
        partial(_fused_sbert_kernel, pairs=P),
        grid=(num_steps,),
        in_specs=in_specs,
        out_specs=pl.BlockSpec((P, 1, 1), lambda i: (i, 0, 0)),
        out_shape=jax.ShapeDtypeStruct((B, 1, 1), jnp.float32),
        compiler_params=pltpu.CompilerParams(
            dimension_semantics=("parallel",),
            vmem_limit_bytes=32 * 1024 * 1024,
        ),
    )(ids_col, tty_col, mask_col, mask_key, *weights)
    return out.reshape(B, 1)


# --------------------------------------------------------------------------
# Synthetic BERT parameters + packing into lane-dense slabs
# --------------------------------------------------------------------------
def init_params(key):
    keys = jax.random.split(key, 4 + NUM_LAYERS)

    def nrm(k, shape):
        return 0.02 * jax.random.normal(k, shape, jnp.float32)

    params = {
        "word_emb": nrm(keys[0], (VOCAB, HIDDEN)),
        "pos_emb": nrm(keys[1], (MAX_POS, HIDDEN)),
        "type_emb": nrm(keys[2], (2, HIDDEN)),
        "emb_ln_g": jnp.ones((HIDDEN,), jnp.float32),
        "emb_ln_b": jnp.zeros((HIDDEN,), jnp.float32),
        # classifier Linear(3*HIDDEN, 1): concat order [a, b, |a-b|]
        "cls_w": nrm(keys[3], (3 * HIDDEN, 1)),
        "cls_b": jnp.zeros((1,), jnp.float32),
        "layers": [],
    }
    for l in range(NUM_LAYERS):
        lk = jax.random.split(keys[4 + l], 6)
        params["layers"].append({
            "q_w": nrm(lk[0], (HIDDEN, HIDDEN)), "q_b": jnp.zeros((HIDDEN,), jnp.float32),
            "k_w": nrm(lk[1], (HIDDEN, HIDDEN)), "k_b": jnp.zeros((HIDDEN,), jnp.float32),
            "v_w": nrm(lk[2], (HIDDEN, HIDDEN)), "v_b": jnp.zeros((HIDDEN,), jnp.float32),
            "o_w": nrm(lk[3], (HIDDEN, HIDDEN)), "o_b": jnp.zeros((HIDDEN,), jnp.float32),
            "ln1_g": jnp.ones((HIDDEN,), jnp.float32), "ln1_b": jnp.zeros((HIDDEN,), jnp.float32),
            "i_w": nrm(lk[4], (HIDDEN, INTERMEDIATE)), "i_b": jnp.zeros((INTERMEDIATE,), jnp.float32),
            "fo_w": nrm(lk[5], (INTERMEDIATE, HIDDEN)), "fo_b": jnp.zeros((HIDDEN,), jnp.float32),
            "ln2_g": jnp.ones((HIDDEN,), jnp.float32), "ln2_b": jnp.zeros((HIDDEN,), jnp.float32),
        })
    return params


def pack_kernel_weights(params):
    L = params["layers"]
    W = 3 * HIDDEN

    def padrow(v):
        v = v.reshape(1, -1)
        return jnp.pad(v, ((0, 0), (0, W - v.shape[1])))

    qkv_w = jnp.stack([jnp.concatenate([l["q_w"], l["k_w"], l["v_w"]], axis=1) for l in L])
    o_w = jnp.stack([l["o_w"] for l in L])
    i_w = jnp.stack([l["i_w"] for l in L])
    fo_w = jnp.stack([l["fo_w"] for l in L])
    vec = jnp.stack([
        jnp.concatenate([
            padrow(jnp.concatenate([l["q_b"], l["k_b"], l["v_b"]])),
            padrow(l["o_b"]), padrow(l["ln1_g"]), padrow(l["ln1_b"]),
            padrow(l["i_b"]), padrow(l["fo_b"]), padrow(l["ln2_g"]), padrow(l["ln2_b"]),
        ], axis=0) for l in L
    ])                                                           # [L, 8, 3H]

    cls_b_row = jnp.zeros((1, HIDDEN), jnp.float32).at[0, 0].set(params["cls_b"][0])
    tab = jnp.concatenate([
        params["word_emb"],                  # rows 0:64
        params["pos_emb"][:SEQ],             # 64:72
        params["type_emb"],                  # 72:74
        params["emb_ln_g"][None, :],         # 74
        params["emb_ln_b"][None, :],         # 75
        params["cls_w"].reshape(3, HIDDEN),  # 76:79
        cls_b_row,                           # 79
    ], axis=0)                                                   # [80, H]
    return (tab, qkv_w, o_w, i_w, fo_w, vec)


# --------------------------------------------------------------------------
# SentenceBERT forward
# --------------------------------------------------------------------------
def sentence_bert_forward(params, input_ids, pair_input_ids,
                          attention_mask=None, token_type_ids=None,
                          pair_attention_mask=None, pair_token_type_ids=None,
                          num_grid_steps=None):
    if attention_mask is None:
        attention_mask = (input_ids != PAD_TOKEN_ID).astype(jnp.int32)
    if pair_attention_mask is None:
        pair_attention_mask = (pair_input_ids != PAD_TOKEN_ID).astype(jnp.int32)
    if token_type_ids is None:
        token_type_ids = jnp.zeros_like(input_ids)
    if pair_token_type_ids is None:
        pair_token_type_ids = jnp.zeros_like(pair_input_ids)

    B, S = input_ids.shape
    if num_grid_steps is None:
        num_grid_steps = _num_grid_steps(B)
    if B % num_grid_steps != 0:
        num_grid_steps = 1

    # pair-interleaved layout: sentence index 0 = a, 1 = b
    ids = jnp.stack([input_ids, pair_input_ids], axis=1).astype(jnp.int32)       # [B,2,S]
    tty = jnp.stack([token_type_ids, pair_token_type_ids], axis=1).astype(jnp.int32)
    msk = jnp.stack([attention_mask, pair_attention_mask], axis=1).astype(jnp.float32)

    ids_col = ids.reshape(B, 2 * S, 1)        # per-token rows (for one-hot embedding)
    tty_col = tty.reshape(B, 2 * S, 1)
    mask_col = msk.reshape(B, 2 * S, 1)       # pooling mask (token rows)
    mask_key = msk                            # [B, 2, S] key mask (attention bias)

    # TODO(synk): BERT pooler output (outputs[1]) is unused with pooling_mode='mean'; skipped.
    weights = pack_kernel_weights(params)
    return _run_fused(ids_col, tty_col, mask_col, mask_key, weights, num_grid_steps)


if __name__ == "__main__":
    key = jax.random.PRNGKey(0)
    pkey, ik1, ik2 = jax.random.split(key, 3)
    params = init_params(pkey)

    input_ids = jax.random.randint(ik1, (BATCH, SEQ), 1, VOCAB, dtype=jnp.int32)
    pair_input_ids = jax.random.randint(ik2, (BATCH, SEQ), 1, VOCAB, dtype=jnp.int32)
    # trailing padding so the masked mean pooling is exercised
    input_ids = input_ids.at[:, SEQ - 2:].set(PAD_TOKEN_ID)
    pair_input_ids = pair_input_ids.at[1, SEQ - 3:].set(PAD_TOKEN_ID)

    logits = jax.jit(sentence_bert_forward)(params, input_ids, pair_input_ids)
    jax.block_until_ready(logits)
    assert logits.shape == (BATCH, 1) and logits.dtype == jnp.float32
    assert bool(jnp.all(jnp.isfinite(logits)))
    print("KERNEL_OK")
</pallas_src>

<mosaic_0001>
module attributes {stable_mosaic.version = 11 : i64} {
  func.func @_fused_sbert_kernel(%arg0: i32, %arg1: memref<2x16x1xi32, #tpu.memory_space<vmem>>, %arg2: memref<2x16x1xi32, #tpu.memory_space<vmem>>, %arg3: memref<2x16x1xf32, #tpu.memory_space<vmem>>, %arg4: memref<2x2x8xf32, #tpu.memory_space<vmem>>, %arg5: memref<80x32xf32, #tpu.memory_space<vmem>>, %arg6: memref<2x32x96xf32, #tpu.memory_space<vmem>>, %arg7: memref<2x32x32xf32, #tpu.memory_space<vmem>>, %arg8: memref<2x32x64xf32, #tpu.memory_space<vmem>>, %arg9: memref<2x64x32xf32, #tpu.memory_space<vmem>>, %arg10: memref<2x8x96xf32, #tpu.memory_space<vmem>>, %arg11: memref<2x1x1xf32, #tpu.memory_space<vmem>>) attributes {dimension_semantics = [#tpu.dimension_semantics<parallel>], iteration_bounds = array<i64: 1>, scalar_prefetch = 0 : i64, scratch_operands = 0 : i64, tpu.core_type = #tpu.core_type<tc>, window_params = [{transform_indices = @transform_0, window_bounds = array<i64: 2, 16, 1>}, {transform_indices = @transform_1, window_bounds = array<i64: 2, 16, 1>}, {transform_indices = @transform_2, window_bounds = array<i64: 2, 16, 1>}, {transform_indices = @transform_3, window_bounds = array<i64: 2, 2, 8>}, {pipeline_mode = #tpu.pipeline_mode<synchronous>, transform_indices = @transform_4, window_bounds = array<i64: 80, 32>}, {pipeline_mode = #tpu.pipeline_mode<synchronous>, transform_indices = @transform_5, window_bounds = array<i64: 2, 32, 96>}, {pipeline_mode = #tpu.pipeline_mode<synchronous>, transform_indices = @transform_6, window_bounds = array<i64: 2, 32, 32>}, {pipeline_mode = #tpu.pipeline_mode<synchronous>, transform_indices = @transform_7, window_bounds = array<i64: 2, 32, 64>}, {pipeline_mode = #tpu.pipeline_mode<synchronous>, transform_indices = @transform_8, window_bounds = array<i64: 2, 64, 32>}, {pipeline_mode = #tpu.pipeline_mode<synchronous>, transform_indices = @transform_9, window_bounds = array<i64: 2, 8, 96>}, {transform_indices = @transform_10, window_bounds = array<i64: 2, 1, 1>}]} {
    %c0 = arith.constant 0 : index
    %c0_0 = arith.constant 0 : index
    %c0_1 = arith.constant 0 : index
    %0 = vector.load %arg1[%c0, %c0_0, %c0_1] : memref<2x16x1xi32, #tpu.memory_space<vmem>>, vector<2x16x1xi32>
    %1 = vector.shape_cast %0 : vector<2x16x1xi32> to vector<32x1xi32>
    %c0_2 = arith.constant 0 : index
    %c0_3 = arith.constant 0 : index
    %c0_4 = arith.constant 0 : index
    %2 = vector.load %arg2[%c0_2, %c0_3, %c0_4] : memref<2x16x1xi32, #tpu.memory_space<vmem>>, vector<2x16x1xi32>
    %3 = vector.shape_cast %2 : vector<2x16x1xi32> to vector<32x1xi32>
    %c0_5 = arith.constant 0 : index
    %c0_6 = arith.constant 0 : index
    %4 = vector.load %arg5[%c0_5, %c0_6] : memref<80x32xf32, #tpu.memory_space<vmem>>, vector<64x32xf32>
    %c64 = arith.constant 64 : index
    %c0_7 = arith.constant 0 : index
    %5 = vector.load %arg5[%c64, %c0_7] : memref<80x32xf32, #tpu.memory_space<vmem>>, vector<8x32xf32>
    %c72 = arith.constant 72 : index
    %c0_8 = arith.constant 0 : index
    %6 = vector.load %arg5[%c72, %c0_8] : memref<80x32xf32, #tpu.memory_space<vmem>>, vector<2x32xf32>
    %7 = tpu.iota {dimensions = array<i32: 1>} : vector<32x64xi32>
    %8 = vector.broadcast %1 : vector<32x1xi32> to vector<32x64xi32>
    %9 = arith.cmpi eq, %8, %7 : vector<32x64xi32>
    %10 = arith.extui %9 : vector<32x64xi1> to vector<32x64xi32>
    %11 = arith.sitofp %10 : vector<32x64xi32> to vector<32x64xf32>
    %cst = arith.constant dense<0.000000e+00> : vector<32x32xf32>
    %12 = tpu.matmul %11, %4, %cst {dimension_numbers = #tpu.dot_dimension_numbers<[1], [0], [0], [1], [0, 0, 1, 1], [], []>} : vector<32x64xf32>, vector<64x32xf32>, vector<32x32xf32> -> vector<32x32xf32>
    %c0_i32 = arith.constant 0 : i32
    %13 = vector.broadcast %c0_i32 : i32 to vector<32x1xi32>
    %14 = arith.cmpi eq, %3, %13 : vector<32x1xi32>
    %15 = vector.extract_strided_slice %6 {offsets = [0, 0], sizes = [1, 32], strides = [1, 1]} : vector<2x32xf32> to vector<1x32xf32>
    %16 = vector.extract_strided_slice %6 {offsets = [1, 0], sizes = [1, 32], strides = [1, 1]} : vector<2x32xf32> to vector<1x32xf32>
    %17 = vector.shape_cast %14 : vector<32x1xi1> to vector<32x1xi1>
    %18 = vector.broadcast %17 : vector<32x1xi1> to vector<32x32xi1>
    %19 = vector.shape_cast %15 : vector<1x32xf32> to vector<1x32xf32>
    %20 = vector.broadcast %19 : vector<1x32xf32> to vector<32x32xf32>
    %21 = vector.shape_cast %16 : vector<1x32xf32> to vector<1x32xf32>
    %22 = vector.broadcast %21 : vector<1x32xf32> to vector<32x32xf32>
    %23 = arith.select %18, %20, %22 : vector<32x32xi1>, vector<32x32xf32>
    %24 = arith.addf %12, %23 : vector<32x32xf32>
    %25 = vector.shape_cast %24 : vector<32x32xf32> to vector<4x8x32xf32>
    %26 = vector.shape_cast %5 : vector<8x32xf32> to vector<1x8x32xf32>
    %27 = vector.broadcast %26 : vector<1x8x32xf32> to vector<4x8x32xf32>
    %28 = arith.addf %25, %27 : vector<4x8x32xf32>
    %29 = vector.shape_cast %28 : vector<4x8x32xf32> to vector<32x32xf32>
    %c74 = arith.constant 74 : index
    %c0_9 = arith.constant 0 : index
    %30 = vector.load %arg5[%c74, %c0_9] : memref<80x32xf32, #tpu.memory_space<vmem>>, vector<1x32xf32>
    %c75 = arith.constant 75 : index
    %c0_10 = arith.constant 0 : index
    %31 = vector.load %arg5[%c75, %c0_10] : memref<80x32xf32, #tpu.memory_space<vmem>>, vector<1x32xf32>
    %cst_11 = arith.constant dense<0.000000e+00> : vector<32xf32>
    %32 = vector.multi_reduction <add>, %29, %cst_11 [1] : vector<32x32xf32> to vector<32xf32>
    %33 = vector.shape_cast %32 : vector<32xf32> to vector<32x1xf32>
    %cst_12 = arith.constant 3.200000e+01 : f32
    %34 = vector.broadcast %cst_12 : f32 to vector<32x1xf32>
    %35 = arith.divf %33, %34 : vector<32x1xf32>
    %36 = vector.broadcast %35 : vector<32x1xf32> to vector<32x32xf32>
    %37 = arith.subf %29, %36 : vector<32x32xf32>
    %38 = arith.mulf %37, %37 : vector<32x32xf32>
    %cst_13 = arith.constant dense<0.000000e+00> : vector<32xf32>
    %39 = vector.multi_reduction <add>, %38, %cst_13 [1] : vector<32x32xf32> to vector<32xf32>
    %40 = vector.shape_cast %39 : vector<32xf32> to vector<32x1xf32>
    %cst_14 = arith.constant 3.200000e+01 : f32
    %41 = vector.broadcast %cst_14 : f32 to vector<32x1xf32>
    %42 = arith.divf %40, %41 : vector<32x1xf32>
    %43 = vector.broadcast %35 : vector<32x1xf32> to vector<32x32xf32>
    %44 = arith.subf %29, %43 : vector<32x32xf32>
    %cst_15 = arith.constant 9.99999996E-13 : f32
    %45 = vector.broadcast %cst_15 : f32 to vector<32x1xf32>
    %46 = arith.addf %42, %45 : vector<32x1xf32>
    %47 = math.rsqrt %46 : vector<32x1xf32>
    %48 = vector.broadcast %47 : vector<32x1xf32> to vector<32x32xf32>
    %49 = arith.mulf %44, %48 : vector<32x32xf32>
    %50 = vector.broadcast %30 : vector<1x32xf32> to vector<32x32xf32>
    %51 = arith.mulf %49, %50 : vector<32x32xf32>
    %52 = vector.broadcast %31 : vector<1x32xf32> to vector<32x32xf32>
    %53 = arith.addf %51, %52 : vector<32x32xf32>
    %c0_16 = arith.constant 0 : index
    %c0_17 = arith.constant 0 : index
    %c0_18 = arith.constant 0 : index
    %54 = vector.load %arg4[%c0_16, %c0_17, %c0_18] : memref<2x2x8xf32, #tpu.memory_space<vmem>>, vector<2x2x8xf32>
    %55 = vector.shape_cast %54 : vector<2x2x8xf32> to vector<4x8xf32>
    %cst_19 = arith.constant 1.000000e+00 : f32
    %56 = vector.broadcast %cst_19 : f32 to vector<4x8xf32>
    %57 = arith.subf %56, %55 : vector<4x8xf32>
    %58 = vector.shape_cast %57 : vector<4x8xf32> to vector<4x1x8xf32>
    %cst_20 = arith.constant -1.000000e+09 : f32
    %59 = vector.broadcast %cst_20 : f32 to vector<4x1x8xf32>
    %60 = arith.mulf %58, %59 : vector<4x1x8xf32>
    %c0_21 = arith.constant 0 : index
    %c0_22 = arith.constant 0 : index
    %c0_23 = arith.constant 0 : index
    %61 = vector.load %arg10[%c0_21, %c0_22, %c0_23] : memref<2x8x96xf32, #tpu.memory_space<vmem>>, vector<1x8x96xf32>
    %62 = vector.shape_cast %61 : vector<1x8x96xf32> to vector<8x96xf32>
    %63 = vector.extract_strided_slice %62 {offsets = [0, 0], sizes = [1, 96], strides = [1, 1]} : vector<8x96xf32> to vector<1x96xf32>
    %64 = vector.extract_strided_slice %62 {offsets = [1, 0], sizes = [1, 32], strides = [1, 1]} : vector<8x96xf32> to vector<1x32xf32>
    %65 = vector.extract_strided_slice %62 {offsets = [2, 0], sizes = [1, 32], strides = [1, 1]} : vector<8x96xf32> to vector<1x32xf32>
    %66 = vector.extract_strided_slice %62 {offsets = [3, 0], sizes = [1, 32], strides = [1, 1]} : vector<8x96xf32> to vector<1x32xf32>
    %67 = vector.extract_strided_slice %62 {offsets = [4, 0], sizes = [1, 64], strides = [1, 1]} : vector<8x96xf32> to vector<1x64xf32>
    %68 = vector.extract_strided_slice %62 {offsets = [5, 0], sizes = [1, 32], strides = [1, 1]} : vector<8x96xf32> to vector<1x32xf32>
    %69 = vector.extract_strided_slice %62 {offsets = [6, 0], sizes = [1, 32], strides = [1, 1]} : vector<8x96xf32> to vector<1x32xf32>
    %70 = vector.extract_strided_slice %62 {offsets = [7, 0], sizes = [1, 32], strides = [1, 1]} : vector<8x96xf32> to vector<1x32xf32>
    %c0_24 = arith.constant 0 : index
    %c0_25 = arith.constant 0 : index
    %c0_26 = arith.constant 0 : index
    %71 = vector.load %arg7[%c0_24, %c0_25, %c0_26] : memref<2x32x32xf32, #tpu.memory_space<vmem>>, vector<1x32x32xf32>
    %72 = vector.shape_cast %71 : vector<1x32x32xf32> to vector<32x32xf32>
    %c0_27 = arith.constant 0 : index
    %c0_28 = arith.constant 0 : index
    %c0_29 = arith.constant 0 : index
    %73 = vector.load %arg6[%c0_27, %c0_28, %c0_29] : memref<2x32x96xf32, #tpu.memory_space<vmem>>, vector<1x32x96xf32>
    %74 = vector.shape_cast %73 : vector<1x32x96xf32> to vector<32x96xf32>
    %cst_30 = arith.constant dense<0.000000e+00> : vector<32x96xf32>
    %75 = tpu.matmul %53, %74, %cst_30 {dimension_numbers = #tpu.dot_dimension_numbers<[1], [0], [0], [1], [0, 0, 1, 1], [], []>} : vector<32x32xf32>, vector<32x96xf32>, vector<32x96xf32> -> vector<32x96xf32>
    %76 = vector.broadcast %63 : vector<1x96xf32> to vector<32x96xf32>
    %77 = arith.addf %75, %76 : vector<32x96xf32>
    %78 = vector.shape_cast %77 : vector<32x96xf32> to vector<4x8x96xf32>
    %79 = vector.extract_strided_slice %78 {offsets = [0, 0, 0], sizes = [4, 8, 8], strides = [1, 1, 1]} : vector<4x8x96xf32> to vector<4x8x8xf32>
    %80 = vector.extract_strided_slice %78 {offsets = [0, 0, 32], sizes = [4, 8, 8], strides = [1, 1, 1]} : vector<4x8x96xf32> to vector<4x8x8xf32>
    %81 = vector.extract_strided_slice %78 {offsets = [0, 0, 64], sizes = [4, 8, 8], strides = [1, 1, 1]} : vector<4x8x96xf32> to vector<4x8x8xf32>
    "tpu.trace_start"() <{level = 10 : i32, message = "bqd,bkd->bqk"}> : () -> ()
    %cst_31 = arith.constant dense<0.000000e+00> : vector<4x8x8xf32>
    %82 = tpu.matmul %79, %80, %cst_31 {dimension_numbers = #tpu.dot_dimension_numbers<[2], [2], [1], [1], [0, 0, 0, 1, 1, 1], [0], [0]>} : vector<4x8x8xf32>, vector<4x8x8xf32>, vector<4x8x8xf32> -> vector<4x8x8xf32>
    "tpu.trace_stop"() : () -> ()
    %cst_32 = arith.constant 0.353553385 : f32
    %83 = vector.broadcast %cst_32 : f32 to vector<4x8x8xf32>
    %84 = arith.mulf %82, %83 : vector<4x8x8xf32>
    %85 = vector.broadcast %60 : vector<4x1x8xf32> to vector<4x8x8xf32>
    %86 = arith.addf %84, %85 : vector<4x8x8xf32>
    %cst_33 = arith.constant dense<0xFF800000> : vector<4x8xf32>
    %87 = vector.multi_reduction <maximumf>, %86, %cst_33 [2] : vector<4x8x8xf32> to vector<4x8xf32>
    %88 = vector.shape_cast %87 : vector<4x8xf32> to vector<4x8x1xf32>
    %89 = vector.broadcast %88 : vector<4x8x1xf32> to vector<4x8x8xf32>
    %90 = arith.subf %86, %89 : vector<4x8x8xf32>
    %91 = math.exp %90 : vector<4x8x8xf32>
    %cst_34 = arith.constant dense<0.000000e+00> : vector<4x8xf32>
    %92 = vector.multi_reduction <add>, %91, %cst_34 [2] : vector<4x8x8xf32> to vector<4x8xf32>
    %93 = vector.shape_cast %92 : vector<4x8xf32> to vector<4x8x1xf32>
    %94 = tpu.reciprocal %93 {approx = true} : vector<4x8x1xf32> -> vector<4x8x1xf32>
    %95 = vector.broadcast %94 : vector<4x8x1xf32> to vector<4x8x8xf32>
    %96 = arith.mulf %91, %95 : vector<4x8x8xf32>
    "tpu.trace_start"() <{level = 10 : i32, message = "bqk,bkd->bqd"}> : () -> ()
    %cst_35 = arith.constant dense<0.000000e+00> : vector<4x8x8xf32>
    %97 = tpu.matmul %96, %81, %cst_35 {dimension_numbers = #tpu.dot_dimension_numbers<[2], [1], [1], [2], [0, 0, 0, 1, 1, 2], [0], [0]>} : vector<4x8x8xf32>, vector<4x8x8xf32>, vector<4x8x8xf32> -> vector<4x8x8xf32>
    "tpu.trace_stop"() : () -> ()
    %98 = vector.shape_cast %97 : vector<4x8x8xf32> to vector<32x8xf32>
    %99 = vector.extract_strided_slice %72 {offsets = [0, 0], sizes = [8, 32], strides = [1, 1]} : vector<32x32xf32> to vector<8x32xf32>
    %cst_36 = arith.constant dense<0.000000e+00> : vector<32x32xf32>
    %100 = tpu.matmul %98, %99, %cst_36 {dimension_numbers = #tpu.dot_dimension_numbers<[1], [0], [0], [1], [0, 0, 1, 1], [], []>} : vector<32x8xf32>, vector<8x32xf32>, vector<32x32xf32> -> vector<32x32xf32>
    %101 = vector.extract_strided_slice %78 {offsets = [0, 0, 8], sizes = [4, 8, 8], strides = [1, 1, 1]} : vector<4x8x96xf32> to vector<4x8x8xf32>
    %102 = vector.extract_strided_slice %78 {offsets = [0, 0, 40], sizes = [4, 8, 8], strides = [1, 1, 1]} : vector<4x8x96xf32> to vector<4x8x8xf32>
    %103 = vector.extract_strided_slice %78 {offsets = [0, 0, 72], sizes = [4, 8, 8], strides = [1, 1, 1]} : vector<4x8x96xf32> to vector<4x8x8xf32>
    "tpu.trace_start"() <{level = 10 : i32, message = "bqd,bkd->bqk"}> : () -> ()
    %cst_37 = arith.constant dense<0.000000e+00> : vector<4x8x8xf32>
    %104 = tpu.matmul %101, %102, %cst_37 {dimension_numbers = #tpu.dot_dimension_numbers<[2], [2], [1], [1], [0, 0, 0, 1, 1, 1], [0], [0]>} : vector<4x8x8xf32>, vector<4x8x8xf32>, vector<4x8x8xf32> -> vector<4x8x8xf32>
    "tpu.trace_stop"() : () -> ()
    %cst_38 = arith.constant 0.353553385 : f32
    %105 = vector.broadcast %cst_38 : f32 to vector<4x8x8xf32>
    %106 = arith.mulf %104, %105 : vector<4x8x8xf32>
    %107 = vector.broadcast %60 : vector<4x1x8xf32> to vector<4x8x8xf32>
    %108 = arith.addf %106, %107 : vector<4x8x8xf32>
    %cst_39 = arith.constant dense<0xFF800000> : vector<4x8xf32>
    %109 = vector.multi_reduction <maximumf>, %108, %cst_39 [2] : vector<4x8x8xf32> to vector<4x8xf32>
    %110 = vector.shape_cast %109 : vector<4x8xf32> to vector<4x8x1xf32>
    %111 = vector.broadcast %110 : vector<4x8x1xf32> to vector<4x8x8xf32>
    %112 = arith.subf %108, %111 : vector<4x8x8xf32>
    %113 = math.exp %112 : vector<4x8x8xf32>
    %cst_40 = arith.constant dense<0.000000e+00> : vector<4x8xf32>
    %114 = vector.multi_reduction <add>, %113, %cst_40 [2] : vector<4x8x8xf32> to vector<4x8xf32>
    %115 = vector.shape_cast %114 : vector<4x8xf32> to vector<4x8x1xf32>
    %116 = tpu.reciprocal %115 {approx = true} : vector<4x8x1xf32> -> vector<4x8x1xf32>
    %117 = vector.broadcast %116 : vector<4x8x1xf32> to vector<4x8x8xf32>
    %118 = arith.mulf %113, %117 : vector<4x8x8xf32>
    "tpu.trace_start"() <{level = 10 : i32, message = "bqk,bkd->bqd"}> : () -> ()
    %cst_41 = arith.constant dense<0.000000e+00> : vector<4x8x8xf32>
    %119 = tpu.matmul %118, %103, %cst_41 {dimension_numbers = #tpu.dot_dimension_numbers<[2], [1], [1], [2], [0, 0, 0, 1, 1, 2], [0], [0]>} : vector<4x8x8xf32>, vector<4x8x8xf32>, vector<4x8x8xf32> -> vector<4x8x8xf32>
    "tpu.trace_stop"() : () -> ()
    %120 = vector.shape_cast %119 : vector<4x8x8xf32> to vector<32x8xf32>
    %121 = vector.extract_strided_slice %72 {offsets = [8, 0], sizes = [8, 32], strides = [1, 1]} : vector<32x32xf32> to vector<8x32xf32>
    %cst_42 = arith.constant dense<0.000000e+00> : vector<32x32xf32>
    %122 = tpu.matmul %120, %121, %cst_42 {dimension_numbers = #tpu.dot_dimension_numbers<[1], [0], [0], [1], [0, 0, 1, 1], [], []>} : vector<32x8xf32>, vector<8x32xf32>, vector<32x32xf32> -> vector<32x32xf32>
    %123 = arith.addf %100, %122 : vector<32x32xf32>
    %124 = vector.extract_strided_slice %78 {offsets = [0, 0, 16], sizes = [4, 8, 8], strides = [1, 1, 1]} : vector<4x8x96xf32> to vector<4x8x8xf32>
    %125 = vector.extract_strided_slice %78 {offsets = [0, 0, 48], sizes = [4, 8, 8], strides = [1, 1, 1]} : vector<4x8x96xf32> to vector<4x8x8xf32>
    %126 = vector.extract_strided_slice %78 {offsets = [0, 0, 80], sizes = [4, 8, 8], strides = [1, 1, 1]} : vector<4x8x96xf32> to vector<4x8x8xf32>
    "tpu.trace_start"() <{level = 10 : i32, message = "bqd,bkd->bqk"}> : () -> ()
    %cst_43 = arith.constant dense<0.000000e+00> : vector<4x8x8xf32>
    %127 = tpu.matmul %124, %125, %cst_43 {dimension_numbers = #tpu.dot_dimension_numbers<[2], [2], [1], [1], [0, 0, 0, 1, 1, 1], [0], [0]>} : vector<4x8x8xf32>, vector<4x8x8xf32>, vector<4x8x8xf32> -> vector<4x8x8xf32>
    "tpu.trace_stop"() : () -> ()
    %cst_44 = arith.constant 0.353553385 : f32
    %128 = vector.broadcast %cst_44 : f32 to vector<4x8x8xf32>
    %129 = arith.mulf %127, %128 : vector<4x8x8xf32>
    %130 = vector.broadcast %60 : vector<4x1x8xf32> to vector<4x8x8xf32>
    %131 = arith.addf %129, %130 : vector<4x8x8xf32>
    %cst_45 = arith.constant dense<0xFF800000> : vector<4x8xf32>
    %132 = vector.multi_reduction <maximumf>, %131, %cst_45 [2] : vector<4x8x8xf32> to vector<4x8xf32>
    %133 = vector.shape_cast %132 : vector<4x8xf32> to vector<4x8x1xf32>
    %134 = vector.broadcast %133 : vector<4x8x1xf32> to vector<4x8x8xf32>
    %135 = arith.subf %131, %134 : vector<4x8x8xf32>
    %136 = math.exp %135 : vector<4x8x8xf32>
    %cst_46 = arith.constant dense<0.000000e+00> : vector<4x8xf32>
    %137 = vector.multi_reduction <add>, %136, %cst_46 [2] : vector<4x8x8xf32> to vector<4x8xf32>
    %138 = vector.shape_cast %137 : vector<4x8xf32> to vector<4x8x1xf32>
    %139 = tpu.reciprocal %138 {approx = true} : vector<4x8x1xf32> -> vector<4x8x1xf32>
    %140 = vector.broadcast %139 : vector<4x8x1xf32> to vector<4x8x8xf32>
    %141 = arith.mulf %136, %140 : vector<4x8x8xf32>
    "tpu.trace_start"() <{level = 10 : i32, message = "bqk,bkd->bqd"}> : () -> ()
    %cst_47 = arith.constant dense<0.000000e+00> : vector<4x8x8xf32>
    %142 = tpu.matmul %141, %126, %cst_47 {dimension_numbers = #tpu.dot_dimension_numbers<[2], [1], [1], [2], [0, 0, 0, 1, 1, 2], [0], [0]>} : vector<4x8x8xf32>, vector<4x8x8xf32>, vector<4x8x8xf32> -> vector<4x8x8xf32>
    "tpu.trace_stop"() : () -> ()
    %143 = vector.shape_cast %142 : vector<4x8x8xf32> to vector<32x8xf32>
    %144 = vector.extract_strided_slice %72 {offsets = [16, 0], sizes = [8, 32], strides = [1, 1]} : vector<32x32xf32> to vector<8x32xf32>
    %cst_48 = arith.constant dense<0.000000e+00> : vector<32x32xf32>
    %145 = tpu.matmul %143, %144, %cst_48 {dimension_numbers = #tpu.dot_dimension_numbers<[1], [0], [0], [1], [0, 0, 1, 1], [], []>} : vector<32x8xf32>, vector<8x32xf32>, vector<32x32xf32> -> vector<32x32xf32>
    %146 = arith.addf %123, %145 : vector<32x32xf32>
    %147 = vector.extract_strided_slice %78 {offsets = [0, 0, 24], sizes = [4, 8, 8], strides = [1, 1, 1]} : vector<4x8x96xf32> to vector<4x8x8xf32>
    %148 = vector.extract_strided_slice %78 {offsets = [0, 0, 56], sizes = [4, 8, 8], strides = [1, 1, 1]} : vector<4x8x96xf32> to vector<4x8x8xf32>
    %149 = vector.extract_strided_slice %78 {offsets = [0, 0, 88], sizes = [4, 8, 8], strides = [1, 1, 1]} : vector<4x8x96xf32> to vector<4x8x8xf32>
    "tpu.trace_start"() <{level = 10 : i32, message = "bqd,bkd->bqk"}> : () -> ()
    %cst_49 = arith.constant dense<0.000000e+00> : vector<4x8x8xf32>
    %150 = tpu.matmul %147, %148, %cst_49 {dimension_numbers = #tpu.dot_dimension_numbers<[2], [2], [1], [1], [0, 0, 0, 1, 1, 1], [0], [0]>} : vector<4x8x8xf32>, vector<4x8x8xf32>, vector<4x8x8xf32> -> vector<4x8x8xf32>
    "tpu.trace_stop"() : () -> ()
    %cst_50 = arith.constant 0.353553385 : f32
    %151 = vector.broadcast %cst_50 : f32 to vector<4x8x8xf32>
    %152 = arith.mulf %150, %151 : vector<4x8x8xf32>
    %153 = vector.broadcast %60 : vector<4x1x8xf32> to vector<4x8x8xf32>
    %154 = arith.addf %152, %153 : vector<4x8x8xf32>
    %cst_51 = arith.constant dense<0xFF800000> : vector<4x8xf32>
    %155 = vector.multi_reduction <maximumf>, %154, %cst_51 [2] : vector<4x8x8xf32> to vector<4x8xf32>
    %156 = vector.shape_cast %155 : vector<4x8xf32> to vector<4x8x1xf32>
    %157 = vector.broadcast %156 : vector<4x8x1xf32> to vector<4x8x8xf32>
    %158 = arith.subf %154, %157 : vector<4x8x8xf32>
    %159 = math.exp %158 : vector<4x8x8xf32>
    %cst_52 = arith.constant dense<0.000000e+00> : vector<4x8xf32>
    %160 = vector.multi_reduction <add>, %159, %cst_52 [2] : vector<4x8x8xf32> to vector<4x8xf32>
    %161 = vector.shape_cast %160 : vector<4x8xf32> to vector<4x8x1xf32>
    %162 = tpu.reciprocal %161 {approx = true} : vector<4x8x1xf32> -> vector<4x8x1xf32>
    %163 = vector.broadcast %162 : vector<4x8x1xf32> to vector<4x8x8xf32>
    %164 = arith.mulf %159, %163 : vector<4x8x8xf32>
    "tpu.trace_start"() <{level = 10 : i32, message = "bqk,bkd->bqd"}> : () -> ()
    %cst_53 = arith.constant dense<0.000000e+00> : vector<4x8x8xf32>
    %165 = tpu.matmul %164, %149, %cst_53 {dimension_numbers = #tpu.dot_dimension_numbers<[2], [1], [1], [2], [0, 0, 0, 1, 1, 2], [0], [0]>} : vector<4x8x8xf32>, vector<4x8x8xf32>, vector<4x8x8xf32> -> vector<4x8x8xf32>
    "tpu.trace_stop"() : () -> ()
    %166 = vector.shape_cast %165 : vector<4x8x8xf32> to vector<32x8xf32>
    %167 = vector.extract_strided_slice %72 {offsets = [24, 0], sizes = [8, 32], strides = [1, 1]} : vector<32x32xf32> to vector<8x32xf32>
    %cst_54 = arith.constant dense<0.000000e+00> : vector<32x32xf32>
    %168 = tpu.matmul %166, %167, %cst_54 {dimension_numbers = #tpu.dot_dimension_numbers<[1], [0], [0], [1], [0, 0, 1, 1], [], []>} : vector<32x8xf32>, vector<8x32xf32>, vector<32x32xf32> -> vector<32x32xf32>
    %169 = arith.addf %146, %168 : vector<32x32xf32>
    %170 = vector.broadcast %64 : vector<1x32xf32> to vector<32x32xf32>
    %171 = arith.addf %169, %170 : vector<32x32xf32>
    %172 = arith.addf %53, %171 : vector<32x32xf32>
    %cst_55 = arith.constant dense<0.000000e+00> : vector<32xf32>
    %173 = vector.multi_reduction <add>, %172, %cst_55 [1] : vector<32x32xf32> to vector<32xf32>
    %174 = vector.shape_cast %173 : vector<32xf32> to vector<32x1xf32>
    %cst_56 = arith.constant 3.200000e+01 : f32
    %175 = vector.broadcast %cst_56 : f32 to vector<32x1xf32>
    %176 = arith.divf %174, %175 : vector<32x1xf32>
    %177 = vector.broadcast %176 : vector<32x1xf32> to vector<32x32xf32>
    %178 = arith.subf %172, %177 : vector<32x32xf32>
    %179 = arith.mulf %178, %178 : vector<32x32xf32>
    %cst_57 = arith.constant dense<0.000000e+00> : vector<32xf32>
    %180 = vector.multi_reduction <add>, %179, %cst_57 [1] : vector<32x32xf32> to vector<32xf32>
    %181 = vector.shape_cast %180 : vector<32xf32> to vector<32x1xf32>
    %cst_58 = arith.constant 3.200000e+01 : f32
    %182 = vector.broadcast %cst_58 : f32 to vector<32x1xf32>
    %183 = arith.divf %181, %182 : vector<32x1xf32>
    %184 = vector.broadcast %176 : vector<32x1xf32> to vector<32x32xf32>
    %185 = arith.subf %172, %184 : vector<32x32xf32>
    %cst_59 = arith.constant 9.99999996E-13 : f32
    %186 = vector.broadcast %cst_59 : f32 to vector<32x1xf32>
    %187 = arith.addf %183, %186 : vector<32x1xf32>
    %188 = math.rsqrt %187 : vector<32x1xf32>
    %189 = vector.broadcast %188 : vector<32x1xf32> to vector<32x32xf32>
    %190 = arith.mulf %185, %189 : vector<32x32xf32>
    %191 = vector.broadcast %65 : vector<1x32xf32> to vector<32x32xf32>
    %192 = arith.mulf %190, %191 : vector<32x32xf32>
    %193 = vector.broadcast %66 : vector<1x32xf32> to vector<32x32xf32>
    %194 = arith.addf %192, %193 : vector<32x32xf32>
    %c0_60 = arith.constant 0 : index
    %c0_61 = arith.constant 0 : index
    %c0_62 = arith.constant 0 : index
    %195 = vector.load %arg8[%c0_60, %c0_61, %c0_62] : memref<2x32x64xf32, #tpu.memory_space<vmem>>, vector<1x32x64xf32>
    %196 = vector.shape_cast %195 : vector<1x32x64xf32> to vector<32x64xf32>
    %cst_63 = arith.constant dense<0.000000e+00> : vector<32x64xf32>
    %197 = tpu.matmul %194, %196, %cst_63 {dimension_numbers = #tpu.dot_dimension_numbers<[1], [0], [0], [1], [0, 0, 1, 1], [], []>} : vector<32x32xf32>, vector<32x64xf32>, vector<32x64xf32> -> vector<32x64xf32>
    %198 = vector.broadcast %67 : vector<1x64xf32> to vector<32x64xf32>
    %199 = arith.addf %197, %198 : vector<32x64xf32>
    %cst_64 = arith.constant 5.000000e-01 : f32
    %200 = vector.broadcast %cst_64 : f32 to vector<32x64xf32>
    %201 = arith.mulf %200, %199 : vector<32x64xf32>
    %cst_65 = arith.constant 4.471500e-02 : f32
    %202 = vector.broadcast %cst_65 : f32 to vector<32x64xf32>
    %203 = arith.mulf %202, %199 : vector<32x64xf32>
    %204 = arith.mulf %203, %199 : vector<32x64xf32>
    %205 = arith.mulf %204, %199 : vector<32x64xf32>
    %206 = arith.addf %199, %205 : vector<32x64xf32>
    %cst_66 = arith.constant 0.797884583 : f32
    %207 = vector.broadcast %cst_66 : f32 to vector<32x64xf32>
    %208 = arith.mulf %207, %206 : vector<32x64xf32>
    %209 = math.tanh %208 : vector<32x64xf32>
    %cst_67 = arith.constant 1.000000e+00 : f32
    %210 = vector.broadcast %cst_67 : f32 to vector<32x64xf32>
    %211 = arith.addf %210, %209 : vector<32x64xf32>
    %212 = arith.mulf %201, %211 : vector<32x64xf32>
    %c0_68 = arith.constant 0 : index
    %c0_69 = arith.constant 0 : index
    %c0_70 = arith.constant 0 : index
    %213 = vector.load %arg9[%c0_68, %c0_69, %c0_70] : memref<2x64x32xf32, #tpu.memory_space<vmem>>, vector<1x64x32xf32>
    %214 = vector.shape_cast %213 : vector<1x64x32xf32> to vector<64x32xf32>
    %cst_71 = arith.constant dense<0.000000e+00> : vector<32x32xf32>
    %215 = tpu.matmul %212, %214, %cst_71 {dimension_numbers = #tpu.dot_dimension_numbers<[1], [0], [0], [1], [0, 0, 1, 1], [], []>} : vector<32x64xf32>, vector<64x32xf32>, vector<32x32xf32> -> vector<32x32xf32>
    %216 = vector.broadcast %68 : vector<1x32xf32> to vector<32x32xf32>
    %217 = arith.addf %215, %216 : vector<32x32xf32>
    %218 = arith.addf %194, %217 : vector<32x32xf32>
    %cst_72 = arith.constant dense<0.000000e+00> : vector<32xf32>
    %219 = vector.multi_reduction <add>, %218, %cst_72 [1] : vector<32x32xf32> to vector<32xf32>
    %220 = vector.shape_cast %219 : vector<32xf32> to vector<32x1xf32>
    %cst_73 = arith.constant 3.200000e+01 : f32
    %221 = vector.broadcast %cst_73 : f32 to vector<32x1xf32>
    %222 = arith.divf %220, %221 : vector<32x1xf32>
    %223 = vector.broadcast %222 : vector<32x1xf32> to vector<32x32xf32>
    %224 = arith.subf %218, %223 : vector<32x32xf32>
    %225 = arith.mulf %224, %224 : vector<32x32xf32>
    %cst_74 = arith.constant dense<0.000000e+00> : vector<32xf32>
    %226 = vector.multi_reduction <add>, %225, %cst_74 [1] : vector<32x32xf32> to vector<32xf32>
    %227 = vector.shape_cast %226 : vector<32xf32> to vector<32x1xf32>
    %cst_75 = arith.constant 3.200000e+01 : f32
    %228 = vector.broadcast %cst_75 : f32 to vector<32x1xf32>
    %229 = arith.divf %227, %228 : vector<32x1xf32>
    %230 = vector.broadcast %222 : vector<32x1xf32> to vector<32x32xf32>
    %231 = arith.subf %218, %230 : vector<32x32xf32>
    %cst_76 = arith.constant 9.99999996E-13 : f32
    %232 = vector.broadcast %cst_76 : f32 to vector<32x1xf32>
    %233 = arith.addf %229, %232 : vector<32x1xf32>
    %234 = math.rsqrt %233 : vector<32x1xf32>
    %235 = vector.broadcast %234 : vector<32x1xf32> to vector<32x32xf32>
    %236 = arith.mulf %231, %235 : vector<32x32xf32>
    %237 = vector.broadcast %69 : vector<1x32xf32> to vector<32x32xf32>
    %238 = arith.mulf %236, %237 : vector<32x32xf32>
    %239 = vector.broadcast %70 : vector<1x32xf32> to vector<32x32xf32>
    %240 = arith.addf %238, %239 : vector<32x32xf32>
    %c1 = arith.constant 1 : index
    %c0_77 = arith.constant 0 : index
    %c0_78 = arith.constant 0 : index
    %241 = vector.load %arg10[%c1, %c0_77, %c0_78] : memref<2x8x96xf32, #tpu.memory_space<vmem>>, vector<1x8x96xf32>
    %242 = vector.shape_cast %241 : vector<1x8x96xf32> to vector<8x96xf32>
    %243 = vector.extract_strided_slice %242 {offsets = [0, 0], sizes = [1, 96], strides = [1, 1]} : vector<8x96xf32> to vector<1x96xf32>
    %244 = vector.extract_strided_slice %242 {offsets = [1, 0], sizes = [1, 32], strides = [1, 1]} : vector<8x96xf32> to vector<1x32xf32>
    %245 = vector.extract_strided_slice %242 {offsets = [2, 0], sizes = [1, 32], strides = [1, 1]} : vector<8x96xf32> to vector<1x32xf32>
    %246 = vector.extract_strided_slice %242 {offsets = [3, 0], sizes = [1, 32], strides = [1, 1]} : vector<8x96xf32> to vector<1x32xf32>
    %247 = vector.extract_strided_slice %242 {offsets = [4, 0], sizes = [1, 64], strides = [1, 1]} : vector<8x96xf32> to vector<1x64xf32>
    %248 = vector.extract_strided_slice %242 {offsets = [5, 0], sizes = [1, 32], strides = [1, 1]} : vector<8x96xf32> to vector<1x32xf32>
    %249 = vector.extract_strided_slice %242 {offsets = [6, 0], sizes = [1, 32], strides = [1, 1]} : vector<8x96xf32> to vector<1x32xf32>
    %250 = vector.extract_strided_slice %242 {offsets = [7, 0], sizes = [1, 32], strides = [1, 1]} : vector<8x96xf32> to vector<1x32xf32>
    %c1_79 = arith.constant 1 : index
    %c0_80 = arith.constant 0 : index
    %c0_81 = arith.constant 0 : index
    %251 = vector.load %arg7[%c1_79, %c0_80, %c0_81] : memref<2x32x32xf32, #tpu.memory_space<vmem>>, vector<1x32x32xf32>
    %252 = vector.shape_cast %251 : vector<1x32x32xf32> to vector<32x32xf32>
    %c1_82 = arith.constant 1 : index
    %c0_83 = arith.constant 0 : index
    %c0_84 = arith.constant 0 : index
    %253 = vector.load %arg6[%c1_82, %c0_83, %c0_84] : memref<2x32x96xf32, #tpu.memory_space<vmem>>, vector<1x32x96xf32>
    %254 = vector.shape_cast %253 : vector<1x32x96xf32> to vector<32x96xf32>
    %cst_85 = arith.constant dense<0.000000e+00> : vector<32x96xf32>
    %255 = tpu.matmul %240, %254, %cst_85 {dimension_numbers = #tpu.dot_dimension_numbers<[1], [0], [0], [1], [0, 0, 1, 1], [], []>} : vector<32x32xf32>, vector<32x96xf32>, vector<32x96xf32> -> vector<32x96xf32>
    %256 = vector.broadcast %243 : vector<1x96xf32> to vector<32x96xf32>
    %257 = arith.addf %255, %256 : vector<32x96xf32>
    %258 = vector.shape_cast %257 : vector<32x96xf32> to vector<4x8x96xf32>
    %259 = vector.extract_strided_slice %258 {offsets = [0, 0, 0], sizes = [4, 8, 8], strides = [1, 1, 1]} : vector<4x8x96xf32> to vector<4x8x8xf32>
    %260 = vector.extract_strided_slice %258 {offsets = [0, 0, 32], sizes = [4, 8, 8], strides = [1, 1, 1]} : vector<4x8x96xf32> to vector<4x8x8xf32>
    %261 = vector.extract_strided_slice %258 {offsets = [0, 0, 64], sizes = [4, 8, 8], strides = [1, 1, 1]} : vector<4x8x96xf32> to vector<4x8x8xf32>
    "tpu.trace_start"() <{level = 10 : i32, message = "bqd,bkd->bqk"}> : () -> ()
    %cst_86 = arith.constant dense<0.000000e+00> : vector<4x8x8xf32>
    %262 = tpu.matmul %259, %260, %cst_86 {dimension_numbers = #tpu.dot_dimension_numbers<[2], [2], [1], [1], [0, 0, 0, 1, 1, 1], [0], [0]>} : vector<4x8x8xf32>, vector<4x8x8xf32>, vector<4x8x8xf32> -> vector<4x8x8xf32>
    "tpu.trace_stop"() : () -> ()
    %cst_87 = arith.constant 0.353553385 : f32
    %263 = vector.broadcast %cst_87 : f32 to vector<4x8x8xf32>
    %264 = arith.mulf %262, %263 : vector<4x8x8xf32>
    %265 = vector.broadcast %60 : vector<4x1x8xf32> to vector<4x8x8xf32>
    %266 = arith.addf %264, %265 : vector<4x8x8xf32>
    %cst_88 = arith.constant dense<0xFF800000> : vector<4x8xf32>
    %267 = vector.multi_reduction <maximumf>, %266, %cst_88 [2] : vector<4x8x8xf32> to vector<4x8xf32>
    %268 = vector.shape_cast %267 : vector<4x8xf32> to vector<4x8x1xf32>
    %269 = vector.broadcast %268 : vector<4x8x1xf32> to vector<4x8x8xf32>
    %270 = arith.subf %266, %269 : vector<4x8x8xf32>
    %271 = math.exp %270 : vector<4x8x8xf32>
    %cst_89 = arith.constant dense<0.000000e+00> : vector<4x8xf32>
    %272 = vector.multi_reduction <add>, %271, %cst_89 [2] : vector<4x8x8xf32> to vector<4x8xf32>
    %273 = vector.shape_cast %272 : vector<4x8xf32> to vector<4x8x1xf32>
    %274 = tpu.reciprocal %273 {approx = true} : vector<4x8x1xf32> -> vector<4x8x1xf32>
    %275 = vector.broadcast %274 : vector<4x8x1xf32> to vector<4x8x8xf32>
    %276 = arith.mulf %271, %275 : vector<4x8x8xf32>
    "tpu.trace_start"() <{level = 10 : i32, message = "bqk,bkd->bqd"}> : () -> ()
    %cst_90 = arith.constant dense<0.000000e+00> : vector<4x8x8xf32>
    %277 = tpu.matmul %276, %261, %cst_90 {dimension_numbers = #tpu.dot_dimension_numbers<[2], [1], [1], [2], [0, 0, 0, 1, 1, 2], [0], [0]>} : vector<4x8x8xf32>, vector<4x8x8xf32>, vector<4x8x8xf32> -> vector<4x8x8xf32>
    "tpu.trace_stop"() : () -> ()
    %278 = vector.shape_cast %277 : vector<4x8x8xf32> to vector<32x8xf32>
    %279 = vector.extract_strided_slice %252 {offsets = [0, 0], sizes = [8, 32], strides = [1, 1]} : vector<32x32xf32> to vector<8x32xf32>
    %cst_91 = arith.constant dense<0.000000e+00> : vector<32x32xf32>
    %280 = tpu.matmul %278, %279, %cst_91 {dimension_numbers = #tpu.dot_dimension_numbers<[1], [0], [0], [1], [0, 0, 1, 1], [], []>} : vector<32x8xf32>, vector<8x32xf32>, vector<32x32xf32> -> vector<32x32xf32>
    %281 = vector.extract_strided_slice %258 {offsets = [0, 0, 8], sizes = [4, 8, 8], strides = [1, 1, 1]} : vector<4x8x96xf32> to vector<4x8x8xf32>
    %282 = vector.extract_strided_slice %258 {offsets = [0, 0, 40], sizes = [4, 8, 8], strides = [1, 1, 1]} : vector<4x8x96xf32> to vector<4x8x8xf32>
    %283 = vector.extract_strided_slice %258 {offsets = [0, 0, 72], sizes = [4, 8, 8], strides = [1, 1, 1]} : vector<4x8x96xf32> to vector<4x8x8xf32>
    "tpu.trace_start"() <{level = 10 : i32, message = "bqd,bkd->bqk"}> : () -> ()
    %cst_92 = arith.constant dense<0.000000e+00> : vector<4x8x8xf32>
    %284 = tpu.matmul %281, %282, %cst_92 {dimension_numbers = #tpu.dot_dimension_numbers<[2], [2], [1], [1], [0, 0, 0, 1, 1, 1], [0], [0]>} : vector<4x8x8xf32>, vector<4x8x8xf32>, vector<4x8x8xf32> -> vector<4x8x8xf32>
    "tpu.trace_stop"() : () -> ()
    %cst_93 = arith.constant 0.353553385 : f32
    %285 = vector.broadcast %cst_93 : f32 to vector<4x8x8xf32>
    %286 = arith.mulf %284, %285 : vector<4x8x8xf32>
    %287 = vector.broadcast %60 : vector<4x1x8xf32> to vector<4x8x8xf32>
    %288 = arith.addf %286, %287 : vector<4x8x8xf32>
    %cst_94 = arith.constant dense<0xFF800000> : vector<4x8xf32>
    %289 = vector.multi_reduction <maximumf>, %288, %cst_94 [2] : vector<4x8x8xf32> to vector<4x8xf32>
    %290 = vector.shape_cast %289 : vector<4x8xf32> to vector<4x8x1xf32>
    %291 = vector.broadcast %290 : vector<4x8x1xf32> to vector<4x8x8xf32>
    %292 = arith.subf %288, %291 : vector<4x8x8xf32>
    %293 = math.exp %292 : vector<4x8x8xf32>
    %cst_95 = arith.constant dense<0.000000e+00> : vector<4x8xf32>
    %294 = vector.multi_reduction <add>, %293, %cst_95 [2] : vector<4x8x8xf32> to vector<4x8xf32>
    %295 = vector.shape_cast %294 : vector<4x8xf32> to vector<4x8x1xf32>
    %296 = tpu.reciprocal %295 {approx = true} : vector<4x8x1xf32> -> vector<4x8x1xf32>
    %297 = vector.broadcast %296 : vector<4x8x1xf32> to vector<4x8x8xf32>
    %298 = arith.mulf %293, %297 : vector<4x8x8xf32>
    "tpu.trace_start"() <{level = 10 : i32, message = "bqk,bkd->bqd"}> : () -> ()
    %cst_96 = arith.constant dense<0.000000e+00> : vector<4x8x8xf32>
    %299 = tpu.matmul %298, %283, %cst_96 {dimension_numbers = #tpu.dot_dimension_numbers<[2], [1], [1], [2], [0, 0, 0, 1, 1, 2], [0], [0]>} : vector<4x8x8xf32>, vector<4x8x8xf32>, vector<4x8x8xf32> -> vector<4x8x8xf32>
    "tpu.trace_stop"() : () -> ()
    %300 = vector.shape_cast %299 : vector<4x8x8xf32> to vector<32x8xf32>
    %301 = vector.extract_strided_slice %252 {offsets = [8, 0], sizes = [8, 32], strides = [1, 1]} : vector<32x32xf32> to vector<8x32xf32>
    %cst_97 = arith.constant dense<0.000000e+00> : vector<32x32xf32>
    %302 = tpu.matmul %300, %301, %cst_97 {dimension_numbers = #tpu.dot_dimension_numbers<[1], [0], [0], [1], [0, 0, 1, 1], [], []>} : vector<32x8xf32>, vector<8x32xf32>, vector<32x32xf32> -> vector<32x32xf32>
    %303 = arith.addf %280, %302 : vector<32x32xf32>
    %304 = vector.extract_strided_slice %258 {offsets = [0, 0, 16], sizes = [4, 8, 8], strides = [1, 1, 1]} : vector<4x8x96xf32> to vector<4x8x8xf32>
    %305 = vector.extract_strided_slice %258 {offsets = [0, 0, 48], sizes = [4, 8, 8], strides = [1, 1, 1]} : vector<4x8x96xf32> to vector<4x8x8xf32>
    %306 = vector.extract_strided_slice %258 {offsets = [0, 0, 80], sizes = [4, 8, 8], strides = [1, 1, 1]} : vector<4x8x96xf32> to vector<4x8x8xf32>
    "tpu.trace_start"() <{level = 10 : i32, message = "bqd,bkd->bqk"}> : () -> ()
    %cst_98 = arith.constant dense<0.000000e+00> : vector<4x8x8xf32>
    %307 = tpu.matmul %304, %305, %cst_98 {dimension_numbers = #tpu.dot_dimension_numbers<[2], [2], [1], [1], [0, 0, 0, 1, 1, 1], [0], [0]>} : vector<4x8x8xf32>, vector<4x8x8xf32>, vector<4x8x8xf32> -> vector<4x8x8xf32>
    "tpu.trace_stop"() : () -> ()
    %cst_99 = arith.constant 0.353553385 : f32
    %308 = vector.broadcast %cst_99 : f32 to vector<4x8x8xf32>
    %309 = arith.mulf %307, %308 : vector<4x8x8xf32>
    %310 = vector.broadcast %60 : vector<4x1x8xf32> to vector<4x8x8xf32>
    %311 = arith.addf %309, %310 : vector<4x8x8xf32>
    %cst_100 = arith.constant dense<0xFF800000> : vector<4x8xf32>
    %312 = vector.multi_reduction <maximumf>, %311, %cst_100 [2] : vector<4x8x8xf32> to vector<4x8xf32>
    %313 = vector.shape_cast %312 : vector<4x8xf32> to vector<4x8x1xf32>
    %314 = vector.broadcast %313 : vector<4x8x1xf32> to vector<4x8x8xf32>
    %315 = arith.subf %311, %314 : vector<4x8x8xf32>
    %316 = math.exp %315 : vector<4x8x8xf32>
    %cst_101 = arith.constant dense<0.000000e+00> : vector<4x8xf32>
    %317 = vector.multi_reduction <add>, %316, %cst_101 [2] : vector<4x8x8xf32> to vector<4x8xf32>
    %318 = vector.shape_cast %317 : vector<4x8xf32> to vector<4x8x1xf32>
    %319 = tpu.reciprocal %318 {approx = true} : vector<4x8x1xf32> -> vector<4x8x1xf32>
    %320 = vector.broadcast %319 : vector<4x8x1xf32> to vector<4x8x8xf32>
    %321 = arith.mulf %316, %320 : vector<4x8x8xf32>
    "tpu.trace_start"() <{level = 10 : i32, message = "bqk,bkd->bqd"}> : () -> ()
    %cst_102 = arith.constant dense<0.000000e+00> : vector<4x8x8xf32>
    %322 = tpu.matmul %321, %306, %cst_102 {dimension_numbers = #tpu.dot_dimension_numbers<[2], [1], [1], [2], [0, 0, 0, 1, 1, 2], [0], [0]>} : vector<4x8x8xf32>, vector<4x8x8xf32>, vector<4x8x8xf32> -> vector<4x8x8xf32>
    "tpu.trace_stop"() : () -> ()
    %323 = vector.shape_cast %322 : vector<4x8x8xf32> to vector<32x8xf32>
    %324 = vector.extract_strided_slice %252 {offsets = [16, 0], sizes = [8, 32], strides = [1, 1]} : vector<32x32xf32> to vector<8x32xf32>
    %cst_103 = arith.constant dense<0.000000e+00> : vector<32x32xf32>
    %325 = tpu.matmul %323, %324, %cst_103 {dimension_numbers = #tpu.dot_dimension_numbers<[1], [0], [0], [1], [0, 0, 1, 1], [], []>} : vector<32x8xf32>, vector<8x32xf32>, vector<32x32xf32> -> vector<32x32xf32>
    %326 = arith.addf %303, %325 : vector<32x32xf32>
    %327 = vector.extract_strided_slice %258 {offsets = [0, 0, 24], sizes = [4, 8, 8], strides = [1, 1, 1]} : vector<4x8x96xf32> to vector<4x8x8xf32>
    %328 = vector.extract_strided_slice %258 {offsets = [0, 0, 56], sizes = [4, 8, 8], strides = [1, 1, 1]} : vector<4x8x96xf32> to vector<4x8x8xf32>
    %329 = vector.extract_strided_slice %258 {offsets = [0, 0, 88], sizes = [4, 8, 8], strides = [1, 1, 1]} : vector<4x8x96xf32> to vector<4x8x8xf32>
    "tpu.trace_start"() <{level = 10 : i32, message = "bqd,bkd->bqk"}> : () -> ()
    %cst_104 = arith.constant dense<0.000000e+00> : vector<4x8x8xf32>
    %330 = tpu.matmul %327, %328, %cst_104 {dimension_numbers = #tpu.dot_dimension_numbers<[2], [2], [1], [1], [0, 0, 0, 1, 1, 1], [0], [0]>} : vector<4x8x8xf32>, vector<4x8x8xf32>, vector<4x8x8xf32> -> vector<4x8x8xf32>
    "tpu.trace_stop"() : () -> ()
    %cst_105 = arith.constant 0.353553385 : f32
    %331 = vector.broadcast %cst_105 : f32 to vector<4x8x8xf32>
    %332 = arith.mulf %330, %331 : vector<4x8x8xf32>
    %333 = vector.broadcast %60 : vector<4x1x8xf32> to vector<4x8x8xf32>
    %334 = arith.addf %332, %333 : vector<4x8x8xf32>
    %cst_106 = arith.constant dense<0xFF800000> : vector<4x8xf32>
    %335 = vector.multi_reduction <maximumf>, %334, %cst_106 [2] : vector<4x8x8xf32> to vector<4x8xf32>
    %336 = vector.shape_cast %335 : vector<4x8xf32> to vector<4x8x1xf32>
    %337 = vector.broadcast %336 : vector<4x8x1xf32> to vector<4x8x8xf32>
    %338 = arith.subf %334, %337 : vector<4x8x8xf32>
    %339 = math.exp %338 : vector<4x8x8xf32>
    %cst_107 = arith.constant dense<0.000000e+00> : vector<4x8xf32>
    %340 = vector.multi_reduction <add>, %339, %cst_107 [2] : vector<4x8x8xf32> to vector<4x8xf32>
    %341 = vector.shape_cast %340 : vector<4x8xf32> to vector<4x8x1xf32>
    %342 = tpu.reciprocal %341 {approx = true} : vector<4x8x1xf32> -> vector<4x8x1xf32>
    %343 = vector.broadcast %342 : vector<4x8x1xf32> to vector<4x8x8xf32>
    %344 = arith.mulf %339, %343 : vector<4x8x8xf32>
    "tpu.trace_start"() <{level = 10 : i32, message = "bqk,bkd->bqd"}> : () -> ()
    %cst_108 = arith.constant dense<0.000000e+00> : vector<4x8x8xf32>
    %345 = tpu.matmul %344, %329, %cst_108 {dimension_numbers = #tpu.dot_dimension_numbers<[2], [1], [1], [2], [0, 0, 0, 1, 1, 2], [0], [0]>} : vector<4x8x8xf32>, vector<4x8x8xf32>, vector<4x8x8xf32> -> vector<4x8x8xf32>
    "tpu.trace_stop"() : () -> ()
    %346 = vector.shape_cast %345 : vector<4x8x8xf32> to vector<32x8xf32>
    %347 = vector.extract_strided_slice %252 {offsets = [24, 0], sizes = [8, 32], strides = [1, 1]} : vector<32x32xf32> to vector<8x32xf32>
    %cst_109 = arith.constant dense<0.000000e+00> : vector<32x32xf32>
    %348 = tpu.matmul %346, %347, %cst_109 {dimension_numbers = #tpu.dot_dimension_numbers<[1], [0], [0], [1], [0, 0, 1, 1], [], []>} : vector<32x8xf32>, vector<8x32xf32>, vector<32x32xf32> -> vector<32x32xf32>
    %349 = arith.addf %326, %348 : vector<32x32xf32>
    %350 = vector.broadcast %244 : vector<1x32xf32> to vector<32x32xf32>
    %351 = arith.addf %349, %350 : vector<32x32xf32>
    %352 = arith.addf %240, %351 : vector<32x32xf32>
    %cst_110 = arith.constant dense<0.000000e+00> : vector<32xf32>
    %353 = vector.multi_reduction <add>, %352, %cst_110 [1] : vector<32x32xf32> to vector<32xf32>
    %354 = vector.shape_cast %353 : vector<32xf32> to vector<32x1xf32>
    %cst_111 = arith.constant 3.200000e+01 : f32
    %355 = vector.broadcast %cst_111 : f32 to vector<32x1xf32>
    %356 = arith.divf %354, %355 : vector<32x1xf32>
    %357 = vector.broadcast %356 : vector<32x1xf32> to vector<32x32xf32>
    %358 = arith.subf %352, %357 : vector<32x32xf32>
    %359 = arith.mulf %358, %358 : vector<32x32xf32>
    %cst_112 = arith.constant dense<0.000000e+00> : vector<32xf32>
    %360 = vector.multi_reduction <add>, %359, %cst_112 [1] : vector<32x32xf32> to vector<32xf32>
    %361 = vector.shape_cast %360 : vector<32xf32> to vector<32x1xf32>
    %cst_113 = arith.constant 3.200000e+01 : f32
    %362 = vector.broadcast %cst_113 : f32 to vector<32x1xf32>
    %363 = arith.divf %361, %362 : vector<32x1xf32>
    %364 = vector.broadcast %356 : vector<32x1xf32> to vector<32x32xf32>
    %365 = arith.subf %352, %364 : vector<32x32xf32>
    %cst_114 = arith.constant 9.99999996E-13 : f32
    %366 = vector.broadcast %cst_114 : f32 to vector<32x1xf32>
    %367 = arith.addf %363, %366 : vector<32x1xf32>
    %368 = math.rsqrt %367 : vector<32x1xf32>
    %369 = vector.broadcast %368 : vector<32x1xf32> to vector<32x32xf32>
    %370 = arith.mulf %365, %369 : vector<32x32xf32>
    %371 = vector.broadcast %245 : vector<1x32xf32> to vector<32x32xf32>
    %372 = arith.mulf %370, %371 : vector<32x32xf32>
    %373 = vector.broadcast %246 : vector<1x32xf32> to vector<32x32xf32>
    %374 = arith.addf %372, %373 : vector<32x32xf32>
    %c1_115 = arith.constant 1 : index
    %c0_116 = arith.constant 0 : index
    %c0_117 = arith.constant 0 : index
    %375 = vector.load %arg8[%c1_115, %c0_116, %c0_117] : memref<2x32x64xf32, #tpu.memory_space<vmem>>, vector<1x32x64xf32>
    %376 = vector.shape_cast %375 : vector<1x32x64xf32> to vector<32x64xf32>
    %cst_118 = arith.constant dense<0.000000e+00> : vector<32x64xf32>
    %377 = tpu.matmul %374, %376, %cst_118 {dimension_numbers = #tpu.dot_dimension_numbers<[1], [0], [0], [1], [0, 0, 1, 1], [], []>} : vector<32x32xf32>, vector<32x64xf32>, vector<32x64xf32> -> vector<32x64xf32>
    %378 = vector.broadcast %247 : vector<1x64xf32> to vector<32x64xf32>
    %379 = arith.addf %377, %378 : vector<32x64xf32>
    %cst_119 = arith.constant 5.000000e-01 : f32
    %380 = vector.broadcast %cst_119 : f32 to vector<32x64xf32>
    %381 = arith.mulf %380, %379 : vector<32x64xf32>
    %cst_120 = arith.constant 4.471500e-02 : f32
    %382 = vector.broadcast %cst_120 : f32 to vector<32x64xf32>
    %383 = arith.mulf %382, %379 : vector<32x64xf32>
    %384 = arith.mulf %383, %379 : vector<32x64xf32>
    %385 = arith.mulf %384, %379 : vector<32x64xf32>
    %386 = arith.addf %379, %385 : vector<32x64xf32>
    %cst_121 = arith.constant 0.797884583 : f32
    %387 = vector.broadcast %cst_121 : f32 to vector<32x64xf32>
    %388 = arith.mulf %387, %386 : vector<32x64xf32>
    %389 = math.tanh %388 : vector<32x64xf32>
    %cst_122 = arith.constant 1.000000e+00 : f32
    %390 = vector.broadcast %cst_122 : f32 to vector<32x64xf32>
    %391 = arith.addf %390, %389 : vector<32x64xf32>
    %392 = arith.mulf %381, %391 : vector<32x64xf32>
    %c1_123 = arith.constant 1 : index
    %c0_124 = arith.constant 0 : index
    %c0_125 = arith.constant 0 : index
    %393 = vector.load %arg9[%c1_123, %c0_124, %c0_125] : memref<2x64x32xf32, #tpu.memory_space<vmem>>, vector<1x64x32xf32>
    %394 = vector.shape_cast %393 : vector<1x64x32xf32> to vector<64x32xf32>
    %cst_126 = arith.constant dense<0.000000e+00> : vector<32x32xf32>
    %395 = tpu.matmul %392, %394, %cst_126 {dimension_numbers = #tpu.dot_dimension_numbers<[1], [0], [0], [1], [0, 0, 1, 1], [], []>} : vector<32x64xf32>, vector<64x32xf32>, vector<32x32xf32> -> vector<32x32xf32>
    %396 = vector.broadcast %248 : vector<1x32xf32> to vector<32x32xf32>
    %397 = arith.addf %395, %396 : vector<32x32xf32>
    %398 = arith.addf %374, %397 : vector<32x32xf32>
    %cst_127 = arith.constant dense<0.000000e+00> : vector<32xf32>
    %399 = vector.multi_reduction <add>, %398, %cst_127 [1] : vector<32x32xf32> to vector<32xf32>
    %400 = vector.shape_cast %399 : vector<32xf32> to vector<32x1xf32>
    %cst_128 = arith.constant 3.200000e+01 : f32
    %401 = vector.broadcast %cst_128 : f32 to vector<32x1xf32>
    %402 = arith.divf %400, %401 : vector<32x1xf32>
    %403 = vector.broadcast %402 : vector<32x1xf32> to vector<32x32xf32>
    %404 = arith.subf %398, %403 : vector<32x32xf32>
    %405 = arith.mulf %404, %404 : vector<32x32xf32>
    %cst_129 = arith.constant dense<0.000000e+00> : vector<32xf32>
    %406 = vector.multi_reduction <add>, %405, %cst_129 [1] : vector<32x32xf32> to vector<32xf32>
    %407 = vector.shape_cast %406 : vector<32xf32> to vector<32x1xf32>
    %cst_130 = arith.constant 3.200000e+01 : f32
    %408 = vector.broadcast %cst_130 : f32 to vector<32x1xf32>
    %409 = arith.divf %407, %408 : vector<32x1xf32>
    %410 = vector.broadcast %402 : vector<32x1xf32> to vector<32x32xf32>
    %411 = arith.subf %398, %410 : vector<32x32xf32>
    %cst_131 = arith.constant 9.99999996E-13 : f32
    %412 = vector.broadcast %cst_131 : f32 to vector<32x1xf32>
    %413 = arith.addf %409, %412 : vector<32x1xf32>
    %414 = math.rsqrt %413 : vector<32x1xf32>
    %415 = vector.broadcast %414 : vector<32x1xf32> to vector<32x32xf32>
    %416 = arith.mulf %411, %415 : vector<32x32xf32>
    %417 = vector.broadcast %249 : vector<1x32xf32> to vector<32x32xf32>
    %418 = arith.mulf %416, %417 : vector<32x32xf32>
    %419 = vector.broadcast %250 : vector<1x32xf32> to vector<32x32xf32>
    %420 = arith.addf %418, %419 : vector<32x32xf32>
    %c0_132 = arith.constant 0 : index
    %c0_133 = arith.constant 0 : index
    %c0_134 = arith.constant 0 : index
    %421 = vector.load %arg3[%c0_132, %c0_133, %c0_134] : memref<2x16x1xf32, #tpu.memory_space<vmem>>, vector<2x16x1xf32>
    %422 = vector.shape_cast %421 : vector<2x16x1xf32> to vector<4x8x1xf32>
    %423 = vector.shape_cast %420 : vector<32x32xf32> to vector<4x8x32xf32>
    %424 = vector.broadcast %422 : vector<4x8x1xf32> to vector<4x8x32xf32>
    %425 = arith.mulf %423, %424 : vector<4x8x32xf32>
    %cst_135 = arith.constant dense<0.000000e+00> : vector<4x32xf32>
    %426 = vector.multi_reduction <add>, %425, %cst_135 [1] : vector<4x8x32xf32> to vector<4x32xf32>
    %cst_136 = arith.constant dense<0.000000e+00> : vector<4x1xf32>
    %427 = vector.multi_reduction <add>, %422, %cst_136 [1] : vector<4x8x1xf32> to vector<4x1xf32>
    %cst_137 = arith.constant 1.000000e+00 : f32
    %428 = vector.broadcast %cst_137 : f32 to vector<4x1xf32>
    %429 = arith.maximumf %427, %428 : vector<4x1xf32>
    %430 = vector.broadcast %429 : vector<4x1xf32> to vector<4x32xf32>
    %431 = arith.divf %426, %430 : vector<4x32xf32>
    %432 = vector.shape_cast %431 : vector<4x32xf32> to vector<2x2x32xf32>
    %433 = vector.extract_strided_slice %432 {offsets = [0, 0, 0], sizes = [2, 1, 32], strides = [1, 1, 1]} : vector<2x2x32xf32> to vector<2x1x32xf32>
    %434 = vector.shape_cast %433 : vector<2x1x32xf32> to vector<2x32xf32>
    %435 = vector.extract_strided_slice %432 {offsets = [0, 1, 0], sizes = [2, 1, 32], strides = [1, 1, 1]} : vector<2x2x32xf32> to vector<2x1x32xf32>
    %436 = vector.shape_cast %435 : vector<2x1x32xf32> to vector<2x32xf32>
    %c76 = arith.constant 76 : index
    %c0_138 = arith.constant 0 : index
    %437 = vector.load %arg5[%c76, %c0_138] : memref<80x32xf32, #tpu.memory_space<vmem>>, vector<1x32xf32>
    %c77 = arith.constant 77 : index
    %c0_139 = arith.constant 0 : index
    %438 = vector.load %arg5[%c77, %c0_139] : memref<80x32xf32, #tpu.memory_space<vmem>>, vector<1x32xf32>
    %c78 = arith.constant 78 : index
    %c0_140 = arith.constant 0 : index
    %439 = vector.load %arg5[%c78, %c0_140] : memref<80x32xf32, #tpu.memory_space<vmem>>, vector<1x32xf32>
    %c79 = arith.constant 79 : index
    %c0_141 = arith.constant 0 : index
    %440 = vector.load %arg5[%c79, %c0_141] : memref<80x32xf32, #tpu.memory_space<vmem>>, vector<1x1xf32>
    %441 = vector.broadcast %437 : vector<1x32xf32> to vector<2x32xf32>
    %442 = arith.mulf %434, %441 : vector<2x32xf32>
    %443 = vector.broadcast %438 : vector<1x32xf32> to vector<2x32xf32>
    %444 = arith.mulf %436, %443 : vector<2x32xf32>
    %445 = arith.addf %442, %444 : vector<2x32xf32>
    %446 = arith.subf %434, %436 : vector<2x32xf32>
    %447 = math.absf %446 : vector<2x32xf32>
    %448 = vector.broadcast %439 : vector<1x32xf32> to vector<2x32xf32>
    %449 = arith.mulf %447, %448 : vector<2x32xf32>
    %450 = arith.addf %445, %449 : vector<2x32xf32>
    %cst_142 = arith.constant dense<0.000000e+00> : vector<2xf32>
    %451 = vector.multi_reduction <add>, %450, %cst_142 [1] : vector<2x32xf32> to vector<2xf32>
    %452 = vector.shape_cast %451 : vector<2xf32> to vector<2x1xf32>
    %453 = vector.broadcast %440 : vector<1x1xf32> to vector<2x1xf32>
    %454 = arith.addf %452, %453 : vector<2x1xf32>
    %455 = vector.shape_cast %454 : vector<2x1xf32> to vector<2x1x1xf32>
    %c0_143 = arith.constant 0 : index
    %c0_144 = arith.constant 0 : index
    %c0_145 = arith.constant 0 : index
    %456 = vector.load %arg11[%c0_143, %c0_144, %c0_145] : memref<2x1x1xf32, #tpu.memory_space<vmem>>, vector<2x1x1xf32>
    tpu.vector_store %arg11[%c0_143, %c0_144, %c0_145], %455 {strides = array<i32>} : memref<2x1x1xf32, #tpu.memory_space<vmem>>, vector<2x1x1xf32>,
    return
  }
  func.func @transform_0(%arg0: i32) -> (i32, i32, i32) {
    %c0_i32 = arith.constant 0 : i32
    %c0_i32_0 = arith.constant 0 : i32
    %c0_i32_1 = arith.constant 0 : i32
    return %arg0, %c0_i32, %c0_i32_0 : i32, i32, i32
  }
  func.func @transform_1(%arg0: i32) -> (i32, i32, i32) {
    %c0_i32 = arith.constant 0 : i32
    %c0_i32_0 = arith.constant 0 : i32
    %c0_i32_1 = arith.constant 0 : i32
    return %arg0, %c0_i32, %c0_i32_0 : i32, i32, i32
  }
  func.func @transform_2(%arg0: i32) -> (i32, i32, i32) {
    %c0_i32 = arith.constant 0 : i32
    %c0_i32_0 = arith.constant 0 : i32
    %c0_i32_1 = arith.constant 0 : i32
    return %arg0, %c0_i32, %c0_i32_0 : i32, i32, i32
  }
  func.func @transform_3(%arg0: i32) -> (i32, i32, i32) {
    %c0_i32 = arith.constant 0 : i32
    %c0_i32_0 = arith.constant 0 : i32
    %c0_i32_1 = arith.constant 0 : i32
    return %arg0, %c0_i32, %c0_i32_0 : i32, i32, i32
  }
  func.func @transform_4(%arg0: i32) -> (i32, i32) {
    %c0_i32 = arith.constant 0 : i32
    %c0_i32_0 = arith.constant 0 : i32
    %c0_i32_1 = arith.constant 0 : i32
    return %c0_i32, %c0_i32_0 : i32, i32
  }
  func.func @transform_5(%arg0: i32) -> (i32, i32, i32) {
    %c0_i32 = arith.constant 0 : i32
    %c0_i32_0 = arith.constant 0 : i32
    %c0_i32_1 = arith.constant 0 : i32
    %c0_i32_2 = arith.constant 0 : i32
    return %c0_i32, %c0_i32_0, %c0_i32_1 : i32, i32, i32
  }
  func.func @transform_6(%arg0: i32) -> (i32, i32, i32) {
    %c0_i32 = arith.constant 0 : i32
    %c0_i32_0 = arith.constant 0 : i32
    %c0_i32_1 = arith.constant 0 : i32
    %c0_i32_2 = arith.constant 0 : i32
    return %c0_i32, %c0_i32_0, %c0_i32_1 : i32, i32, i32
  }
  func.func @transform_7(%arg0: i32) -> (i32, i32, i32) {
    %c0_i32 = arith.constant 0 : i32
    %c0_i32_0 = arith.constant 0 : i32
    %c0_i32_1 = arith.constant 0 : i32
    %c0_i32_2 = arith.constant 0 : i32
    return %c0_i32, %c0_i32_0, %c0_i32_1 : i32, i32, i32
  }
  func.func @transform_8(%arg0: i32) -> (i32, i32, i32) {
    %c0_i32 = arith.constant 0 : i32
    %c0_i32_0 = arith.constant 0 : i32
    %c0_i32_1 = arith.constant 0 : i32
    %c0_i32_2 = arith.constant 0 : i32
    return %c0_i32, %c0_i32_0, %c0_i32_1 : i32, i32, i32
  }
  func.func @transform_9(%arg0: i32) -> (i32, i32, i32) {
    %c0_i32 = arith.constant 0 : i32
    %c0_i32_0 = arith.constant 0 : i32
    %c0_i32_1 = arith.constant 0 : i32
    %c0_i32_2 = arith.constant 0 : i32
    return %c0_i32, %c0_i32_0, %c0_i32_1 : i32, i32, i32
  }
  func.func @transform_10(%arg0: i32) -> (i32, i32, i32) {
    %c0_i32 = arith.constant 0 : i32
    %c0_i32_0 = arith.constant 0 : i32
    %c0_i32_1 = arith.constant 0 : i32
    return %arg0, %c0_i32, %c0_i32_0 : i32, i32, i32
  }
}

</mosaic_0001>

<bundles_post_ra>
// kernel: sentence_bert_forward.1
= control target key start
LH: loop header
LB: loop body
LE: loop exit
PB: predicated region body
PF: predicated region fallthrough
CT: control target
= control target key end

     0   :  { %v8943_v0 = vmov 0   ;;  %v53_v25 = vlaneseq  ;;  %vm115_vm4 = vcmask 523264   ;;  %v8944_v29 = vmov 0.0   ;;  %s8949_s24 = smov 88   ;;  %s8950_s25 = smov 120   ;;  %s10159_s0 = inlined_call_operand.vmem [shape: s32[2,16,1], index: 0, kind: input, shape index: {}]   ;;  %s10160_s1 = inlined_call_operand.vmem [shape: s32[2,16,1], index: 1, kind: input, shape index: {}]   ;;  %s10161_s4 = inlined_call_operand.vmem [shape: f32[80,32], index: 4, kind: input, shape index: {}]   ;;  %s10162_s5 = inlined_call_operand.vmem [shape: f32[2,32,96], index: 5, kind: input, shape index: {}]   ;;  %s10163_s9 = inlined_call_operand.vmem [shape: f32[2,8,96], index: 9, kind: input, shape index: {}]   ;;  %s10164_s3 = inlined_call_operand.vmem [shape: f32[2,2,8], index: 3, kind: input, shape index: {}]   ;;  %s10165_s6 = inlined_call_operand.vmem [shape: f32[2,32,32], index: 6, kind: input, shape index: {}]   ;;  %s10166_s7 = inlined_call_operand.vmem [shape: f32[2,32,64], index: 7, kind: input, shape index: {}]   ;;  %s10167_s8 = inlined_call_operand.vmem [shape: f32[2,64,32], index: 8, kind: input, shape index: {}]   ;;  %s10168_s2 = inlined_call_operand.vmem [shape: f32[2,16,1], index: 2, kind: input, shape index: {}]   ;;  %s10169_s10 = inlined_call_operand.vmem [shape: f32[2,1,1], index: 10, kind: output, shape index: {}]  }
   0x1   :  { %8748 = vset.pattern.permute.xlu1 %v8943_v0  ;;  %8747 = vset.pattern.permute.xlu0 %v8943_v0  ;;  %v37_v1 = vld [vmem:[%s10159_s0 + $0x10] sm:$0xff]  ;;  %v35_v2 = vld [vmem:[%s10159_s0] sm:$0xff]  ;;  %v40_v3 = vld [vmem:[%s10160_s1 + $0x8] sm:$0xff]  ;;  %vm219_vm13 = vcmask 261120   ;;  %vm8945_vm14 = vmmov 0   ;;  %vm432_vm15 = vcmask 64512  }
   0x2   :  { %62 = vperm.xlu1 %8748, %v37_v1   ;;  %56 = vperm.xlu0 %8747, %v35_v2   ;;  %v39_v4 = vld [vmem:[%s10160_s1] sm:$0xff]  ;;  %v38_v5 = vld [vmem:[%s10159_s0 + $0x18] sm:$0xff]  ;;  %v36_v6 = vld [vmem:[%s10159_s0 + $0x8] sm:$0xff]  ;;  %vm80_vm0 = vcmp.eq.s32.totalorder %v40_v3, 0  ;;  %v54_v26 = vand.u32 127, %v53_v25  ;;  %v9069_v36 = vshrl.u32 %v53_v25, 7 }
   0x3   :  { %v43_v7 = vld [vmem:[%s10161_s4] sm:$0xff]  ;;  %vm79_vm1 = vcmp.eq.s32.totalorder %v39_v4, 0  ;;  %v44_v8 = vld [vmem:[%s10161_s4 + $0x8] sm:$0xff]  ;;  %v45_v9 = vld [vmem:[%s10161_s4 + $0x10] sm:$0xff]  ;;  %v84_v17 = vsel %vm80_vm0, 1, %v8943_v0  ;;  %s8951_s26 = smov 56  }
   0x4   :  { %v42_v10 = vld [vmem:[%s10160_s1 + $0x18] sm:$0xff]  ;;  %v41_v11 = vld [vmem:[%s10160_s1 + $0x10] sm:$0xff]  ;;  %v8624_v12 = vpack.c.bf16 %v44_v8, %v43_v7  ;;  %v47_v15 = vld [vmem:[%s10161_s4 + $0x20] sm:$0xff]  ;;  %v83_v18 = vsel %vm79_vm1, 1, %v8943_v0  ;;  %v9072_v37 = vsub.s32 0, %v9069_v36  ;;  %v9075_v38 = vsub.s32 1, %v9069_v36 }
   0x5   :  { %v46_v13 = vld [vmem:[%s10161_s4 + $0x18] sm:$0xff]  ;;  %v48_v16 = vld [vmem:[%s10161_s4 + $0x28] sm:$0xff]  ;;  %vm82_vm2 = vcmp.eq.s32.totalorder %v42_v10, 0  ;;  %vm81_vm3 = vcmp.eq.s32.totalorder %v41_v11, 0  ;;  %v49_v20 = vld [vmem:[%s10161_s4 + $0x30] sm:$0xff]  ;;  %s8946_s1 = smov 96  }
   0x6   :  { %65 = vperm.xlu1 %8748, %v38_v5   ;;  %59 = vperm.xlu0 %8747, %v36_v6   ;;  %v8628_v14 = vpack.c.bf16 %v46_v13, %v45_v9  ;;  %v8632_v19 = vpack.c.bf16 %v48_v16, %v47_v15  ;;  %v50_v21 = vld [vmem:[%s10161_s4 + $0x38] sm:$0xff]  ;;  %v86_v22 = vsel %vm82_vm2, 1, %v8943_v0  ;;  %v85_v23 = vsel %vm81_vm3, 1, %v8943_v0  ;;  %v52_v41 = vld [vmem:[%s10161_s4 + $0x48] sm:$0x3]  ;;  %v51_v48 = vld [vmem:[%s10161_s4 + $0x40] sm:$0xff] }
   0x7   :  { %8625 = vmatprep.subr.bf16.mxu0 %v8624_v12  ;;  %v8636_v24 = vpack.c.bf16 %v50_v21, %v49_v20  ;;  %v106_v42 = vrot.slane %v52_v41, %v9072_v37  ;;  %v110_v43 = vrot.slane %v52_v41, %v9075_v38  ;;  %s8952_s27 = smov 80   ;;  %s8953_s28 = smov 112   ;;  %vm7557_vm0 = vcmask 7168  }
   0x8   :  { %8627 = vmatpush3.bf16.msra.mxu0 %v8624_v12  ;;  %s8954_s29 = smov 48   ;;  %s8955_s0 = smov 104   ;;  %vm7651_vm1 = vcmask 1041409   ;;  %vm7654_vm2 = vcmask 254976   ;;  %vm7688_vm3 = vcmask 0  }
   0x9   :  { %8629 = vmatprep.subr.bf16.mxu0 %v8628_v14  ;;  %s8956_s14 = smov 72   ;;  %s8957_s17 = smov 40  }
   0xa   :  { %91 = vperm.xlu1 %8748, %v84_v17   ;;  %88 = vperm.xlu0 %8747, %v83_v18  }
   0xc   :  { %8631 = vmatpush3.bf16.msra.mxu0 %v8628_v14 }
   0xd   :  { %8633 = vmatprep.subr.bf16.mxu0 %v8632_v19 }
   0xe   :  { %97 = vperm.xlu1 %8748, %v86_v22   ;;  %94 = vperm.xlu0 %8747, %v85_v23   ;;  %v324_v23 = vld [vmem:[%s10162_s5] sm:$0xff] }
  0x10   :  { %8635 = vmatpush3.bf16.msra.mxu0 %v8632_v19 }
  0x11   :  { %8637 = vmatprep.subr.bf16.mxu0 %v8636_v24 }
  0x14   :  { %8639 = vmatpush3.bf16.msra.mxu0 %v8636_v24  ;;  %v325_v24 = vld [vmem:[%s10162_s5 + $0x8] sm:$0xff] }
  0x15   :  { %v8640_v25 = vpack.c.bf16 %v325_v24, %v324_v23 }
  0x17   :  { %8641 = vmatprep.subr.bf16.mxu0 %v8640_v25  ;;  %8704 = vmatprep.subr.bf16.mxu1 %v8640_v25 }
  0x18   :  { %8706 = vmatpush3.bf16.msra.mxu1 %v8640_v25 }
  0x81   :  { %v63_v27 = vpop.permute.xlu1 %62  ;;  %v57_v28 = vpop.permute.xlu0 %56 }
  0x82   :  { %vm67_vm5 = vcmp.eq.s32.totalorder %v57_v28, %v54_v26  ;;  %vm69_vm6 = vcmp.eq.s32.totalorder %v63_v27, %v54_v26  ;;  %v327_v27 = vld [vmem:[%s10162_s5 + $0x18] sm:$0xff] }
  0x83   :  { %v7695_v30 = vsel %vm67_vm5, 1.0, %v8944_v29  ;;  %v7697_v33 = vsel %vm69_vm6, 1.0, %v8944_v29 }
  0x84   :  { %8134 = vmatprep.mubr.msk.f32.mxu0 %vm115_vm4, %v7695_v30 }
  0x85   :  { %v66_v31 = vpop.permute.xlu1 %65  ;;  %v60_v32 = vpop.permute.xlu0 %59 }
  0x86   :  { %vm70_vm7 = vcmp.eq.s32.totalorder %v66_v31, %v54_v26  ;;  %vm68_vm8 = vcmp.eq.s32.totalorder %v60_v32, %v54_v26  ;;  %v326_v26 = vld [vmem:[%s10162_s5 + $0x10] sm:$0xff] }
  0x87   :  { %v7696_v34 = vsel %vm68_vm8, 1.0, %v8944_v29  ;;  %v7698_v35 = vsel %vm70_vm7, 1.0, %v8944_v29  ;;  %v8644_v28 = vpack.c.bf16 %v327_v27, %v326_v26 }
  0x88   :  { %8135 = vmatmul.mubr.msk.f32.vlgmr.msra.gmra.mrb[0].mxu0 %vm115_vm4, %v7696_v34 }
  0x89   :  { %8137 = vmatprep.mubr.msk.f32.mxu0 %vm115_vm4, %v7697_v33  ;;  %v92_v39 = vpop.permute.xlu1 %91  ;;  %v89_v40 = vpop.permute.xlu0 %88  ;;  %8643 = vmatpush3.bf16.msra.mxu0 %v8640_v25 }
  0x8a   :  { %vm100_vm9 = vcmp.eq.s32.totalorder %v92_v39, 1  ;;  %vm99_vm10 = vcmp.eq.s32.totalorder %v89_v40, 1  ;;  %8645 = vmatprep.subr.bf16.mxu0 %v8644_v28  ;;  %8705 = vmatprep.subr.bf16.mxu1 %v8644_v28 }
  0x8b   :  { %v112_v46 = vsel %vm100_vm9, %v106_v42, %v110_v43  ;;  %v111_v50 = vsel %vm99_vm10, %v106_v42, %v110_v43  ;;  %8707 = vmatpush3.bf16.msra.mxu1 %v8644_v28 }
  0x8c   :  { %8138 = vmatmul.mubr.msk.f32.gmra.mrb[2].mxu0 %vm115_vm4, %v7698_v35  ;;  %8154 = vmatprep.subr.mxu1 %v8944_v29 }
  0x8d   :  { %v98_v44 = vpop.permute.xlu1 %97  ;;  %v95_v45 = vpop.permute.xlu0 %94  ;;  %8647 = vmatpush3.bf16.msra.mxu0 %v8644_v28 }
  0x8e   :  { %vm102_vm11 = vcmp.eq.s32.totalorder %v98_v44, 1  ;;  %vm101_vm12 = vcmp.eq.s32.totalorder %v95_v45, 1  ;;  %8164 = vmatprep.subr.mxu0 %v8944_v29 }
  0x8f   :  { %v114_v56 = vsel %vm102_vm11, %v106_v42, %v110_v43  ;;  %v113_v57 = vsel %vm101_vm12, %v106_v42, %v110_v43 }
 0x15b   :  { %v8136_v47 = vpop.f32.mrb[0].mxu0 }
 0x15c   :  { %v200_v49 = vadd.f32 %v8136_v47, %v112_v46  ;;  %v194_v51 = vpop.f32.mrb[1].mxu0  ;;  %v7703_v46 = vld [vmem:[%s10161_s4 + $0x4a] ss:$0 sm:$0xff] }
 0x15d   :  { %v195_v52 = vadd.f32 %v194_v51, %v111_v50  ;;  %v7704_v50 = vld [vmem:[%s10161_s4 + $0x4b] ss:$0 sm:$0xff] }
 0x15e   :  { %v214_v53 = vadd.f32 %v200_v49, %v51_v48 }
 0x15f   :  { %v8139_v54 = vpop.f32.mrb[2].mxu0  ;;  %v213_v55 = vadd.f32 %v195_v52, %v51_v48 }
 0x160   :  { %v204_v58 = vpop.f32.mrb[3].mxu0  ;;  %v223_v59 = vsel %vm219_vm13, %v214_v53, 0.0  ;;  %v210_v60 = vadd.f32 %v8139_v54, %v114_v56 }
 0x161   :  { %v205_v61 = vadd.f32 %v204_v58, %v113_v57  ;;  %224 = vadd.xlane.f32.xlu1 %v223_v59  ;;  %v220_v62 = vsel %vm219_vm13, %v213_v55, 0.0 }
 0x162   :  { %221 = vadd.xlane.f32.xlu0 %v220_v62  ;;  %v216_v1 = vadd.f32 %v210_v60, %v51_v48 }
 0x163   :  { %v215_v63 = vadd.f32 %v205_v61, %v51_v48 }
 0x164   :  { %v229_v2 = vsel %vm219_vm13, %v216_v1, 0.0 }
 0x165   :  { %v226_v0 = vsel %vm219_vm13, %v215_v63, 0.0 }
 0x166   :  { %227 = vadd.xlane.f32.xlu0 %v226_v0 }
 0x16a   :  { %230 = vadd.xlane.f32.xlu0 %v229_v2 }
 0x1ee   :  { %v225_v3 = vpop.xlane.xlu1 %224 }
 0x1ef   :  { %v234_v4 = vmul.f32 0.03125, %v225_v3  ;;  %v222_v5 = vpop.xlane.xlu0 %221 }
 0x1f0   :  { %v233_v6 = vmul.f32 0.03125, %v222_v5 }
 0x1f1   :  { %v238_v7 = vsub.f32 %v214_v53, %v234_v4 }
 0x1f2   :  { %v237_v8 = vsub.f32 %v213_v55, %v233_v6 }
 0x1f3   :  { %v228_v9 = vpop.xlane.xlu0 %227  ;;  %v242_v10 = vmul.f32 %v238_v7, %v238_v7 }
 0x1f4   :  { %v235_v11 = vmul.f32 0.03125, %v228_v9  ;;  %v241_v12 = vmul.f32 %v237_v8, %v237_v8 }
 0x1f5   :  { %v248_v13 = vsel %vm219_vm13, %v242_v10, 0.0 }
 0x1f6   :  { %v239_v14 = vsub.f32 %v215_v63, %v235_v11  ;;  %249 = vadd.xlane.f32.xlu0 %v248_v13  ;;  %v245_v15 = vsel %vm219_vm13, %v241_v12, 0.0  ;;  %v319_v63 = vld [vmem:[%s10163_s9] sm:$0xff]  ;;  %v8947_v13 = vmov 1966171168  }
 0x1f7   :  { %246 = vadd.xlane.f32.xlu1 %v245_v15  ;;  %v231_v16 = vpop.xlane.xlu0 %230  ;;  %v331_v0 = vrot.slane %v319_v63, %v9072_v37 }
 0x1f8   :  { %v236_v17 = vmul.f32 0.03125, %v231_v16  ;;  %v243_v18 = vmul.f32 %v239_v14, %v239_v14  ;;  %v289_v16 = vld [vmem:[%s10164_s3] sm:$0x3] }
 0x1fa   :  { %v240_v19 = vsub.f32 %v216_v1, %v236_v17  ;;  %v251_v20 = vsel %vm219_vm13, %v243_v18, 0.0  ;;  %v290_v17 = vld [vmem:[%s10164_s3 + $0x2] sm:$0x3]  ;;  %v291_v18 = vsub.f32 1.0, %v289_v16  ;;  %s8948_s3 = smov 64  }
 0x1fb   :  { %252 = vadd.xlane.f32.xlu1 %v251_v20  ;;  %v292_v20 = vsub.f32 1.0, %v290_v17 }
 0x1fc   :  { %v244_v21 = vmul.f32 %v240_v19, %v240_v19 }
 0x1fe   :  { %v254_v22 = vsel %vm219_vm13, %v244_v21, 0.0 }
 0x1ff   :  { %255 = vadd.xlane.f32.xlu0 %v254_v22 }
 0x283   :  { %v250_v30 = vpop.xlane.xlu0 %249 }
 0x284   :  { %v258_v31 = vmul.f32 0.03125, %v250_v30  ;;  %v247_v32 = vpop.xlane.xlu1 %246 }
 0x285   :  { %v257_v33 = vmul.f32 0.03125, %v247_v32 }
 0x286   :  { %v262_v34 = vadd.f32 1e-12, %v258_v31 }
 0x287   :  { %v261_v35 = vadd.f32 1e-12, %v257_v33 }
 0x288   :  { %8749 = vrsqrt.f32 %v262_v34  ;;  %v253_v39 = vpop.xlane.xlu1 %252 }
 0x289   :  { %8751 = vrsqrt.f32 %v261_v35  ;;  %v259_v40 = vmul.f32 0.03125, %v253_v39 }
 0x28b   :  { %v263_v41 = vadd.f32 1e-12, %v259_v40 }
 0x28c   :  { %v256_v42 = vpop.xlane.xlu0 %255 }
 0x28d   :  { %8753 = vrsqrt.f32 %v263_v41  ;;  %v260_v43 = vmul.f32 0.03125, %v256_v42 }
 0x28f   :  { %v264_v44 = vadd.f32 1e-12, %v260_v43 }
 0x291   :  { %8755 = vrsqrt.f32 %v264_v44 }
 0x292   :  { %v8750_v45 = vpop.eup %8749 }
 0x293   :  { %v8752_v47 = vpop.eup %8751  ;;  %v270_v48 = vmul.f32 %v8750_v45, %v238_v7 }
 0x294   :  { %v269_v49 = vmul.f32 %v8752_v47, %v237_v8 }
 0x295   :  { %v278_v51 = vmul.f32 %v7703_v46, %v270_v48 }
 0x296   :  { %v277_v52 = vmul.f32 %v7703_v46, %v269_v49 }
 0x297   :  { %v8754_v53 = vpop.eup %8753  ;;  %v9115_v56 = vadd.f32 %v7704_v50, %v278_v51 }
 0x298   :  { %v9113_v54 = vadd.f32 %v7704_v50, %v277_v52  ;;  %v271_v55 = vmul.f32 %v8754_v53, %v239_v14  ;;  %v296_v14 = vunpack.c.l.s4 %v8947_v13 }
 0x29a   :  { %8148 = vmatprep.mubr.msk.f32.mxu0 %vm219_vm13, %v9113_v54  ;;  %v279_v57 = vmul.f32 %v7703_v46, %v271_v55  ;;  %v297_v15 = vunpack.c.0.s8 %v296_v14 }
 0x29b   :  { %v8756_v58 = vpop.eup %8755  ;;  %8149 = vmatmul.mubr.msk.f32.vlgmr.msra.gmra.mrb[4].mxu0 %vm219_vm13, %v9115_v56 }
 0x29c   :  { %v9121_v59 = vadd.f32 %v7704_v50, %v279_v57  ;;  %v272_v60 = vmul.f32 %v8756_v58, %v240_v19  ;;  %8166 = vmatprep.mubr.msk.f32.mxu0 %vm8945_vm14, %v8944_v29  ;;  %v9184_v19 = vsub.s32 %v297_v15, %v9069_v36 }
 0x29e   :  { %8151 = vmatprep.mubr.msk.f32.mxu1 %vm219_vm13, %v9121_v59  ;;  %v280_v61 = vmul.f32 %v7703_v46, %v272_v60  ;;  %v301_v21 = vrot.slane %v291_v18, %v9184_v19  ;;  %v309_v23 = vrot.slane %v292_v20, %v9184_v19 }
 0x2a0   :  { %v9125_v62 = vadd.f32 %v7704_v50, %v280_v61  ;;  %v302_v22 = vcombine.high %v301_v21, %v301_v21  ;;  %v310_v25 = vcombine.high %v309_v23, %v309_v23  ;;  %v317_v47 = vmul.f32 -1e+09, %v309_v23 }
 0x2a2   :  { %8152 = vmatmul.mubr.msk.f32.vlgmr.msra.gmra.mrb[0].mxu1 %vm219_vm13, %v9125_v62  ;;  %v316_v24 = vmul.f32 -1e+09, %v302_v22  ;;  %v318_v30 = vmul.f32 -1e+09, %v310_v25  ;;  %v9207_v49 = vrot.slane %v317_v47, %v9072_v37 }
 0x2a3   :  { %8156 = vmatprep.mubr.msk.f32.mxu1 %vm8945_vm14, %v8944_v29 }
 0x2a4   :  { %v9189_v28 = vrot.slane %v316_v24, %v9072_v37  ;;  %v9193_v35 = vrot.slane %v318_v30, %v9072_v37 }
 0x36e   :  { %v8150_v1 = vpop.f32.mrb[4].mxu0 }
 0x36f   :  { %v9137_v2 = vadd.f32 %v8150_v1, %v331_v0  ;;  %v410_v3 = vpop.f32.mrb[5].mxu0 }
 0x370   :  { %v9139_v4 = vadd.f32 %v410_v3, %v331_v0 }
 0x371   :  { %508 = vrot.lane.b32.xlu0 %v9137_v2, %s8946_s1 }
 0x372   :  { %430 = vrot.lane.b32.xlu1 %v9139_v4, %s8946_s1 }
 0x375   :  { %v8153_v5 = vpop.f32.mrb[0].mxu1 }
 0x376   :  { %v9145_v6 = vadd.f32 %v8153_v5, %v331_v0  ;;  %v420_v7 = vpop.f32.mrb[1].mxu1 }
 0x377   :  { %v9149_v8 = vadd.f32 %v420_v7, %v331_v0 }
 0x378   :  { %662 = vrot.lane.b32.xlu1 %v9145_v6, %s8946_s1 }
 0x37c   :  { %585 = vrot.lane.b32.xlu1 %v9149_v8, %s8946_s1 }
 0x3e3   :  { %v509_v10 = vpop.permute.xlu0 %508 }
 0x3e4   :  { %v431_v9 = vpop.permute.xlu1 %430 }
 0x3e5   :  { %8155 = vmatpush3.xpose.msk.msra.mxu1 %vm432_vm15, %v431_v9 }
 0x3e6   :  { %8159 = vmatprep.subr.mxu1 %v8944_v29 }
 0x3e8   :  { %8157 = vmatmul.mubr.msk.f32.vlgmr.msra.gmra.mrb[2].mxu1 %vm432_vm15, %v9139_v4 }
 0x3e9   :  { %8160 = vmatpush3.xpose.msk.msra.mxu1 %vm432_vm15, %v509_v10  ;;  %8161 = vmatprep.mubr.msk.f32.mxu1 %vm8945_vm14, %v8944_v29  ;;  %v315_v10 = vmul.f32 -1e+09, %v301_v21 }
 0x3ea   :  { %v663_v11 = vpop.permute.xlu1 %662  ;;  %8169 = vmatprep.subr.mxu1 %v8944_v29 }
 0x3eb   :  { %v9230_v13 = vrot.slane %v315_v10, %v9072_v37 }
 0x3ec   :  { %8162 = vmatmul.mubr.msk.f32.vlgmr.msra.gmra.mrb[4].mxu1 %vm432_vm15, %v9137_v2 }
 0x3ed   :  { %8170 = vmatpush3.xpose.msk.msra.mxu1 %vm432_vm15, %v663_v11  ;;  %8171 = vmatprep.mubr.msk.f32.mxu1 %vm8945_vm14, %v8944_v29 }
 0x3ee   :  { %v586_v12 = vpop.permute.xlu1 %585  ;;  %8179 = vmatprep.subr.mxu1 %v8944_v29 }
 0x3ef   :  { %8165 = vmatpush3.xpose.msk.msra.mxu0 %vm432_vm15, %v586_v12 }
 0x3f0   :  { %8172 = vmatmul.mubr.msk.f32.vlgmr.msra.gmra.mrb[6].mxu1 %vm432_vm15, %v9145_v6  ;;  %8174 = vmatprep.subr.mxu0 %v8944_v29 }
 0x3f1   :  { %8181 = vmatprep.mubr.msk.f32.mxu1 %vm8945_vm14, %v8944_v29 }
 0x3f2   :  { %8167 = vmatmul.mubr.msk.f32.vlgmr.msra.gmra.mrb[6].mxu0 %vm432_vm15, %v9149_v8 }
 0x3f3   :  { %8176 = vmatprep.mubr.msk.f32.mxu0 %vm8945_vm14, %v8944_v29 }
 0x4bb   :  { %v503_v26 = vpop.f32.mrb[2].mxu1 }
 0x4bc   :  { %v8158_v27 = vpop.f32.mrb[3].mxu1  ;;  %v738_v11 = vmul.f32 0.35355338, %v503_v26 }
 0x4be   :  { %v766_v15 = vadd.f32 %v9230_v13, %v738_v11 }
 0x4bf   :  { %v580_v31 = vpop.f32.mrb[4].mxu1 }
 0x4c0   :  { %v739_v32 = vmul.f32 0.35355338, %v580_v31  ;;  %v8163_v33 = vpop.f32.mrb[5].mxu1  ;;  %v770_v16 = vsel %vm432_vm15, %v766_v15, -inf }
 0x4c2   :  { %v767_v34 = vadd.f32 %v9189_v28, %v739_v32 }
 0x4c3   :  { %v734_v39 = vpop.f32.mrb[6].mxu1 }
 0x4c4   :  { %v741_v40 = vmul.f32 0.35355338, %v734_v39  ;;  %v8173_v41 = vpop.f32.mrb[7].mxu1  ;;  %v773_v42 = vsel %vm432_vm15, %v767_v34, -inf }
 0x4c5   :  { %v657_v43 = vpop.f32.mrb[6].mxu0  ;;  %774 = vmax.xlane.f32.xlu0 %v773_v42 }
 0x4c6   :  { %v8168_v44 = vpop.f32.mrb[7].mxu0  ;;  %v769_v45 = vadd.f32 %v9193_v35, %v741_v40  ;;  %v740_v48 = vmul.f32 0.35355338, %v657_v43 }
 0x4c8   :  { %v779_v46 = vsel %vm432_vm15, %v769_v45, -inf  ;;  %v9210_v50 = vadd.f32 %v9207_v49, %v740_v48 }
 0x4c9   :  { %780 = vmax.xlane.f32.xlu1 %v779_v46 }
 0x4ca   :  { %v776_v51 = vsel %vm432_vm15, %v9210_v50, -inf }
 0x4da   :  { %890 = vrot.lane.b32.xlu1 %v9137_v2, %s8948_s3 }
 0x4de   :  { %1198 = vrot.lane.b32.xlu1 %v9137_v2, %s8949_s24 }
 0x4e2   :  { %1196 = vrot.lane.b32.xlu1 %v9137_v2, %s8950_s25 }
 0x4e6   :  { %1352 = vrot.lane.b32.xlu1 %v9145_v6, %s8950_s25 }
 0x50a   :  { %777 = vmax.xlane.f32.xlu1 %v776_v51 }
 0x51b   :  { %814 = vrot.lane.b32.xlu1 %v9139_v4, %s8948_s3 }
 0x51f   :  { %1120 = vrot.lane.b32.xlu1 %v9139_v4, %s8949_s24 }
 0x523   :  { %1118 = vrot.lane.b32.xlu1 %v9139_v4, %s8950_s25 }
 0x527   :  { %1274 = vrot.lane.b32.xlu1 %v9149_v8, %s8950_s25 }
 0x552   :  { %v775_v52 = vpop.xlane.xlu0 %774 }
 0x553   :  { %v783_v53 = vsub.f32 %v767_v34, %v775_v52 }
 0x555   :  { %v788_v55 = vmul.f32 1.442695, %v783_v53 }
 0x556   :  { %v781_v57 = vpop.xlane.xlu1 %780 }
 0x557   :  { %8757 = vpow2.f32 %v788_v55  ;;  %v785_v58 = vsub.f32 %v769_v45, %v781_v57 }
 0x559   :  { %v792_v60 = vmul.f32 1.442695, %v785_v58 }
 0x55a   :  { %v891_v61 = vpop.permute.xlu1 %890 }
 0x55b   :  { %8759 = vpow2.f32 %v792_v60  ;;  %8180 = vmatpush3.msra.mxu1 %v891_v61 }
 0x55c   :  { %8189 = vmatprep.subr.mxu1 %v8944_v29 }
 0x55e   :  { %v1199_v5 = vpop.permute.xlu1 %1198 }
 0x561   :  { %v8758_v63 = vpop.eup %8757 }
 0x562   :  { %v797_v0 = vsel %vm432_vm15, %v8758_v63, 0.0  ;;  %v1197_v7 = vpop.permute.xlu1 %1196 }
 0x563   :  { %798 = vadd.xlane.f32.xlu0 %v797_v0 }
 0x565   :  { %v8760_v1 = vpop.eup %8759 }
 0x566   :  { %v803_v3 = vsel %vm432_vm15, %v8760_v1, 0.0  ;;  %v1353_v9 = vpop.permute.xlu1 %1352 }
 0x567   :  { %804 = vadd.xlane.f32.xlu0 %v803_v3 }
 0x57d   :  { %1042 = vrot.lane.b32.xlu0 %v9145_v6, %s8948_s3 }
 0x581   :  { %1354 = vrot.lane.b32.xlu0 %v9145_v6, %s8949_s24 }
 0x597   :  { %v778_v12 = vpop.xlane.xlu1 %777 }
 0x598   :  { %v784_v26 = vsub.f32 %v9210_v50, %v778_v12 }
 0x59a   :  { %v790_v31 = vmul.f32 1.442695, %v784_v26 }
 0x59b   :  { %v815_v14 = vpop.permute.xlu1 %814 }
 0x59c   :  { %8175 = vmatpush3.msra.mxu0 %v815_v14 }
 0x59d   :  { %8184 = vmatprep.subr.mxu0 %v8944_v29 }
 0x59f   :  { %v1121_v52 = vpop.permute.xlu1 %1120 }
 0x5a0   :  { %771 = vmax.xlane.f32.xlu0 %v770_v16 }
 0x5f0   :  { %v799_v17 = vpop.xlane.xlu0 %798 }
 0x5f1   :  { %8761 = vrcp.f32 %v799_v17 }
 0x5f4   :  { %v805_v18 = vpop.xlane.xlu0 %804 }
 0x5f5   :  { %8763 = vrcp.f32 %v805_v18 }
 0x5f8   :  { %v1043_v22 = vpop.permute.xlu0 %1042 }
 0x5fb   :  { %v8762_v20 = vpop.eup %8761 }
 0x5fc   :  { %v811_v21 = vmul.f32 %v8762_v20, %v8758_v63  ;;  %v1355_v25 = vpop.permute.xlu0 %1354  ;;  %v1119_v63 = vpop.permute.xlu1 %1118 }
 0x5fe   :  { %8182 = vmatmul.mubr.msk.f32.vlgmr.msra.gmra.mrb[8].mxu1 %vm432_vm15, %v811_v21 }
 0x5ff   :  { %v8764_v23 = vpop.eup %8763  ;;  %8190 = vmatpush3.msra.mxu1 %v1043_v22  ;;  %8191 = vmatprep.mubr.msk.f32.mxu1 %vm8945_vm14, %v8944_v29 }
 0x600   :  { %v813_v24 = vmul.f32 %v8764_v23, %v8760_v1  ;;  %8199 = vmatprep.subr.mxu1 %v8944_v29  ;;  %v1275_v10 = vpop.permute.xlu1 %1274 }
 0x602   :  { %8192 = vmatmul.mubr.msk.f32.vlgmr.msra.gmra.mrb[10].mxu1 %vm432_vm15, %v813_v24 }
 0x603   :  { %8201 = vmatprep.mubr.msk.f32.mxu1 %vm8945_vm14, %v8944_v29 }
 0x606   :  { %8200 = vmatpush3.xpose.msk.msra.mxu1 %vm432_vm15, %v1199_v5 }
 0x607   :  { %8209 = vmatprep.subr.mxu1 %v8944_v29 }
 0x609   :  { %8202 = vmatmul.mubr.msk.f32.vlgmr.msra.gmra.mrb[12].mxu1 %vm432_vm15, %v1197_v7 }
 0x60a   :  { %8210 = vmatpush3.xpose.msk.msra.mxu1 %vm432_vm15, %v1355_v25  ;;  %8211 = vmatprep.mubr.msk.f32.mxu1 %vm8945_vm14, %v8944_v29 }
 0x60b   :  { %8219 = vmatprep.subr.mxu1 %v8944_v29 }
 0x60d   :  { %8212 = vmatmul.mubr.msk.f32.vlgmr.msra.gmra.mrb[14].mxu1 %vm432_vm15, %v1353_v9 }
 0x60e   :  { %8221 = vmatprep.mubr.msk.f32.mxu1 %vm8945_vm14, %v8944_v29 }
 0x62d   :  { %v772_v27 = vpop.xlane.xlu0 %771 }
 0x62e   :  { %v782_v30 = vsub.f32 %v766_v15, %v772_v27 }
 0x630   :  { %v786_v32 = vmul.f32 1.442695, %v782_v30 }
 0x632   :  { %8765 = vpow2.f32 %v786_v32 }
 0x633   :  { %8767 = vpow2.f32 %v790_v31 }
 0x63c   :  { %v8766_v33 = vpop.eup %8765 }
 0x63d   :  { %v794_v34 = vsel %vm432_vm15, %v8766_v33, 0.0  ;;  %v8768_v39 = vpop.eup %8767 }
 0x63e   :  { %795 = vadd.xlane.f32.xlu0 %v794_v34  ;;  %v800_v40 = vsel %vm432_vm15, %v8768_v39, 0.0 }
 0x642   :  { %801 = vadd.xlane.f32.xlu0 %v800_v40 }
 0x658   :  { %966 = vrot.lane.b32.xlu0 %v9149_v8, %s8948_s3 }
 0x65c   :  { %1276 = vrot.lane.b32.xlu0 %v9149_v8, %s8949_s24 }
 0x6cb   :  { %v796_v41 = vpop.xlane.xlu0 %795 }
 0x6cc   :  { %8769 = vrcp.f32 %v796_v41 }
 0x6cf   :  { %v802_v42 = vpop.xlane.xlu0 %801 }
 0x6d0   :  { %8771 = vrcp.f32 %v802_v42 }
 0x6d1   :  { %v9259_v43 = vpop.f32.mrb[8].mxu1 }
 0x6d2   :  { %v8183_v44 = vpop.f32.mrb[9].mxu1 }
 0x6d3   :  { %v967_v50 = vpop.permute.xlu0 %966 }
 0x6d5   :  { %v9261_v45 = vpop.f32.mrb[10].mxu1 }
 0x6d6   :  { %v8770_v46 = vpop.eup %8769  ;;  %v8193_v47 = vpop.f32.mrb[11].mxu1 }
 0x6d7   :  { %v810_v48 = vmul.f32 %v8770_v46, %v8766_v33  ;;  %v1277_v7 = vpop.permute.xlu0 %1276 }
 0x6d9   :  { %8177 = vmatmul.mubr.msk.f32.vlgmr.msra.gmra.mrb[8].mxu0 %vm432_vm15, %v810_v48 }
 0x6da   :  { %v8772_v51 = vpop.eup %8771  ;;  %8185 = vmatpush3.msra.mxu0 %v967_v50  ;;  %8186 = vmatprep.mubr.msk.f32.mxu0 %vm8945_vm14, %v8944_v29 }
 0x6db   :  { %v812_v53 = vmul.f32 %v8772_v51, %v8768_v39  ;;  %8194 = vmatprep.subr.mxu0 %v8944_v29 }
 0x6dc   :  { %v1270_v55 = vpop.f32.mrb[12].mxu1 }
 0x6dd   :  { %v1431_v57 = vmul.f32 0.35355338, %v1270_v55  ;;  %v8203_v58 = vpop.f32.mrb[13].mxu1  ;;  %8187 = vmatmul.mubr.msk.f32.vlgmr.msra.gmra.mrb[10].mxu0 %vm432_vm15, %v812_v53 }
 0x6de   :  { %8196 = vmatprep.mubr.msk.f32.mxu0 %vm8945_vm14, %v8944_v29 }
 0x6df   :  { %v1435_v60 = vadd.f32 %v1431_v57, %v9189_v28 }
 0x6e0   :  { %v1426_v61 = vpop.f32.mrb[14].mxu1 }
 0x6e1   :  { %v1433_v0 = vmul.f32 0.35355338, %v1426_v61  ;;  %8195 = vmatpush3.xpose.msk.msra.mxu0 %vm432_vm15, %v1121_v52  ;;  %v8213_v1 = vpop.f32.mrb[15].mxu1  ;;  %v1441_v3 = vsel %vm432_vm15, %v1435_v60, -inf }
 0x6e2   :  { %1442 = vmax.xlane.f32.xlu0 %v1441_v3  ;;  %8204 = vmatprep.subr.mxu0 %v8944_v29 }
 0x6e3   :  { %v1437_v5 = vadd.f32 %v1433_v0, %v9193_v35 }
 0x6e4   :  { %8197 = vmatmul.mubr.msk.f32.vlgmr.msra.gmra.mrb[12].mxu0 %vm432_vm15, %v1119_v63 }
 0x6e5   :  { %8205 = vmatpush3.xpose.msk.msra.mxu0 %vm432_vm15, %v1277_v7  ;;  %v1447_v9 = vsel %vm432_vm15, %v1437_v5, -inf  ;;  %8206 = vmatprep.mubr.msk.f32.mxu0 %vm8945_vm14, %v8944_v29 }
 0x6e6   :  { %1448 = vmax.xlane.f32.xlu1 %v1447_v9  ;;  %8214 = vmatprep.subr.mxu0 %v8944_v29 }
 0x6e8   :  { %8207 = vmatmul.mubr.msk.f32.vlgmr.msra.gmra.mrb[14].mxu0 %vm432_vm15, %v1275_v10 }
 0x6e9   :  { %8216 = vmatprep.mubr.msk.f32.mxu0 %vm8945_vm14, %v8944_v29 }
 0x6f7   :  { %1558 = vrot.lane.b32.xlu1 %v9137_v2, %s8951_s26 }
 0x6fb   :  { %1982 = vrot.lane.b32.xlu1 %v9139_v4, %s8952_s27 }
 0x6ff   :  { %1980 = vrot.lane.b32.xlu1 %v9139_v4, %s8953_s28 }
 0x703   :  { %2058 = vrot.lane.b32.xlu1 %v9137_v2, %s8953_s28 }
 0x707   :  { %2136 = vrot.lane.b32.xlu1 %v9149_v8, %s8953_s28 }
 0x70b   :  { %2214 = vrot.lane.b32.xlu1 %v9145_v6, %s8953_s28 }
 0x76f   :  { %v1443_v11 = vpop.xlane.xlu0 %1442 }
 0x770   :  { %v1451_v12 = vsub.f32 %v1435_v60, %v1443_v11 }
 0x772   :  { %v1456_v14 = vmul.f32 1.442695, %v1451_v12 }
 0x773   :  { %v1449_v15 = vpop.xlane.xlu1 %1448 }
 0x774   :  { %8773 = vpow2.f32 %v1456_v14  ;;  %v1453_v16 = vsub.f32 %v1437_v5, %v1449_v15 }
 0x776   :  { %v1460_v17 = vmul.f32 1.442695, %v1453_v16 }
 0x777   :  { %v1559_v18 = vpop.permute.xlu1 %1558 }
 0x778   :  { %8775 = vpow2.f32 %v1460_v17  ;;  %8220 = vmatpush3.msra.mxu1 %v1559_v18 }
 0x779   :  { %8229 = vmatprep.subr.mxu1 %v8944_v29 }
 0x77b   :  { %v1983_v50 = vpop.permute.xlu1 %1982 }
 0x77e   :  { %v8774_v20 = vpop.eup %8773 }
 0x77f   :  { %v1465_v21 = vsel %vm432_vm15, %v8774_v20, 0.0  ;;  %v1981_v57 = vpop.permute.xlu1 %1980 }
 0x780   :  { %1466 = vadd.xlane.f32.xlu0 %v1465_v21 }
 0x782   :  { %v8776_v22 = vpop.eup %8775 }
 0x783   :  { %v1471_v23 = vsel %vm432_vm15, %v8776_v22, 0.0  ;;  %v2059_v60 = vpop.permute.xlu1 %2058 }
 0x784   :  { %1472 = vadd.xlane.f32.xlu0 %v1471_v23 }
 0x787   :  { %v2137_v63 = vpop.permute.xlu1 %2136 }
 0x78b   :  { %v2215_v1 = vpop.permute.xlu1 %2214 }
 0x79a   :  { %1710 = vrot.lane.b32.xlu0 %v9145_v6, %s8951_s26 }
 0x79e   :  { %2060 = vrot.lane.b32.xlu0 %v9137_v2, %s8952_s27 }
 0x7a2   :  { %2138 = vrot.lane.b32.xlu0 %v9149_v8, %s8952_s27 }
 0x7a6   :  { %2216 = vrot.lane.b32.xlu0 %v9145_v6, %s8952_s27 }
 0x7ac   :  { %v9307_v24 = vpop.f32.mrb[8].mxu0 }
 0x7ad   :  { %v8178_v25 = vpop.f32.mrb[9].mxu0 }
 0x7b0   :  { %v9309_v26 = vpop.f32.mrb[10].mxu0 }
 0x7b1   :  { %v8188_v27 = vpop.f32.mrb[11].mxu0 }
 0x7b7   :  { %v1192_v30 = vpop.f32.mrb[12].mxu0 }
 0x7b8   :  { %v8198_v31 = vpop.f32.mrb[13].mxu0  ;;  %v1430_v33 = vmul.f32 0.35355338, %v1192_v30 }
 0x7ba   :  { %v1434_v42 = vadd.f32 %v1430_v33, %v9230_v13 }
 0x7bb   :  { %v1348_v32 = vpop.f32.mrb[14].mxu0 }
 0x7bc   :  { %v1432_v34 = vmul.f32 0.35355338, %v1348_v32  ;;  %v8208_v39 = vpop.f32.mrb[15].mxu0  ;;  %v1438_v44 = vsel %vm432_vm15, %v1434_v42, -inf }
 0x7be   :  { %v1436_v40 = vadd.f32 %v1432_v34, %v9207_v49 }
 0x7c0   :  { %v1444_v41 = vsel %vm432_vm15, %v1436_v40, -inf }
 0x7c1   :  { %1445 = vmax.xlane.f32.xlu1 %v1444_v41 }
 0x7c5   :  { %1439 = vmax.xlane.f32.xlu0 %v1438_v44 }
 0x7d2   :  { %1482 = vrot.lane.b32.xlu1 %v9139_v4, %s8951_s26 }
 0x80d   :  { %v1467_v46 = vpop.xlane.xlu0 %1466 }
 0x80e   :  { %8777 = vrcp.f32 %v1467_v46 }
 0x811   :  { %v1473_v47 = vpop.xlane.xlu0 %1472 }
 0x812   :  { %8779 = vrcp.f32 %v1473_v47 }
 0x815   :  { %v1711_v52 = vpop.permute.xlu0 %1710 }
 0x818   :  { %v8778_v48 = vpop.eup %8777 }
 0x819   :  { %v1479_v51 = vmul.f32 %v8778_v48, %v8774_v20  ;;  %v2061_v58 = vpop.permute.xlu0 %2060 }
 0x81b   :  { %8222 = vmatmul.mubr.msk.f32.vlgmr.msra.gmra.mrb[16].mxu1 %vm432_vm15, %v1479_v51 }
 0x81c   :  { %v8780_v53 = vpop.eup %8779  ;;  %8230 = vmatpush3.msra.mxu1 %v1711_v52  ;;  %8231 = vmatprep.mubr.msk.f32.mxu1 %vm8945_vm14, %v8944_v29 }
 0x81d   :  { %v1481_v55 = vmul.f32 %v8780_v53, %v8776_v22  ;;  %8250 = vmatprep.subr.mxu1 %v8944_v29  ;;  %v2139_v61 = vpop.permute.xlu0 %2138 }
 0x81f   :  { %8232 = vmatmul.mubr.msk.f32.vlgmr.msra.gmra.mrb[18].mxu1 %vm432_vm15, %v1481_v55 }
 0x820   :  { %8252 = vmatprep.mubr.msk.f32.mxu1 %vm8945_vm14, %v8944_v29 }
 0x821   :  { %v2217_v0 = vpop.permute.xlu0 %2216 }
 0x823   :  { %8251 = vmatpush3.xpose.msk.msra.mxu1 %vm432_vm15, %v1983_v50 }
 0x824   :  { %8255 = vmatprep.subr.mxu1 %v8944_v29 }
 0x826   :  { %8253 = vmatmul.mubr.msk.f32.vlgmr.msra.gmra.mrb[20].mxu1 %vm432_vm15, %v1981_v57 }
 0x827   :  { %8256 = vmatpush3.xpose.msk.msra.mxu1 %vm432_vm15, %v2061_v58  ;;  %8257 = vmatprep.mubr.msk.f32.mxu1 %vm8945_vm14, %v8944_v29 }
 0x828   :  { %8260 = vmatprep.subr.mxu1 %v8944_v29 }
 0x82a   :  { %8258 = vmatmul.mubr.msk.f32.vlgmr.msra.gmra.mrb[22].mxu1 %vm432_vm15, %v2059_v60 }
 0x82b   :  { %8261 = vmatpush3.xpose.msk.msra.mxu1 %vm432_vm15, %v2139_v61  ;;  %8262 = vmatprep.mubr.msk.f32.mxu1 %vm8945_vm14, %v8944_v29 }
 0x82c   :  { %8265 = vmatprep.subr.mxu1 %v8944_v29 }
 0x82e   :  { %8263 = vmatmul.mubr.msk.f32.vlgmr.msra.gmra.mrb[24].mxu1 %vm432_vm15, %v2137_v63 }
 0x82f   :  { %8266 = vmatpush3.xpose.msk.msra.mxu1 %vm432_vm15, %v2217_v0  ;;  %8267 = vmatprep.mubr.msk.f32.mxu1 %vm8945_vm14, %v8944_v29 }
 0x830   :  { %8275 = vmatprep.subr.mxu1 %v8944_v29 }
 0x832   :  { %8268 = vmatmul.mubr.msk.f32.vlgmr.msra.gmra.mrb[26].mxu1 %vm432_vm15, %v2215_v1  ;;  %v321_v1 = vld [vmem:[%s10165_s6 + $0x8] sm:$0xff] }
 0x833   :  { %8277 = vmatprep.mubr.msk.f32.mxu1 %vm8945_vm14, %v8944_v29 }
 0x84e   :  { %v1446_v3 = vpop.xlane.xlu1 %1445 }
 0x84f   :  { %v1452_v5 = vsub.f32 %v1436_v40, %v1446_v3  ;;  %v320_v3 = vld [vmem:[%s10165_s6] sm:$0xff] }
 0x851   :  { %v1458_v11 = vmul.f32 1.442695, %v1452_v5 }
 0x852   :  { %v1440_v7 = vpop.xlane.xlu0 %1439  ;;  %v1483_v9 = vpop.permute.xlu1 %1482 }
 0x853   :  { %v1450_v10 = vsub.f32 %v1434_v42, %v1440_v7  ;;  %8215 = vmatpush3.msra.mxu0 %v1483_v9 }
 0x854   :  { %8224 = vmatprep.subr.mxu0 %v8944_v29 }
 0x855   :  { %v1454_v12 = vmul.f32 1.442695, %v1450_v10 }
 0x857   :  { %8781 = vpow2.f32 %v1454_v12 }
 0x858   :  { %8783 = vpow2.f32 %v1458_v11 }
 0x861   :  { %v8782_v14 = vpop.eup %8781 }
 0x862   :  { %v1462_v15 = vsel %vm432_vm15, %v8782_v14, 0.0  ;;  %v8784_v16 = vpop.eup %8783 }
 0x863   :  { %1463 = vadd.xlane.f32.xlu0 %v1462_v15  ;;  %v1468_v17 = vsel %vm432_vm15, %v8784_v16, 0.0 }
 0x867   :  { %1469 = vadd.xlane.f32.xlu0 %v1468_v17 }
 0x87d   :  { %1634 = vrot.lane.b32.xlu0 %v9149_v8, %s8951_s26 }
 0x8ee   :  { %v9349_v18 = vpop.f32.mrb[16].mxu1 }
 0x8ef   :  { %v8223_v20 = vpop.f32.mrb[17].mxu1 }
 0x8f0   :  { %v1464_v21 = vpop.xlane.xlu0 %1463 }
 0x8f1   :  { %8785 = vrcp.f32 %v1464_v21 }
 0x8f2   :  { %v9351_v22 = vpop.f32.mrb[18].mxu1 }
 0x8f3   :  { %v8233_v23 = vpop.f32.mrb[19].mxu1 }
 0x8f4   :  { %v1470_v25 = vpop.xlane.xlu0 %1469 }
 0x8f5   :  { %8787 = vrcp.f32 %v1470_v25 }
 0x8f8   :  { %v1635_v40 = vpop.permute.xlu0 %1634 }
 0x8f9   :  { %v2054_v27 = vpop.f32.mrb[20].mxu1 }
 0x8fa   :  { %v2292_v30 = vmul.f32 0.35355338, %v2054_v27  ;;  %v8254_v31 = vpop.f32.mrb[21].mxu1 }
 0x8fb   :  { %v8786_v32 = vpop.eup %8785 }
 0x8fc   :  { %v1478_v33 = vmul.f32 %v8786_v32, %v8782_v14  ;;  %v2296_v34 = vadd.f32 %v2292_v30, %v9230_v13 }
 0x8fd   :  { %v2132_v39 = vpop.f32.mrb[22].mxu1 }
 0x8fe   :  { %v2293_v41 = vmul.f32 0.35355338, %v2132_v39  ;;  %v8259_v42 = vpop.f32.mrb[23].mxu1  ;;  %8217 = vmatmul.mubr.msk.f32.vlgmr.msra.gmra.mrb[16].mxu0 %vm432_vm15, %v1478_v33  ;;  %v2300_v44 = vsel %vm432_vm15, %v2296_v34, -inf }
 0x8ff   :  { %v8788_v46 = vpop.eup %8787  ;;  %8225 = vmatpush3.msra.mxu0 %v1635_v40  ;;  %2301 = vmax.xlane.f32.xlu1 %v2300_v44 }
 0x900   :  { %8226 = vmatprep.mubr.msk.f32.mxu0 %vm8945_vm14, %v8944_v29  ;;  %v1480_v47 = vmul.f32 %v8788_v46, %v8784_v16  ;;  %v2297_v48 = vadd.f32 %v2293_v41, %v9189_v28  ;;  %8234 = vmatprep.subr.mxu0 %v321_v1 }
 0x901   :  { %v2210_v50 = vpop.f32.mrb[24].mxu1 }
 0x902   :  { %v2294_v51 = vmul.f32 0.35355338, %v2210_v50  ;;  %v8264_v52 = vpop.f32.mrb[25].mxu1  ;;  %8227 = vmatmul.mubr.msk.f32.vlgmr.msra.gmra.mrb[18].mxu0 %vm432_vm15, %v1480_v47  ;;  %v2303_v53 = vsel %vm432_vm15, %v2297_v48, -inf }
 0x903   :  { %2304 = vmax.xlane.f32.xlu0 %v2303_v53  ;;  %8235 = vmatpush3.msra.mxu0 %v321_v1 }
 0x904   :  { %v2298_v55 = vadd.f32 %v2294_v51, %v9207_v49  ;;  %8242 = vmatprep.subr.mxu0 %v320_v3 }
 0x905   :  { %v2288_v57 = vpop.f32.mrb[26].mxu1 }
 0x906   :  { %v2295_v58 = vmul.f32 0.35355338, %v2288_v57  ;;  %v8269_v60 = vpop.f32.mrb[27].mxu1  ;;  %v2306_v61 = vsel %vm432_vm15, %v2298_v55, -inf }
 0x907   :  { %2307 = vmax.xlane.f32.xlu1 %v2306_v61 }
 0x908   :  { %v2299_v63 = vadd.f32 %v2295_v58, %v9193_v35 }
 0x90a   :  { %v2309_v0 = vsel %vm432_vm15, %v2299_v63, -inf }
 0x90b   :  { %2310 = vmax.xlane.f32.xlu0 %v2309_v0 }
 0x918   :  { %2344 = vrot.lane.b32.xlu1 %v9139_v4, %s8954_s29 }
 0x98c   :  { %v2302_v5 = vpop.xlane.xlu1 %2301 }
 0x98d   :  { %v2312_v7 = vsub.f32 %v2296_v34, %v2302_v5 }
 0x98f   :  { %v2316_v9 = vmul.f32 1.442695, %v2312_v7 }
 0x990   :  { %v2305_v10 = vpop.xlane.xlu0 %2304 }
 0x991   :  { %8789 = vpow2.f32 %v2316_v9  ;;  %v2313_v11 = vsub.f32 %v2297_v48, %v2305_v10 }
 0x993   :  { %v2318_v12 = vmul.f32 1.442695, %v2313_v11 }
 0x994   :  { %v2308_v14 = vpop.xlane.xlu1 %2307 }
 0x995   :  { %8791 = vpow2.f32 %v2318_v12  ;;  %v2314_v15 = vsub.f32 %v2298_v55, %v2308_v14 }
 0x997   :  { %v2320_v16 = vmul.f32 1.442695, %v2314_v15 }
 0x998   :  { %v2311_v17 = vpop.xlane.xlu0 %2310  ;;  %v2345_v44 = vpop.permute.xlu1 %2344 }
 0x999   :  { %8793 = vpow2.f32 %v2320_v16  ;;  %v2315_v20 = vsub.f32 %v2299_v63, %v2311_v17 }
 0x99b   :  { %v8790_v21 = vpop.eup %8789  ;;  %v2322_v23 = vmul.f32 1.442695, %v2315_v20 }
 0x99c   :  { %v2324_v25 = vsel %vm432_vm15, %v8790_v21, 0.0 }
 0x99d   :  { %8795 = vpow2.f32 %v2322_v23  ;;  %2325 = vadd.xlane.f32.xlu1 %v2324_v25 }
 0x99f   :  { %v8792_v27 = vpop.eup %8791 }
 0x9a0   :  { %v2327_v30 = vsel %vm432_vm15, %v8792_v27, 0.0 }
 0x9a1   :  { %2328 = vadd.xlane.f32.xlu0 %v2327_v30 }
 0x9a3   :  { %v9375_v31 = vpop.eup %8793 }
 0x9a4   :  { %v2330_v32 = vsel %vm432_vm15, %v9375_v31, 0.0 }
 0x9a5   :  { %2331 = vadd.xlane.f32.xlu1 %v2330_v32 }
 0x9a7   :  { %v9379_v33 = vpop.eup %8795 }
 0x9a8   :  { %v2333_v34 = vsel %vm432_vm15, %v9379_v33, 0.0 }
 0x9a9   :  { %2334 = vadd.xlane.f32.xlu0 %v2333_v34 }
 0x9b6   :  { %2496 = vrot.lane.b32.xlu1 %v9149_v8, %s8954_s29 }
 0x9ba   :  { %2572 = vrot.lane.b32.xlu1 %v9145_v6, %s8954_s29 }
 0x9be   :  { %2749 = vrot.lane.b32.xlu1 %v9139_v4, %s8955_s0 }
 0x9bf   :  { %2420 = vrot.lane.b32.xlu0 %v9137_v2, %s8954_s29 }
 0x9c2   :  { %2827 = vrot.lane.b32.xlu1 %v9137_v2, %s8955_s0 }
 0x9c3   :  { %2751 = vrot.lane.b32.xlu0 %v9139_v4, %s8956_s14 }
 0x9c6   :  { %2985 = vrot.lane.b32.xlu1 %v9145_v6, %s8956_s14 }
 0x9c7   :  { %2829 = vrot.lane.b32.xlu0 %v9137_v2, %s8956_s14 }
 0x9ca   :  { %2983 = vrot.lane.b32.xlu1 %v9145_v6, %s8955_s0 }
 0x9cb   :  { %2907 = vrot.lane.b32.xlu0 %v9149_v8, %s8956_s14 }
 0x9cf   :  { %2905 = vrot.lane.b32.xlu0 %v9149_v8, %s8955_s0 }
 0x9d1   :  { %v1554_v39 = vpop.f32.mrb[16].mxu0 }
 0x9d2   :  { %v8218_v40 = vpop.f32.mrb[17].mxu0  ;;  %8236 = vmatprep.mubr.msk.f32.mxu0 %vm432_vm15, %v1554_v39 }
 0x9d3   :  { %8237 = vmatmul.mubr.msk.f32.vlgmr.msra.gmra.mrb[20].mxu0 %vm432_vm15, %v9349_v18 }
 0x9d4   :  { %8243 = vmatpush3.msra.mxu0 %v320_v3 }
 0x9d5   :  { %v1706_v41 = vpop.f32.mrb[18].mxu0  ;;  %8270 = vmatprep.subr.mxu0 %v8944_v29 }
 0x9d6   :  { %v8228_v42 = vpop.f32.mrb[19].mxu0  ;;  %8239 = vmatprep.mubr.msk.f32.mxu0 %vm432_vm15, %v1706_v41 }
 0x9d7   :  { %8240 = vmatmul.mubr.msk.f32.gmra.mrb[22].mxu0 %vm432_vm15, %v9351_v22 }
 0x9d8   :  { %8244 = vmatprep.mubr.msk.f32.mxu0 %vm432_vm15, %v9307_v24 }
 0x9db   :  { %8245 = vmatmul.mubr.msk.f32.vlgmr.msra.gmra.mrb[20].mxu0 %vm432_vm15, %v9259_v43 }
 0x9dc   :  { %8271 = vmatpush3.msra.mxu0 %v2345_v44  ;;  %8247 = vmatprep.mubr.msk.f32.mxu0 %vm432_vm15, %v9309_v26  ;;  %v322_v26 = vld [vmem:[%s10165_s6 + $0x10] sm:$0xff] }
 0x9dd   :  { %8280 = vmatprep.subr.mxu0 %v8944_v29 }
 0x9df   :  { %8248 = vmatmul.mubr.msk.f32.gmra.mrb[22].mxu0 %vm432_vm15, %v9261_v45 }
 0x9e0   :  { %8272 = vmatprep.mubr.msk.f32.mxu0 %vm8945_vm14, %v8944_v29 }
 0xa2a   :  { %v2326_v18 = vpop.xlane.xlu1 %2325 }
 0xa2b   :  { %8797 = vrcp.f32 %v2326_v18 }
 0xa2e   :  { %v2329_v22 = vpop.xlane.xlu0 %2328 }
 0xa2f   :  { %8799 = vrcp.f32 %v2329_v22 }
 0xa32   :  { %v2332_v24 = vpop.xlane.xlu1 %2331 }
 0xa33   :  { %8801 = vrcp.f32 %v2332_v24 }
 0xa35   :  { %v8798_v46 = vpop.eup %8797 }
 0xa36   :  { %v2340_v43 = vmul.f32 %v8798_v46, %v8790_v21  ;;  %v2497_v47 = vpop.permute.xlu1 %2496  ;;  %v2335_v48 = vpop.xlane.xlu0 %2334 }
 0xa37   :  { %8803 = vrcp.f32 %v2335_v48 }
 0xa38   :  { %8273 = vmatmul.mubr.msk.f32.vlgmr.msra.gmra.mrb[24].mxu0 %vm432_vm15, %v2340_v43 }
 0xa39   :  { %v8800_v45 = vpop.eup %8799  ;;  %8281 = vmatpush3.msra.mxu0 %v2497_v47  ;;  %8282 = vmatprep.mubr.msk.f32.mxu0 %vm8945_vm14, %v8944_v29 }
 0xa3a   :  { %v2573_v50 = vpop.permute.xlu1 %2572  ;;  %v2421_v51 = vpop.permute.xlu0 %2420  ;;  %v2341_v52 = vmul.f32 %v8800_v45, %v8792_v27  ;;  %8290 = vmatprep.subr.mxu0 %v322_v26 }
 0xa3b   :  { %8276 = vmatpush3.msra.mxu1 %v2421_v51 }
 0xa3c   :  { %8278 = vmatmul.mubr.msk.f32.vlgmr.msra.gmra.mrb[28].mxu1 %vm432_vm15, %v2341_v52  ;;  %8285 = vmatprep.subr.mxu1 %v8944_v29 }
 0xa3d   :  { %v8802_v53 = vpop.eup %8801  ;;  %8286 = vmatpush3.msra.mxu1 %v2573_v50  ;;  %8287 = vmatprep.mubr.msk.f32.mxu1 %vm8945_vm14, %v8944_v29 }
 0xa3e   :  { %v2750_v55 = vpop.permute.xlu1 %2749  ;;  %v2342_v57 = vmul.f32 %v8802_v53, %v9375_v31  ;;  %8298 = vmatprep.subr.mxu1 %v8944_v29  ;;  %v2752_v60 = vpop.permute.xlu0 %2751 }
 0xa40   :  { %8283 = vmatmul.mubr.msk.f32.vlgmr.msra.gmra.mrb[26].mxu0 %vm432_vm15, %v2342_v57 }
 0xa41   :  { %v8804_v58 = vpop.eup %8803  ;;  %8291 = vmatpush3.msra.mxu0 %v322_v26 }
 0xa42   :  { %v2343_v61 = vmul.f32 %v8804_v58, %v9379_v33  ;;  %8308 = vmatprep.subr.mxu0 %v8944_v29  ;;  %v2828_v63 = vpop.permute.xlu1 %2827  ;;  %v2830_v0 = vpop.permute.xlu0 %2829 }
 0xa44   :  { %8288 = vmatmul.mubr.msk.f32.vlgmr.msra.gmra.mrb[30].mxu1 %vm432_vm15, %v2343_v61 }
 0xa45   :  { %8299 = vmatpush3.xpose.msk.msra.mxu1 %vm432_vm15, %v2752_v60  ;;  %8300 = vmatprep.mubr.msk.f32.mxu1 %vm8945_vm14, %v8944_v29 }
 0xa46   :  { %8303 = vmatprep.subr.mxu1 %v8944_v29  ;;  %v2986_v1 = vpop.permute.xlu1 %2985  ;;  %v2908_v10 = vpop.permute.xlu0 %2907 }
 0xa48   :  { %8301 = vmatmul.mubr.msk.f32.vlgmr.msra.gmra.mrb[32].mxu1 %vm432_vm15, %v2750_v55 }
 0xa49   :  { %8304 = vmatpush3.xpose.msk.msra.mxu1 %vm432_vm15, %v2830_v0  ;;  %8305 = vmatprep.mubr.msk.f32.mxu1 %vm8945_vm14, %v8944_v29 }
 0xa4a   :  { %8313 = vmatprep.subr.mxu1 %v8944_v29  ;;  %v2984_v3 = vpop.permute.xlu1 %2983  ;;  %v2906_v17 = vpop.permute.xlu0 %2905 }
 0xa4c   :  { %8306 = vmatmul.mubr.msk.f32.vlgmr.msra.gmra.mrb[34].mxu1 %vm432_vm15, %v2828_v63 }
 0xa4d   :  { %8314 = vmatpush3.xpose.msk.msra.mxu1 %vm432_vm15, %v2986_v1  ;;  %8315 = vmatprep.mubr.msk.f32.mxu1 %vm8945_vm14, %v8944_v29 }
 0xa4e   :  { %8323 = vmatprep.subr.mxu1 %v8944_v29 }
 0xa50   :  { %8316 = vmatmul.mubr.msk.f32.vlgmr.msra.gmra.mrb[36].mxu1 %vm432_vm15, %v2984_v3 }
 0xa51   :  { %8325 = vmatprep.mubr.msk.f32.mxu1 %vm8945_vm14, %v8944_v29 }
 0xb0b   :  { %v2416_v5 = vpop.f32.mrb[24].mxu0 }
 0xb0c   :  { %v8274_v7 = vpop.f32.mrb[25].mxu0  ;;  %8292 = vmatprep.mubr.msk.f32.mxu0 %vm432_vm15, %v2416_v5 }
 0xb0f   :  { %v2492_v9 = vpop.f32.mrb[28].mxu1 }
 0xb10   :  { %v8279_v11 = vpop.f32.mrb[29].mxu1  ;;  %8293 = vmatmul.mubr.msk.f32.vlgmr.msra.gmra.mrb[20].mxu0 %vm432_vm15, %v2492_v9 }
 0xb11   :  { %8309 = vmatpush3.xpose.msk.msra.mxu0 %vm432_vm15, %v2908_v10 }
 0xb12   :  { %8318 = vmatprep.subr.mxu0 %v8944_v29 }
 0xb13   :  { %v2568_v12 = vpop.f32.mrb[26].mxu0 }
 0xb14   :  { %v8284_v14 = vpop.f32.mrb[27].mxu0  ;;  %8295 = vmatprep.mubr.msk.f32.mxu0 %vm432_vm15, %v2568_v12 }
 0xb15   :  { %v323_v14 = vld [vmem:[%s10165_s6 + $0x18] sm:$0xff] }
 0xb17   :  { %v2644_v15 = vpop.f32.mrb[30].mxu1 }
 0xb18   :  { %v8289_v16 = vpop.f32.mrb[31].mxu1  ;;  %8296 = vmatmul.mubr.msk.f32.gmra.mrb[22].mxu0 %vm432_vm15, %v2644_v15 }
 0xb19   :  { %8310 = vmatprep.mubr.msk.f32.mxu0 %vm8945_vm14, %v8944_v29 }
 0xb1b   :  { %v2823_v20 = vpop.f32.mrb[32].mxu1 }
 0xb1c   :  { %v3061_v21 = vmul.f32 0.35355338, %v2823_v20  ;;  %v8302_v23 = vpop.f32.mrb[33].mxu1  ;;  %8311 = vmatmul.mubr.msk.f32.vlgmr.msra.gmra.mrb[28].mxu0 %vm432_vm15, %v2906_v17 }
 0xb1d   :  { %8320 = vmatprep.mubr.msk.f32.mxu0 %vm8945_vm14, %v8944_v29 }
 0xb1e   :  { %v3065_v25 = vadd.f32 %v3061_v21, %v9230_v13 }
 0xb1f   :  { %v2901_v27 = vpop.f32.mrb[34].mxu1 }
 0xb20   :  { %v3062_v30 = vmul.f32 0.35355338, %v2901_v27  ;;  %v8307_v31 = vpop.f32.mrb[35].mxu1  ;;  %v3069_v32 = vsel %vm432_vm15, %v3065_v25, -inf }
 0xb21   :  { %3070 = vmax.xlane.f32.xlu0 %v3069_v32 }
 0xb22   :  { %v3066_v33 = vadd.f32 %v3062_v30, %v9189_v28 }
 0xb23   :  { %v3057_v34 = vpop.f32.mrb[36].mxu1 }
 0xb24   :  { %v8317_v39 = vpop.f32.mrb[37].mxu1  ;;  %v3072_v40 = vsel %vm432_vm15, %v3066_v33, -inf  ;;  %v3064_v48 = vmul.f32 0.35355338, %v3057_v34 }
 0xb25   :  { %3073 = vmax.xlane.f32.xlu1 %v3072_v40 }
 0xb26   :  { %v3068_v52 = vadd.f32 %v3064_v48, %v9193_v35 }
 0xbae   :  { %v3071_v41 = vpop.xlane.xlu0 %3070 }
 0xbaf   :  { %v3081_v42 = vsub.f32 %v3065_v25, %v3071_v41 }
 0xbb1   :  { %v3085_v44 = vmul.f32 1.442695, %v3081_v42 }
 0xbb2   :  { %v3074_v24 = vpop.xlane.xlu1 %3073 }
 0xbb3   :  { %8805 = vpow2.f32 %v3085_v44  ;;  %v3082_v46 = vsub.f32 %v3066_v33, %v3074_v24  ;;  %v9507_v44 = vld [vmem:[%s10163_s9] sm:$0xff] }
 0xbb5   :  { %v3087_v43 = vmul.f32 1.442695, %v3082_v46 }
 0xbb7   :  { %8807 = vpow2.f32 %v3087_v43 }
 0xbbd   :  { %v8806_v18 = vpop.eup %8805 }
 0xbbe   :  { %v3093_v22 = vsel %vm432_vm15, %v8806_v18, 0.0 }
 0xbbf   :  { %3094 = vadd.xlane.f32.xlu1 %v3093_v22 }
 0xbc1   :  { %v8808_v53 = vpop.eup %8807 }
 0xbd0   :  { %3113 = vrot.lane.b32.xlu1 %v9139_v4, %s8957_s17  ;;  %v3078_v4 = vsel %vm432_vm15, %v3068_v52, -inf }
 0xbd4   :  { %3265 = vrot.lane.b32.xlu1 %v9149_v8, %s8957_s17  ;;  %v3096_v8 = vsel %vm432_vm15, %v8808_v53, 0.0 }
 0xbef   :  { %v2979_v47 = vpop.f32.mrb[28].mxu0 }
 0xbf0   :  { %v3063_v26 = vmul.f32 0.35355338, %v2979_v47  ;;  %v8312_v45 = vpop.f32.mrb[29].mxu0 }
 0xbf2   :  { %v3067_v50 = vadd.f32 %v3063_v26, %v9207_v49 }
 0xbf4   :  { %v3075_v51 = vsel %vm432_vm15, %v3067_v50, -inf }
 0xbf5   :  { %3076 = vmax.xlane.f32.xlu0 %v3075_v51 }
 0xbf9   :  { %3079 = vmax.xlane.f32.xlu0 %v3078_v4 }
 0xbfd   :  { %3097 = vadd.xlane.f32.xlu0 %v3096_v8 }
 0xc4c   :  { %v3095_v55 = vpop.xlane.xlu1 %3094 }
 0xc4d   :  { %8809 = vrcp.f32 %v3095_v55 }
 0xc50   :  { %v3114_v57 = vpop.permute.xlu1 %3113 }
 0xc51   :  { %8319 = vmatpush3.msra.mxu0 %v3114_v57 }
 0xc52   :  { %8328 = vmatprep.subr.mxu0 %v8944_v29 }
 0xc54   :  { %v3266_v61 = vpop.permute.xlu1 %3265 }
 0xc57   :  { %v8810_v58 = vpop.eup %8809 }
 0xc58   :  { %v3109_v60 = vmul.f32 %v8810_v58, %v8806_v18  ;;  %v3521_v18 = vrot.slane %v9507_v44, %v9075_v38 }
 0xc5a   :  { %8321 = vmatmul.mubr.msk.f32.vlgmr.msra.gmra.mrb[30].mxu0 %vm432_vm15, %v3109_v60 }
 0xc5b   :  { %8329 = vmatpush3.msra.mxu0 %v3266_v61  ;;  %8330 = vmatprep.mubr.msk.f32.mxu0 %vm8945_vm14, %v8944_v29 }
 0xc5c   :  { %8338 = vmatprep.subr.mxu0 %v323_v14 }
 0xc82   :  { %v3077_v63 = vpop.xlane.xlu0 %3076 }
 0xc83   :  { %v3083_v0 = vsub.f32 %v3067_v50, %v3077_v63 }
 0xc85   :  { %v3089_v1 = vmul.f32 1.442695, %v3083_v0 }
 0xc86   :  { %v3080_v3 = vpop.xlane.xlu0 %3079 }
 0xc87   :  { %8811 = vpow2.f32 %v3089_v1  ;;  %v3084_v5 = vsub.f32 %v3068_v52, %v3080_v3 }
 0xc89   :  { %v3091_v7 = vmul.f32 1.442695, %v3084_v5 }
 0xc8a   :  { %v3098_v15 = vpop.xlane.xlu0 %3097 }
 0xc8b   :  { %8813 = vpow2.f32 %v3091_v7 }
 0xc8c   :  { %8815 = vrcp.f32 %v3098_v15 }
 0xc91   :  { %v8812_v9 = vpop.eup %8811 }
 0xc92   :  { %v3099_v10 = vsel %vm432_vm15, %v8812_v9, 0.0 }
 0xc93   :  { %3100 = vadd.xlane.f32.xlu1 %v3099_v10 }
 0xc95   :  { %v8814_v11 = vpop.eup %8813 }
 0xc96   :  { %v3102_v12 = vsel %vm432_vm15, %v8814_v11, 0.0  ;;  %v8816_v20 = vpop.eup %8815 }
 0xc97   :  { %3103 = vadd.xlane.f32.xlu0 %v3102_v12  ;;  %v3110_v23 = vmul.f32 %v8816_v20, %v8808_v53  ;;  %v3599_v20 = vld [vmem:[%s10166_s7 + $0x8] sm:$0xff] }
 0xca4   :  { %3341 = vrot.lane.b32.xlu1 %v9145_v6, %s8957_s17 }
 0xcad   :  { %3189 = vrot.lane.b32.xlu0 %v9137_v2, %s8957_s17 }
 0xd20   :  { %v3101_v16 = vpop.xlane.xlu1 %3100 }
 0xd21   :  { %8817 = vrcp.f32 %v3101_v16 }
 0xd24   :  { %v3104_v17 = vpop.xlane.xlu0 %3103  ;;  %v3342_v25 = vpop.permute.xlu1 %3341 }
 0xd25   :  { %8819 = vrcp.f32 %v3104_v17  ;;  %v3598_v17 = vld [vmem:[%s10166_s7] sm:$0xff] }
 0xd28   :  { %v3190_v21 = vpop.permute.xlu0 %3189 }
 0xd29   :  { %8324 = vmatpush3.msra.mxu1 %v3190_v21  ;;  %v8648_v21 = vpack.c.bf16 %v3599_v20, %v3598_v17 }
 0xd2a   :  { %8326 = vmatmul.mubr.msk.f32.vlgmr.msra.gmra.mrb[38].mxu1 %vm432_vm15, %v3110_v23  ;;  %8333 = vmatprep.subr.mxu1 %v8944_v29  ;;  %v3600_v23 = vld [vmem:[%s10166_s7 + $0x10] sm:$0xff] }
 0xd2b   :  { %v8818_v2 = vpop.eup %8817  ;;  %8334 = vmatpush3.msra.mxu1 %v3342_v25  ;;  %8335 = vmatprep.mubr.msk.f32.mxu1 %vm8945_vm14, %v8944_v29  ;;  %v3601_v25 = vld [vmem:[%s10166_s7 + $0x18] sm:$0xff] }
 0xd2c   :  { %v3111_v6 = vmul.f32 %v8818_v2, %v8812_v9  ;;  %8649 = vmatprep.subr.bf16.mxu1 %v8648_v21  ;;  %v8652_v2 = vpack.c.bf16 %v3601_v25, %v3600_v23 }
 0xd2d   :  { %v3185_v27 = vpop.f32.mrb[30].mxu0 }
 0xd2e   :  { %v8322_v30 = vpop.f32.mrb[31].mxu0  ;;  %8331 = vmatmul.mubr.msk.f32.vlgmr.msra.gmra.mrb[32].mxu0 %vm432_vm15, %v3111_v6 }
 0xd2f   :  { %v8820_v31 = vpop.eup %8819  ;;  %8340 = vmatprep.mubr.msk.f32.mxu0 %vm432_vm15, %v3185_v27  ;;  %8339 = vmatpush3.msra.mxu0 %v323_v14 }
 0xd30   :  { %v3112_v32 = vmul.f32 %v8820_v31, %v8814_v11 }
 0xd32   :  { %8336 = vmatmul.mubr.msk.f32.vlgmr.msra.gmra.mrb[40].mxu1 %vm432_vm15, %v3112_v32 }
 0xd33   :  { %8651 = vmatpush3.bf16.msra.mxu1 %v8648_v21 }
 0xd34   :  { %8653 = vmatprep.subr.bf16.mxu1 %v8652_v2 }
 0xd37   :  { %8655 = vmatpush3.bf16.msra.mxu1 %v8652_v2 }
 0xdfd   :  { %v3261_v33 = vpop.f32.mrb[38].mxu1 }
 0xdfe   :  { %v8327_v34 = vpop.f32.mrb[39].mxu1  ;;  %8341 = vmatmul.mubr.msk.f32.vlgmr.msra.gmra.mrb[20].mxu0 %vm432_vm15, %v3261_v33 }
 0xe01   :  { %v3337_v39 = vpop.f32.mrb[32].mxu0 }
 0xe02   :  { %v8332_v40 = vpop.f32.mrb[33].mxu0  ;;  %8343 = vmatprep.mubr.msk.f32.mxu0 %vm432_vm15, %v3337_v39 }
 0xe03   :  { %v3584_v40 = vsub.s32 2, %v9069_v36 }
 0xe05   :  { %v3413_v41 = vpop.f32.mrb[40].mxu1 }
 0xe06   :  { %v8337_v42 = vpop.f32.mrb[41].mxu1  ;;  %8344 = vmatmul.mubr.msk.f32.gmra.mrb[22].mxu0 %vm432_vm15, %v3413_v41 }
 0xed1   :  { %v8342_v22 = vpop.f32.mrb[20].mxu0 }
 0xed2   :  { %v3523_v24 = vadd.f32 %v8342_v22, %v3521_v18  ;;  %v3495_v46 = vpop.f32.mrb[21].mxu0 }
 0xed3   :  { %v3522_v43 = vadd.f32 %v3521_v18, %v3495_v46 }
 0xed4   :  { %v3527_v47 = vadd.f32 %v3523_v24, %v9115_v56  ;;  %v3585_v24 = vrot.slane %v9507_v44, %v3584_v40 }
 0xed5   :  { %v3526_v48 = vadd.f32 %v3522_v43, %v9113_v54 }
 0xed6   :  { %v3533_v26 = vsel %vm219_vm13, %v3527_v47, 0.0 }
 0xed7   :  { %3534 = vadd.xlane.f32.xlu1 %v3533_v26  ;;  %v3530_v45 = vsel %vm219_vm13, %v3526_v48, 0.0 }
 0xed8   :  { %3531 = vadd.xlane.f32.xlu0 %v3530_v45 }
 0xed9   :  { %v8345_v50 = vpop.f32.mrb[22].mxu0 }
 0xeda   :  { %v3505_v51 = vpop.f32.mrb[23].mxu0  ;;  %v3525_v52 = vadd.f32 %v8345_v50, %v3521_v18 }
 0xedb   :  { %v3524_v4 = vadd.f32 %v3521_v18, %v3505_v51  ;;  %v3592_v18 = vsub.s32 3, %v9069_v36 }
 0xedc   :  { %v3529_v55 = vadd.f32 %v3525_v52, %v9125_v62 }
 0xedd   :  { %v3528_v53 = vadd.f32 %v3524_v4, %v9121_v59  ;;  %v3593_v45 = vrot.slane %v9507_v44, %v3592_v18 }
 0xede   :  { %v3539_v56 = vsel %vm219_vm13, %v3529_v55, 0.0 }
 0xedf   :  { %v3536_v8 = vsel %vm219_vm13, %v3528_v53, 0.0 }
 0xee0   :  { %3537 = vadd.xlane.f32.xlu0 %v3536_v8 }
 0xee4   :  { %3540 = vadd.xlane.f32.xlu0 %v3539_v56 }
 0xf64   :  { %v3535_v54 = vpop.xlane.xlu1 %3534 }
 0xf65   :  { %v3543_v57 = vmul.f32 0.03125, %v3535_v54  ;;  %v3532_v58 = vpop.xlane.xlu0 %3531 }
 0xf66   :  { %v3542_v60 = vmul.f32 0.03125, %v3532_v58 }
 0xf67   :  { %v3547_v61 = vsub.f32 %v3527_v47, %v3543_v57 }
 0xf68   :  { %v3546_v63 = vsub.f32 %v3526_v48, %v3542_v60 }
 0xf69   :  { %v3551_v0 = vmul.f32 %v3547_v61, %v3547_v61 }
 0xf6a   :  { %v3550_v1 = vmul.f32 %v3546_v63, %v3546_v63 }
 0xf6b   :  { %v3557_v3 = vsel %vm219_vm13, %v3551_v0, 0.0 }
 0xf6c   :  { %3558 = vadd.xlane.f32.xlu0 %v3557_v3  ;;  %v3554_v59 = vsel %vm219_vm13, %v3550_v1, 0.0  ;;  %v3741_v1 = vld [vmem:[%s10167_s8 + $0x10] sm:$0xff]  ;;  %v3742_v3 = vld [vmem:[%s10167_s8 + $0x18] sm:$0xff] }
 0xf6d   :  { %3555 = vadd.xlane.f32.xlu1 %v3554_v59  ;;  %v3538_v5 = vpop.xlane.xlu0 %3537  ;;  %v8660_v59 = vpack.c.bf16 %v3742_v3, %v3741_v1 }
 0xf6e   :  { %v3544_v62 = vmul.f32 0.03125, %v3538_v5  ;;  %v3743_v5 = vld [vmem:[%s10167_s8 + $0x20] sm:$0xff] }
 0xf70   :  { %v3548_v7 = vsub.f32 %v3528_v53, %v3544_v62  ;;  %v3744_v62 = vld [vmem:[%s10167_s8 + $0x28] sm:$0xff] }
 0xf71   :  { %v3541_v9 = vpop.xlane.xlu0 %3540 }
 0xf72   :  { %v3545_v10 = vmul.f32 0.03125, %v3541_v9  ;;  %v3552_v11 = vmul.f32 %v3548_v7, %v3548_v7  ;;  %v3745_v9 = vld [vmem:[%s10167_s8 + $0x30] sm:$0xff] }
 0xf74   :  { %v3549_v12 = vsub.f32 %v3529_v55, %v3545_v10  ;;  %v3560_v14 = vsel %vm219_vm13, %v3552_v11, 0.0  ;;  %v3746_v10 = vld [vmem:[%s10167_s8 + $0x38] sm:$0xff] }
 0xf75   :  { %3561 = vadd.xlane.f32.xlu1 %v3560_v14  ;;  %v8668_v11 = vpack.c.bf16 %v3746_v10, %v3745_v9  ;;  %v3749_v10 = vsub.s32 5, %v9069_v36 }
 0xf76   :  { %v3553_v15 = vmul.f32 %v3549_v12, %v3549_v12 }
 0xf78   :  { %v3563_v16 = vsel %vm219_vm13, %v3553_v15, 0.0 }
 0xf79   :  { %3564 = vadd.xlane.f32.xlu0 %v3563_v16 }
 0xff9   :  { %v3559_v6 = vpop.xlane.xlu0 %3558 }
 0xffa   :  { %v3567_v27 = vmul.f32 0.03125, %v3559_v6  ;;  %v3556_v30 = vpop.xlane.xlu1 %3555 }
 0xffb   :  { %v3566_v31 = vmul.f32 0.03125, %v3556_v30 }
 0xffc   :  { %v3571_v32 = vadd.f32 1e-12, %v3567_v27 }
 0xffd   :  { %v3570_v33 = vadd.f32 1e-12, %v3566_v31 }
 0xffe   :  { %8821 = vrsqrt.f32 %v3571_v32 }
 0xfff   :  { %8823 = vrsqrt.f32 %v3570_v33 }
0x1002   :  { %v3562_v34 = vpop.xlane.xlu1 %3561 }
0x1003   :  { %v3568_v39 = vmul.f32 0.03125, %v3562_v34 }
0x1005   :  { %v3572_v41 = vadd.f32 1e-12, %v3568_v39 }
0x1006   :  { %v3565_v42 = vpop.xlane.xlu0 %3564 }
0x1007   :  { %8825 = vrsqrt.f32 %v3572_v41  ;;  %v3569_v22 = vmul.f32 0.03125, %v3565_v42 }
0x1008   :  { %v8822_v46 = vpop.eup %8821 }
0x1009   :  { %v8824_v43 = vpop.eup %8823  ;;  %v3579_v47 = vmul.f32 %v8822_v46, %v3547_v61  ;;  %v3573_v48 = vadd.f32 1e-12, %v3569_v22  ;;  %v3739_v61 = vld [vmem:[%s10167_s8] sm:$0xff] }
0x100a   :  { %v3578_v26 = vmul.f32 %v8824_v43, %v3546_v63  ;;  %v3740_v63 = vld [vmem:[%s10167_s8 + $0x8] sm:$0xff] }
0x100b   :  { %8827 = vrsqrt.f32 %v3573_v48  ;;  %v3587_v50 = vmul.f32 %v3585_v24, %v3579_v47  ;;  %v8656_v0 = vpack.c.bf16 %v3740_v63, %v3739_v61 }
0x100c   :  { %v3586_v51 = vmul.f32 %v3585_v24, %v3578_v26 }
0x100d   :  { %v9545_v4 = vadd.f32 %v3593_v45, %v3587_v50  ;;  %8657 = vmatprep.subr.bf16.mxu0 %v8656_v0 }
0x100e   :  { %v9543_v52 = vadd.f32 %v3593_v45, %v3586_v51  ;;  %8659 = vmatpush3.bf16.msra.mxu0 %v8656_v0 }
0x100f   :  { %8661 = vmatprep.subr.bf16.mxu0 %v8660_v59 }
0x1010   :  { %8354 = vmatprep.mubr.msk.f32.mxu1 %vm219_vm13, %v9543_v52 }
0x1011   :  { %v8826_v53 = vpop.eup %8825  ;;  %8355 = vmatmul.mubr.msk.f32.vlgmr.msra.gmra.mrb[42].mxu1 %vm219_vm13, %v9545_v4 }
0x1012   :  { %v3580_v8 = vmul.f32 %v8826_v53, %v3548_v7  ;;  %8663 = vmatpush3.bf16.msra.mxu0 %v8660_v59  ;;  %v8664_v7 = vpack.c.bf16 %v3744_v62, %v3743_v5 }
0x1014   :  { %v3588_v55 = vmul.f32 %v3585_v24, %v3580_v8  ;;  %8665 = vmatprep.subr.bf16.mxu0 %v8664_v7 }
0x1015   :  { %v8828_v56 = vpop.eup %8827 }
0x1016   :  { %v9551_v54 = vadd.f32 %v3593_v45, %v3588_v55  ;;  %v3581_v57 = vmul.f32 %v8828_v56, %v3549_v12  ;;  %8667 = vmatpush3.bf16.msra.mxu0 %v8664_v7  ;;  %v3604_v12 = vsub.s32 4, %v9069_v36 }
0x1017   :  { %8669 = vmatprep.subr.bf16.mxu0 %v8668_v11 }
0x1018   :  { %8357 = vmatprep.mubr.msk.f32.mxu1 %vm219_vm13, %v9551_v54  ;;  %v3589_v58 = vmul.f32 %v3585_v24, %v3581_v57  ;;  %v3605_v14 = vrot.slane %v9507_v44, %v3604_v12 }
0x101a   :  { %v9555_v60 = vadd.f32 %v3593_v45, %v3589_v58  ;;  %8671 = vmatpush3.bf16.msra.mxu0 %v8668_v11  ;;  %v3750_v11 = vrot.slane %v9507_v44, %v3749_v10 }
0x101b   :  { %8401 = vmatprep.subr.mxu0 %v8944_v29 }
0x101c   :  { %8358 = vmatmul.mubr.msk.f32.gmra.mrb[44].mxu1 %vm219_vm13, %v9555_v60 }
0x10e4   :  { %v8356_v15 = vpop.f32.mrb[42].mxu1 }
0x10e5   :  { %v3690_v16 = vadd.f32 %v8356_v15, %v3605_v14  ;;  %v3684_v17 = vpop.f32.mrb[43].mxu1 }
0x10e6   :  { %v3685_v20 = vadd.f32 %v3684_v17, %v3605_v14 }
0x10e7   :  { %v3708_v21 = vmul.f32 0.044715, %v3690_v16  ;;  %v3704_v58 = vmul.f32 0.5, %v3690_v16 }
0x10e8   :  { %v3707_v23 = vmul.f32 0.044715, %v3685_v20  ;;  %v3703_v56 = vmul.f32 0.5, %v3685_v20 }
0x10e9   :  { %v3712_v25 = vmul.f32 %v3708_v21, %v3690_v16 }
0x10ea   :  { %v3711_v2 = vmul.f32 %v3707_v23, %v3685_v20 }
0x10eb   :  { %v3716_v6 = vmul.f32 %v3712_v25, %v3690_v16 }
0x10ec   :  { %v3715_v27 = vmul.f32 %v3711_v2, %v3685_v20 }
0x10ed   :  { %v3720_v30 = vadd.f32 %v3716_v6, %v3690_v16 }
0x10ee   :  { %v3719_v31 = vadd.f32 %v3715_v27, %v3685_v20 }
0x10ef   :  { %v3724_v32 = vmul.f32 0.7978846, %v3720_v30  ;;  %v8359_v33 = vpop.f32.mrb[44].mxu1 }
0x10f0   :  { %v3700_v34 = vadd.f32 %v8359_v33, %v3605_v14  ;;  %v3694_v39 = vpop.f32.mrb[45].mxu1  ;;  %v3723_v41 = vmul.f32 0.7978846, %v3719_v31 }
0x10f1   :  { %8829 = vtanh.f32 %v3724_v32  ;;  %v3695_v42 = vadd.f32 %v3694_v39, %v3605_v14 }
0x10f2   :  { %v3710_v22 = vmul.f32 0.044715, %v3700_v34  ;;  %8831 = vtanh.f32 %v3723_v41  ;;  %v3706_v62 = vmul.f32 0.5, %v3700_v34 }
0x10f3   :  { %v3709_v24 = vmul.f32 0.044715, %v3695_v42  ;;  %v3705_v59 = vmul.f32 0.5, %v3695_v42 }
0x10f4   :  { %v3714_v46 = vmul.f32 %v3710_v22, %v3700_v34 }
0x10f5   :  { %v3713_v43 = vmul.f32 %v3709_v24, %v3695_v42 }
0x10f6   :  { %v3718_v47 = vmul.f32 %v3714_v46, %v3700_v34 }
0x10f7   :  { %v3717_v48 = vmul.f32 %v3713_v43, %v3695_v42 }
0x10f8   :  { %v3722_v26 = vadd.f32 %v3718_v47, %v3700_v34 }
0x10f9   :  { %v3721_v45 = vadd.f32 %v3717_v48, %v3695_v42 }
0x10fa   :  { %v3726_v50 = vmul.f32 0.7978846, %v3722_v26 }
0x10fb   :  { %v8830_v51 = vpop.eup %8829  ;;  %v3725_v53 = vmul.f32 0.7978846, %v3721_v45 }
0x10fc   :  { %v8832_v8 = vpop.eup %8831  ;;  %v3732_v55 = vadd.f32 1.0, %v8830_v51  ;;  %8833 = vtanh.f32 %v3726_v50 }
0x10fd   :  { %v3731_v57 = vadd.f32 1.0, %v8832_v8  ;;  %8835 = vtanh.f32 %v3725_v53 }
0x10fe   :  { %v3736_v63 = vmul.f32 %v3732_v55, %v3704_v58 }
0x10ff   :  { %v3735_v61 = vmul.f32 %v3731_v57, %v3703_v56  ;;  %v7786_v56 = vld [vmem:[%s10162_s5 + $0x20] sm:$0xff]  ;;  %v7787_v57 = vld [vmem:[%s10162_s5 + $0x28] sm:$0xff] }
0x1100   :  { %v8672_v58 = vpack.c.bf16 %v7787_v57, %v7786_v56 }
0x1101   :  { %8376 = vmatprep.mubr.msk.f32.mxu0 %vm115_vm4, %v3735_v61  ;;  %v7788_v61 = vld [vmem:[%s10162_s5 + $0x30] sm:$0xff] }
0x1102   :  { %8377 = vmatmul.mubr.msk.f32.vlgmr.msra.gmra.mrb[34].mxu0 %vm115_vm4, %v3736_v63  ;;  %8673 = vmatprep.subr.bf16.mxu1 %v8672_v58  ;;  %v7789_v63 = vld [vmem:[%s10162_s5 + $0x38] sm:$0xff] }
0x1103   :  { %8675 = vmatpush3.bf16.msra.mxu1 %v8672_v58 }
0x1106   :  { %v8834_v0 = vpop.eup %8833 }
0x1107   :  { %v8836_v1 = vpop.eup %8835  ;;  %v3734_v3 = vadd.f32 1.0, %v8834_v0  ;;  %v8676_v0 = vpack.c.bf16 %v7789_v63, %v7788_v61 }
0x1108   :  { %v3733_v5 = vadd.f32 1.0, %v8836_v1 }
0x1109   :  { %v3738_v9 = vmul.f32 %v3734_v3, %v3706_v62  ;;  %8677 = vmatprep.subr.bf16.mxu1 %v8676_v0 }
0x110a   :  { %v3737_v7 = vmul.f32 %v3733_v5, %v3705_v59  ;;  %8679 = vmatpush3.bf16.msra.mxu1 %v8676_v0 }
0x110b   :  { %8396 = vmatprep.subr.mxu1 %v8944_v29 }
0x110c   :  { %8379 = vmatprep.mubr.msk.f32.mxu0 %vm115_vm4, %v3737_v7 }
0x110d   :  { %8380 = vmatmul.mubr.msk.f32.gmra.mrb[36].mxu0 %vm115_vm4, %v3738_v9  ;;  %v3906_v9 = vsub.s32 6, %v9069_v36 }
0x110e   :  { %8403 = vmatprep.mubr.msk.f32.mxu0 %vm8945_vm14, %v8944_v29 }
0x11d5   :  { %v8378_v14 = vpop.f32.mrb[34].mxu0 }
0x11d6   :  { %v3835_v15 = vadd.f32 %v8378_v14, %v3750_v11  ;;  %v3829_v16 = vpop.f32.mrb[35].mxu0 }
0x11d7   :  { %v3830_v17 = vadd.f32 %v3829_v16, %v3750_v11 }
0x11d8   :  { %v3849_v20 = vadd.f32 %v3835_v15, %v9545_v4 }
0x11d9   :  { %v3848_v21 = vadd.f32 %v3830_v17, %v9543_v52  ;;  %v3914_v17 = vsub.s32 7, %v9069_v36 }
0x11da   :  { %v3855_v23 = vsel %vm219_vm13, %v3849_v20, 0.0 }
0x11db   :  { %3856 = vadd.xlane.f32.xlu0 %v3855_v23  ;;  %v3852_v25 = vsel %vm219_vm13, %v3848_v21, 0.0 }
0x11dc   :  { %3853 = vadd.xlane.f32.xlu1 %v3852_v25 }
0x11e0   :  { %v8381_v2 = vpop.f32.mrb[36].mxu0 }
0x11e1   :  { %v3845_v6 = vadd.f32 %v8381_v2, %v3750_v11  ;;  %v3839_v27 = vpop.f32.mrb[37].mxu0 }
0x11e2   :  { %v3840_v30 = vadd.f32 %v3839_v27, %v3750_v11 }
0x11e3   :  { %v3851_v31 = vadd.f32 %v3845_v6, %v9555_v60 }
0x11e4   :  { %v3850_v32 = vadd.f32 %v3840_v30, %v9551_v54  ;;  %v3915_v30 = vrot.slane %v9507_v44, %v3914_v17 }
0x11e5   :  { %v3861_v33 = vsel %vm219_vm13, %v3851_v31, 0.0 }
0x11e6   :  { %3862 = vadd.xlane.f32.xlu0 %v3861_v33  ;;  %v3858_v4 = vsel %vm219_vm13, %v3850_v32, 0.0 }
0x11e7   :  { %3859 = vadd.xlane.f32.xlu1 %v3858_v4 }
0x1268   :  { %v3857_v52 = vpop.xlane.xlu0 %3856 }
0x1269   :  { %v3865_v34 = vmul.f32 0.03125, %v3857_v52  ;;  %v3854_v39 = vpop.xlane.xlu1 %3853 }
0x126a   :  { %v3864_v41 = vmul.f32 0.03125, %v3854_v39 }
0x126b   :  { %v3869_v42 = vsub.f32 %v3849_v20, %v3865_v34  ;;  %v3907_v20 = vrot.slane %v9507_v44, %v3906_v9 }
0x126c   :  { %v3868_v22 = vsub.f32 %v3848_v21, %v3864_v41 }
0x126d   :  { %v3873_v24 = vmul.f32 %v3869_v42, %v3869_v42 }
0x126e   :  { %v3872_v46 = vmul.f32 %v3868_v22, %v3868_v22 }
0x126f   :  { %v3879_v43 = vsel %vm219_vm13, %v3873_v24, 0.0 }
0x1270   :  { %3880 = vadd.xlane.f32.xlu0 %v3879_v43  ;;  %v3876_v60 = vsel %vm219_vm13, %v3872_v46, 0.0  ;;  %v7781_v46 = vld [vmem:[%s10163_s9 + $0x8] sm:$0xff] }
0x1271   :  { %3877 = vadd.xlane.f32.xlu1 %v3876_v60  ;;  %v3935_v43 = vrot.slane %v7781_v46, %v9072_v37 }
0x1273   :  { %v3863_v54 = vpop.xlane.xlu0 %3862 }
0x1274   :  { %v3867_v47 = vmul.f32 0.03125, %v3863_v54  ;;  %v3860_v48 = vpop.xlane.xlu1 %3859 }
0x1275   :  { %v3866_v26 = vmul.f32 0.03125, %v3860_v48 }
0x1276   :  { %v3871_v45 = vsub.f32 %v3851_v31, %v3867_v47 }
0x1277   :  { %v3870_v50 = vsub.f32 %v3850_v32, %v3866_v26 }
0x1278   :  { %v3875_v51 = vmul.f32 %v3871_v45, %v3871_v45 }
0x1279   :  { %v3874_v53 = vmul.f32 %v3870_v50, %v3870_v50 }
0x127a   :  { %v3885_v8 = vsel %vm219_vm13, %v3875_v51, 0.0 }
0x127b   :  { %3886 = vadd.xlane.f32.xlu0 %v3885_v8  ;;  %v3882_v55 = vsel %vm219_vm13, %v3874_v53, 0.0 }
0x127c   :  { %3883 = vadd.xlane.f32.xlu1 %v3882_v55 }
0x12fd   :  { %v3881_v1 = vpop.xlane.xlu0 %3880 }
0x12fe   :  { %v3889_v3 = vmul.f32 0.03125, %v3881_v1  ;;  %v3878_v59 = vpop.xlane.xlu1 %3877 }
0x12ff   :  { %v3888_v5 = vmul.f32 0.03125, %v3878_v59 }
0x1300   :  { %v3893_v62 = vadd.f32 1e-12, %v3889_v3 }
0x1301   :  { %v3892_v7 = vadd.f32 1e-12, %v3888_v5 }
0x1302   :  { %8837 = vrsqrt.f32 %v3893_v62 }
0x1303   :  { %8839 = vrsqrt.f32 %v3892_v7 }
0x1308   :  { %v3887_v11 = vpop.xlane.xlu0 %3886 }
0x1309   :  { %v3891_v14 = vmul.f32 0.03125, %v3887_v11  ;;  %v3884_v15 = vpop.xlane.xlu1 %3883 }
0x130a   :  { %v3890_v16 = vmul.f32 0.03125, %v3884_v15 }
0x130b   :  { %v3895_v21 = vadd.f32 1e-12, %v3891_v14 }
0x130c   :  { %v8838_v23 = vpop.eup %8837  ;;  %v3894_v25 = vadd.f32 1e-12, %v3890_v16 }
0x130d   :  { %v8840_v2 = vpop.eup %8839  ;;  %v3901_v6 = vmul.f32 %v8838_v23, %v3869_v42  ;;  %8841 = vrsqrt.f32 %v3895_v21 }
0x130e   :  { %8843 = vrsqrt.f32 %v3894_v25  ;;  %v3900_v27 = vmul.f32 %v8840_v2, %v3868_v22 }
0x130f   :  { %v3909_v31 = vmul.f32 %v3907_v20, %v3901_v6 }
0x1310   :  { %v3908_v32 = vmul.f32 %v3907_v20, %v3900_v27 }
0x1311   :  { %v9633_v4 = vadd.f32 %v3915_v30, %v3909_v31 }
0x1312   :  { %v9631_v33 = vadd.f32 %v3915_v30, %v3908_v32 }
0x1314   :  { %8390 = vmatprep.mubr.msk.f32.mxu1 %vm219_vm13, %v9631_v33 }
0x1315   :  { %8391 = vmatmul.mubr.msk.f32.vlgmr.msra.gmra.mrb[46].mxu1 %vm219_vm13, %v9633_v4 }
0x1317   :  { %v8842_v52 = vpop.eup %8841 }
0x1318   :  { %v8844_v34 = vpop.eup %8843  ;;  %v3903_v39 = vmul.f32 %v8842_v52, %v3871_v45 }
0x1319   :  { %v3902_v41 = vmul.f32 %v8844_v34, %v3870_v50 }
0x131a   :  { %v3911_v42 = vmul.f32 %v3907_v20, %v3903_v39 }
0x131b   :  { %v3910_v22 = vmul.f32 %v3907_v20, %v3902_v41 }
0x131c   :  { %v9641_v44 = vadd.f32 %v3915_v30, %v3911_v42 }
0x131d   :  { %v9639_v24 = vadd.f32 %v3915_v30, %v3910_v22 }
0x131f   :  { %8393 = vmatprep.mubr.msk.f32.mxu1 %vm219_vm13, %v9639_v24 }
0x1320   :  { %8394 = vmatmul.mubr.msk.f32.gmra.mrb[48].mxu1 %vm219_vm13, %v9641_v44 }
0x1321   :  { %8398 = vmatprep.mubr.msk.f32.mxu1 %vm8945_vm14, %v8944_v29 }
0x13e8   :  { %v8392_v60 = vpop.f32.mrb[46].mxu1 }
0x13e9   :  { %v9653_v54 = vadd.f32 %v8392_v60, %v3935_v43  ;;  %v4014_v47 = vpop.f32.mrb[47].mxu1 }
0x13ea   :  { %v9657_v48 = vadd.f32 %v4014_v47, %v3935_v43 }
0x13eb   :  { %4111 = vrot.lane.b32.xlu1 %v9653_v54, %s8946_s1 }
0x13ef   :  { %4034 = vrot.lane.b32.xlu1 %v9657_v48, %s8946_s1 }
0x13f3   :  { %v8395_v26 = vpop.f32.mrb[48].mxu1 }
0x13f4   :  { %v9661_v45 = vadd.f32 %v8395_v26, %v3935_v43  ;;  %v4024_v50 = vpop.f32.mrb[49].mxu1 }
0x13f5   :  { %v9663_v51 = vadd.f32 %v4024_v50, %v3935_v43 }
0x13f6   :  { %4265 = vrot.lane.b32.xlu0 %v9661_v45, %s8946_s1 }
0x13f7   :  { %4188 = vrot.lane.b32.xlu1 %v9663_v51, %s8946_s1 }
0x145d   :  { %v4112_v37 = vpop.permute.xlu1 %4111 }
0x145e   :  { %8402 = vmatpush3.xpose.msk.msra.mxu0 %vm432_vm15, %v4112_v37 }
0x145f   :  { %8411 = vmatprep.subr.mxu0 %v8944_v29 }
0x1461   :  { %8404 = vmatmul.mubr.msk.f32.vlgmr.msra.gmra.mrb[38].mxu0 %vm432_vm15, %v9653_v54  ;;  %v4035_v53 = vpop.permute.xlu1 %4034 }
0x1462   :  { %8397 = vmatpush3.xpose.msk.msra.mxu1 %vm432_vm15, %v4035_v53  ;;  %8413 = vmatprep.mubr.msk.f32.mxu0 %vm8945_vm14, %v8944_v29 }
0x1463   :  { %8406 = vmatprep.subr.mxu1 %v8944_v29 }
0x1465   :  { %8399 = vmatmul.mubr.msk.f32.vlgmr.msra.gmra.mrb[50].mxu1 %vm432_vm15, %v9657_v48 }
0x1466   :  { %8408 = vmatprep.mubr.msk.f32.mxu1 %vm8945_vm14, %v8944_v29 }
0x1468   :  { %v4266_v8 = vpop.permute.xlu0 %4265 }
0x1469   :  { %8412 = vmatpush3.xpose.msk.msra.mxu0 %vm432_vm15, %v4266_v8  ;;  %v4189_v55 = vpop.permute.xlu1 %4188 }
0x146a   :  { %8407 = vmatpush3.xpose.msk.msra.mxu1 %vm432_vm15, %v4189_v55  ;;  %8421 = vmatprep.subr.mxu0 %v8944_v29 }
0x146b   :  { %8416 = vmatprep.subr.mxu1 %v8944_v29 }
0x146c   :  { %8414 = vmatmul.mubr.msk.f32.vlgmr.msra.gmra.mrb[40].mxu0 %vm432_vm15, %v9661_v45 }
0x146d   :  { %8409 = vmatmul.mubr.msk.f32.vlgmr.msra.gmra.mrb[52].mxu1 %vm432_vm15, %v9663_v51  ;;  %8423 = vmatprep.mubr.msk.f32.mxu0 %vm8945_vm14, %v8944_v29 }
0x146e   :  { %8418 = vmatprep.mubr.msk.f32.mxu1 %vm8945_vm14, %v8944_v29 }
0x1534   :  { %v4183_v56 = vpop.f32.mrb[38].mxu0 }
0x1535   :  { %v4342_v57 = vmul.f32 0.35355338, %v4183_v56  ;;  %v8405_v58 = vpop.f32.mrb[39].mxu0 }
0x1537   :  { %v4346_v61 = vadd.f32 %v4342_v57, %v9189_v28 }
0x1538   :  { %v4106_v63 = vpop.f32.mrb[50].mxu1 }
0x1539   :  { %v8400_v0 = vpop.f32.mrb[51].mxu1  ;;  %v4352_v1 = vsel %vm432_vm15, %v4346_v61, -inf  ;;  %v4341_v22 = vmul.f32 0.35355338, %v4106_v63 }
0x153a   :  { %4353 = vmax.xlane.f32.xlu0 %v4352_v1 }
0x153b   :  { %v4345_v43 = vadd.f32 %v4341_v22, %v9230_v13 }
0x153d   :  { %v4349_v47 = vsel %vm432_vm15, %v4345_v43, -inf }
0x153f   :  { %v4337_v3 = vpop.f32.mrb[40].mxu0 }
0x1540   :  { %v4344_v59 = vmul.f32 0.35355338, %v4337_v3  ;;  %v4260_v5 = vpop.f32.mrb[52].mxu1  ;;  %v8415_v62 = vpop.f32.mrb[41].mxu0 }
0x1541   :  { %v8410_v7 = vpop.f32.mrb[53].mxu1  ;;  %v4343_v15 = vmul.f32 0.35355338, %v4260_v5 }
0x1542   :  { %v4348_v11 = vadd.f32 %v4344_v59, %v9193_v35 }
0x1543   :  { %v9706_v16 = vadd.f32 %v4343_v15, %v9207_v49 }
0x1544   :  { %v4358_v14 = vsel %vm432_vm15, %v4348_v11, -inf }
0x1545   :  { %4359 = vmax.xlane.f32.xlu1 %v4358_v14  ;;  %v4355_v20 = vsel %vm432_vm15, %v9706_v16, -inf }
0x1556   :  { %4469 = vrot.lane.b32.xlu1 %v9653_v54, %s8948_s3 }
0x155a   :  { %4777 = vrot.lane.b32.xlu1 %v9653_v54, %s8949_s24 }
0x155e   :  { %4775 = vrot.lane.b32.xlu1 %v9653_v54, %s8950_s25 }
0x1562   :  { %4931 = vrot.lane.b32.xlu1 %v9661_v45, %s8950_s25 }
0x1586   :  { %4356 = vmax.xlane.f32.xlu1 %v4355_v20 }
0x1597   :  { %4393 = vrot.lane.b32.xlu1 %v9657_v48, %s8948_s3 }
0x159b   :  { %4699 = vrot.lane.b32.xlu1 %v9657_v48, %s8949_s24 }
0x159f   :  { %4697 = vrot.lane.b32.xlu1 %v9657_v48, %s8950_s25 }
0x15a3   :  { %4853 = vrot.lane.b32.xlu1 %v9663_v51, %s8950_s25 }
0x15c7   :  { %v4354_v21 = vpop.xlane.xlu0 %4353 }
0x15c8   :  { %v4362_v23 = vsub.f32 %v4346_v61, %v4354_v21 }
0x15ca   :  { %v4367_v25 = vmul.f32 1.442695, %v4362_v23 }
0x15cc   :  { %8845 = vpow2.f32 %v4367_v25 }
0x15d2   :  { %v4360_v2 = vpop.xlane.xlu1 %4359 }
0x15d3   :  { %v4364_v6 = vsub.f32 %v4348_v11, %v4360_v2 }
0x15d5   :  { %v4371_v27 = vmul.f32 1.442695, %v4364_v6 }
0x15d6   :  { %v8846_v30 = vpop.eup %8845  ;;  %v4470_v31 = vpop.permute.xlu1 %4469 }
0x15d7   :  { %8847 = vpow2.f32 %v4371_v27  ;;  %8422 = vmatpush3.msra.mxu0 %v4470_v31  ;;  %v4376_v32 = vsel %vm432_vm15, %v8846_v30, 0.0 }
0x15d8   :  { %4377 = vadd.xlane.f32.xlu0 %v4376_v32  ;;  %8431 = vmatprep.subr.mxu0 %v8944_v29 }
0x15da   :  { %v4778_v39 = vpop.permute.xlu1 %4777 }
0x15de   :  { %v4776_v41 = vpop.permute.xlu1 %4775 }
0x15e1   :  { %v8848_v52 = vpop.eup %8847 }
0x15e2   :  { %v4382_v34 = vsel %vm432_vm15, %v8848_v52, 0.0  ;;  %v4932_v42 = vpop.permute.xlu1 %4931 }
0x15e3   :  { %4383 = vadd.xlane.f32.xlu0 %v4382_v34 }
0x15f9   :  { %4621 = vrot.lane.b32.xlu0 %v9661_v45, %s8948_s3 }
0x15fd   :  { %4933 = vrot.lane.b32.xlu0 %v9661_v45, %s8949_s24 }
0x1613   :  { %v4357_v46 = vpop.xlane.xlu1 %4356 }
0x1614   :  { %v4363_v58 = vsub.f32 %v9706_v16, %v4357_v46 }
0x1616   :  { %v4369_v0 = vmul.f32 1.442695, %v4363_v58 }
0x1617   :  { %v4394_v60 = vpop.permute.xlu1 %4393 }
0x1618   :  { %8417 = vmatpush3.msra.mxu1 %v4394_v60 }
0x1619   :  { %8426 = vmatprep.subr.mxu1 %v8944_v29 }
0x161b   :  { %v4700_v31 = vpop.permute.xlu1 %4699 }
0x161c   :  { %4350 = vmax.xlane.f32.xlu0 %v4349_v47 }
0x161f   :  { %v4698_v46 = vpop.permute.xlu1 %4697 }
0x1623   :  { %v4854_v47 = vpop.permute.xlu1 %4853 }
0x1665   :  { %v4378_v26 = vpop.xlane.xlu0 %4377 }
0x1666   :  { %8849 = vrcp.f32 %v4378_v26 }
0x1670   :  { %v8850_v50 = vpop.eup %8849  ;;  %v4384_v37 = vpop.xlane.xlu0 %4383 }
0x1671   :  { %v4390_v53 = vmul.f32 %v8850_v50, %v8846_v30  ;;  %8851 = vrcp.f32 %v4384_v37 }
0x1673   :  { %8424 = vmatmul.mubr.msk.f32.vlgmr.msra.gmra.mrb[42].mxu0 %vm432_vm15, %v4390_v53 }
0x1674   :  { %v4622_v8 = vpop.permute.xlu0 %4621  ;;  %8433 = vmatprep.mubr.msk.f32.mxu0 %vm8945_vm14, %v8944_v29 }
0x1675   :  { %8432 = vmatpush3.msra.mxu0 %v4622_v8 }
0x1676   :  { %8441 = vmatprep.subr.mxu0 %v8944_v29 }
0x1678   :  { %v4934_v57 = vpop.permute.xlu0 %4933 }
0x167b   :  { %v8852_v55 = vpop.eup %8851 }
0x167c   :  { %v4392_v56 = vmul.f32 %v8852_v55, %v8848_v52 }
0x167e   :  { %8434 = vmatmul.mubr.msk.f32.vlgmr.msra.gmra.mrb[44].mxu0 %vm432_vm15, %v4392_v56 }
0x167f   :  { %8442 = vmatpush3.xpose.msk.msra.mxu0 %vm432_vm15, %v4778_v39  ;;  %8443 = vmatprep.mubr.msk.f32.mxu0 %vm8945_vm14, %v8944_v29 }
0x1680   :  { %8451 = vmatprep.subr.mxu0 %v8944_v29 }
0x1682   :  { %8444 = vmatmul.mubr.msk.f32.vlgmr.msra.gmra.mrb[46].mxu0 %vm432_vm15, %v4776_v41 }
0x1683   :  { %8452 = vmatpush3.xpose.msk.msra.mxu0 %vm432_vm15, %v4934_v57  ;;  %8453 = vmatprep.mubr.msk.f32.mxu0 %vm8945_vm14, %v8944_v29 }
0x1684   :  { %8461 = vmatprep.subr.mxu0 %v8944_v29 }
0x1686   :  { %8454 = vmatmul.mubr.msk.f32.vlgmr.msra.gmra.mrb[48].mxu0 %vm432_vm15, %v4932_v42 }
0x1687   :  { %8463 = vmatprep.mubr.msk.f32.mxu0 %vm8945_vm14, %v8944_v29 }
0x16a9   :  { %v4351_v61 = vpop.xlane.xlu0 %4350 }
0x16aa   :  { %v4361_v63 = vsub.f32 %v4345_v43, %v4351_v61 }
0x16ac   :  { %v4365_v1 = vmul.f32 1.442695, %v4361_v63 }
0x16ae   :  { %8853 = vpow2.f32 %v4365_v1 }
0x16af   :  { %8855 = vpow2.f32 %v4369_v0 }
0x16b8   :  { %v8854_v3 = vpop.eup %8853 }
0x16b9   :  { %v4373_v59 = vsel %vm432_vm15, %v8854_v3, 0.0  ;;  %v8856_v5 = vpop.eup %8855 }
0x16ba   :  { %4374 = vadd.xlane.f32.xlu0 %v4373_v59  ;;  %v4379_v62 = vsel %vm432_vm15, %v8856_v5, 0.0 }
0x16be   :  { %4380 = vadd.xlane.f32.xlu0 %v4379_v62 }
0x16d4   :  { %4545 = vrot.lane.b32.xlu0 %v9663_v51, %s8948_s3 }
0x16d8   :  { %4855 = vrot.lane.b32.xlu0 %v9663_v51, %s8949_s24 }
0x1746   :  { %v9752_v7 = vpop.f32.mrb[42].mxu0 }
0x1747   :  { %v4375_v11 = vpop.xlane.xlu0 %4374  ;;  %v8425_v14 = vpop.f32.mrb[43].mxu0 }
0x1748   :  { %8857 = vrcp.f32 %v4375_v11 }
0x174b   :  { %v4381_v15 = vpop.xlane.xlu0 %4380 }
0x174c   :  { %8859 = vrcp.f32 %v4381_v15 }
0x174f   :  { %v4546_v25 = vpop.permute.xlu0 %4545 }
0x1751   :  { %v9754_v16 = vpop.f32.mrb[44].mxu0 }
0x1752   :  { %v8858_v20 = vpop.eup %8857  ;;  %v8435_v21 = vpop.f32.mrb[45].mxu0 }
0x1753   :  { %v4389_v23 = vmul.f32 %v8858_v20, %v8854_v3  ;;  %v4856_v60 = vpop.permute.xlu0 %4855 }
0x1755   :  { %8419 = vmatmul.mubr.msk.f32.vlgmr.msra.gmra.mrb[54].mxu1 %vm432_vm15, %v4389_v23  ;;  %v4849_v2 = vpop.f32.mrb[46].mxu0 }
0x1756   :  { %v8860_v6 = vpop.eup %8859  ;;  %8427 = vmatpush3.msra.mxu1 %v4546_v25  ;;  %v5010_v27 = vmul.f32 0.35355338, %v4849_v2  ;;  %v8445_v30 = vpop.f32.mrb[47].mxu0  ;;  %8428 = vmatprep.mubr.msk.f32.mxu1 %vm8945_vm14, %v8944_v29 }
0x1757   :  { %v4391_v32 = vmul.f32 %v8860_v6, %v8856_v5  ;;  %8436 = vmatprep.subr.mxu1 %v8944_v29 }
0x1758   :  { %v5014_v52 = vadd.f32 %v5010_v27, %v9189_v28 }
0x1759   :  { %8429 = vmatmul.mubr.msk.f32.vlgmr.msra.gmra.mrb[56].mxu1 %vm432_vm15, %v4391_v32  ;;  %v5005_v34 = vpop.f32.mrb[48].mxu0 }
0x175a   :  { %v5012_v39 = vmul.f32 0.35355338, %v5005_v34  ;;  %v8455_v41 = vpop.f32.mrb[49].mxu0  ;;  %v5020_v42 = vsel %vm432_vm15, %v5014_v52, -inf  ;;  %8438 = vmatprep.mubr.msk.f32.mxu1 %vm8945_vm14, %v8944_v29 }
0x175b   :  { %5021 = vmax.xlane.f32.xlu0 %v5020_v42 }
0x175c   :  { %v5016_v22 = vadd.f32 %v5012_v39, %v9193_v35 }
0x175d   :  { %8437 = vmatpush3.xpose.msk.msra.mxu1 %vm432_vm15, %v4700_v31 }
0x175e   :  { %v5026_v43 = vsel %vm432_vm15, %v5016_v22, -inf  ;;  %8446 = vmatprep.subr.mxu1 %v8944_v29 }
0x175f   :  { %5027 = vmax.xlane.f32.xlu1 %v5026_v43 }
0x1760   :  { %8439 = vmatmul.mubr.msk.f32.vlgmr.msra.gmra.mrb[58].mxu1 %vm432_vm15, %v4698_v46 }
0x1761   :  { %8447 = vmatpush3.xpose.msk.msra.mxu1 %vm432_vm15, %v4856_v60  ;;  %8448 = vmatprep.mubr.msk.f32.mxu1 %vm8945_vm14, %v8944_v29 }
0x1762   :  { %8456 = vmatprep.subr.mxu1 %v8944_v29 }
0x1764   :  { %8449 = vmatmul.mubr.msk.f32.vlgmr.msra.gmra.mrb[60].mxu1 %vm432_vm15, %v4854_v47 }
0x1765   :  { %8458 = vmatprep.mubr.msk.f32.mxu1 %vm8945_vm14, %v8944_v29 }
0x1770   :  { %5137 = vrot.lane.b32.xlu1 %v9653_v54, %s8951_s26 }
0x1774   :  { %5561 = vrot.lane.b32.xlu1 %v9657_v48, %s8952_s27 }
0x1778   :  { %5559 = vrot.lane.b32.xlu1 %v9657_v48, %s8953_s28 }
0x177c   :  { %5637 = vrot.lane.b32.xlu1 %v9653_v54, %s8953_s28 }
0x1780   :  { %5715 = vrot.lane.b32.xlu1 %v9663_v51, %s8953_s28 }
0x1784   :  { %5793 = vrot.lane.b32.xlu1 %v9661_v45, %s8953_s28 }
0x17e8   :  { %v5022_v26 = vpop.xlane.xlu0 %5021 }
0x17e9   :  { %v5030_v50 = vsub.f32 %v5014_v52, %v5022_v26 }
0x17eb   :  { %v5035_v37 = vmul.f32 1.442695, %v5030_v50 }
0x17ec   :  { %v5028_v53 = vpop.xlane.xlu1 %5027 }
0x17ed   :  { %8861 = vpow2.f32 %v5035_v37  ;;  %v5032_v8 = vsub.f32 %v5016_v22, %v5028_v53 }
0x17ef   :  { %v5039_v55 = vmul.f32 1.442695, %v5032_v8 }
0x17f0   :  { %v5138_v56 = vpop.permute.xlu1 %5137 }
0x17f1   :  { %8863 = vpow2.f32 %v5039_v55  ;;  %8462 = vmatpush3.msra.mxu0 %v5138_v56 }
0x17f2   :  { %8471 = vmatprep.subr.mxu0 %v8944_v29 }
0x17f4   :  { %v5562_v31 = vpop.permute.xlu1 %5561 }
0x17f7   :  { %v8862_v57 = vpop.eup %8861 }
0x17f8   :  { %v5044_v58 = vsel %vm432_vm15, %v8862_v57, 0.0  ;;  %v5560_v41 = vpop.permute.xlu1 %5559 }
0x17f9   :  { %5045 = vadd.xlane.f32.xlu0 %v5044_v58 }
0x17fb   :  { %v8864_v61 = vpop.eup %8863 }
0x17fc   :  { %v5050_v63 = vsel %vm432_vm15, %v8864_v61, 0.0  ;;  %v5638_v22 = vpop.permute.xlu1 %5637 }
0x17fd   :  { %5051 = vadd.xlane.f32.xlu0 %v5050_v63 }
0x1800   :  { %v5716_v43 = vpop.permute.xlu1 %5715 }
0x1804   :  { %v5794_v47 = vpop.permute.xlu1 %5793 }
0x1813   :  { %5289 = vrot.lane.b32.xlu0 %v9661_v45, %s8951_s26 }
0x1817   :  { %5639 = vrot.lane.b32.xlu0 %v9653_v54, %s8952_s27 }
0x181b   :  { %5717 = vrot.lane.b32.xlu0 %v9663_v51, %s8952_s27 }
0x181f   :  { %5795 = vrot.lane.b32.xlu0 %v9661_v45, %s8952_s27 }
0x1828   :  { %v9800_v0 = vpop.f32.mrb[54].mxu1 }
0x1829   :  { %v8420_v1 = vpop.f32.mrb[55].mxu1 }
0x182c   :  { %v9802_v3 = vpop.f32.mrb[56].mxu1 }
0x182d   :  { %v8430_v59 = vpop.f32.mrb[57].mxu1 }
0x1833   :  { %v4771_v5 = vpop.f32.mrb[58].mxu1 }
0x1834   :  { %v8440_v62 = vpop.f32.mrb[59].mxu1  ;;  %v5009_v11 = vmul.f32 0.35355338, %v4771_v5 }
0x1836   :  { %v5013_v21 = vadd.f32 %v5009_v11, %v9230_v13 }
0x1837   :  { %v4927_v14 = vpop.f32.mrb[60].mxu1 }
0x1838   :  { %v5011_v15 = vmul.f32 0.35355338, %v4927_v14  ;;  %v8450_v20 = vpop.f32.mrb[61].mxu1  ;;  %v5017_v2 = vsel %vm432_vm15, %v5013_v21, -inf }
0x183a   :  { %v5015_v23 = vadd.f32 %v5011_v15, %v9207_v49 }
0x183c   :  { %v5023_v25 = vsel %vm432_vm15, %v5015_v23, -inf }
0x183d   :  { %5024 = vmax.xlane.f32.xlu1 %v5023_v25 }
0x183e   :  { %5018 = vmax.xlane.f32.xlu0 %v5017_v2 }
0x184e   :  { %5061 = vrot.lane.b32.xlu1 %v9657_v48, %s8951_s26 }
0x1886   :  { %v5046_v6 = vpop.xlane.xlu0 %5045 }
0x1887   :  { %8865 = vrcp.f32 %v5046_v6 }
0x188a   :  { %v5052_v27 = vpop.xlane.xlu0 %5051 }
0x188b   :  { %8867 = vrcp.f32 %v5052_v27 }
0x188e   :  { %v5290_v52 = vpop.permute.xlu0 %5289 }
0x1891   :  { %v8866_v30 = vpop.eup %8865 }
0x1892   :  { %v5058_v32 = vmul.f32 %v8866_v30, %v8862_v57  ;;  %v5640_v42 = vpop.permute.xlu0 %5639 }
0x1894   :  { %8464 = vmatmul.mubr.msk.f32.vlgmr.msra.gmra.mrb[50].mxu0 %vm432_vm15, %v5058_v32 }
0x1895   :  { %v8868_v34 = vpop.eup %8867  ;;  %8472 = vmatpush3.msra.mxu0 %v5290_v52  ;;  %8473 = vmatprep.mubr.msk.f32.mxu0 %vm8945_vm14, %v8944_v29 }
0x1896   :  { %v5060_v39 = vmul.f32 %v8868_v34, %v8864_v61  ;;  %8492 = vmatprep.subr.mxu0 %v8944_v29  ;;  %v5718_v46 = vpop.permute.xlu0 %5717 }
0x1898   :  { %8474 = vmatmul.mubr.msk.f32.vlgmr.msra.gmra.mrb[52].mxu0 %vm432_vm15, %v5060_v39 }
0x1899   :  { %8494 = vmatprep.mubr.msk.f32.mxu0 %vm8945_vm14, %v8944_v29 }
0x189a   :  { %v5796_v60 = vpop.permute.xlu0 %5795 }
0x189c   :  { %8493 = vmatpush3.xpose.msk.msra.mxu0 %vm432_vm15, %v5562_v31 }
0x189d   :  { %8497 = vmatprep.subr.mxu0 %v8944_v29 }
0x189f   :  { %8495 = vmatmul.mubr.msk.f32.vlgmr.msra.gmra.mrb[54].mxu0 %vm432_vm15, %v5560_v41 }
0x18a0   :  { %8498 = vmatpush3.xpose.msk.msra.mxu0 %vm432_vm15, %v5640_v42  ;;  %8499 = vmatprep.mubr.msk.f32.mxu0 %vm8945_vm14, %v8944_v29 }
0x18a1   :  { %8502 = vmatprep.subr.mxu0 %v8944_v29 }
0x18a3   :  { %8500 = vmatmul.mubr.msk.f32.vlgmr.msra.gmra.mrb[56].mxu0 %vm432_vm15, %v5638_v22 }
0x18a4   :  { %8503 = vmatpush3.xpose.msk.msra.mxu0 %vm432_vm15, %v5718_v46  ;;  %8504 = vmatprep.mubr.msk.f32.mxu0 %vm8945_vm14, %v8944_v29 }
0x18a5   :  { %8507 = vmatprep.subr.mxu0 %v8944_v29 }
0x18a7   :  { %8505 = vmatmul.mubr.msk.f32.vlgmr.msra.gmra.mrb[58].mxu0 %vm432_vm15, %v5716_v43 }
0x18a8   :  { %8508 = vmatpush3.xpose.msk.msra.mxu0 %vm432_vm15, %v5796_v60  ;;  %8509 = vmatprep.mubr.msk.f32.mxu0 %vm8945_vm14, %v8944_v29 }
0x18a9   :  { %8517 = vmatprep.subr.mxu0 %v8944_v29 }
0x18ab   :  { %8510 = vmatmul.mubr.msk.f32.vlgmr.msra.gmra.mrb[60].mxu0 %vm432_vm15, %v5794_v47 }
0x18ac   :  { %8519 = vmatprep.mubr.msk.f32.mxu0 %vm8945_vm14, %v8944_v29 }
0x18ca   :  { %v5025_v26 = vpop.xlane.xlu1 %5024 }
0x18cb   :  { %v5031_v50 = vsub.f32 %v5015_v23, %v5025_v26  ;;  %v5019_v37 = vpop.xlane.xlu0 %5018 }
0x18cc   :  { %v5029_v53 = vsub.f32 %v5013_v21, %v5019_v37 }
0x18cd   :  { %v5037_v8 = vmul.f32 1.442695, %v5031_v50 }
0x18ce   :  { %v5033_v55 = vmul.f32 1.442695, %v5029_v53  ;;  %v5062_v56 = vpop.permute.xlu1 %5061 }
0x18cf   :  { %8457 = vmatpush3.msra.mxu1 %v5062_v56 }
0x18d0   :  { %8869 = vpow2.f32 %v5033_v55  ;;  %8466 = vmatprep.subr.mxu1 %v8944_v29  ;;  %v7782_v55 = vld [vmem:[%s10165_s6 + $0x20] sm:$0xff] }
0x18d1   :  { %8871 = vpow2.f32 %v5037_v8  ;;  %v7783_v8 = vld [vmem:[%s10165_s6 + $0x28] sm:$0xff] }
0x18da   :  { %v8870_v57 = vpop.eup %8869 }
0x18db   :  { %v5041_v58 = vsel %vm432_vm15, %v8870_v57, 0.0  ;;  %v8872_v61 = vpop.eup %8871 }
0x18dc   :  { %5042 = vadd.xlane.f32.xlu0 %v5041_v58  ;;  %v5047_v63 = vsel %vm432_vm15, %v8872_v61, 0.0 }
0x18e0   :  { %5048 = vadd.xlane.f32.xlu0 %v5047_v63 }
0x18f6   :  { %5213 = vrot.lane.b32.xlu0 %v9663_v51, %s8951_s26 }
0x1967   :  { %v9842_v1 = vpop.f32.mrb[50].mxu0 }
0x1968   :  { %v8465_v59 = vpop.f32.mrb[51].mxu0 }
0x1969   :  { %v5043_v5 = vpop.xlane.xlu0 %5042 }
0x196a   :  { %8873 = vrcp.f32 %v5043_v5 }
0x196b   :  { %v9844_v62 = vpop.f32.mrb[52].mxu0 }
0x196c   :  { %v8475_v11 = vpop.f32.mrb[53].mxu0 }
0x196d   :  { %v5049_v14 = vpop.xlane.xlu0 %5048 }
0x196e   :  { %8875 = vrcp.f32 %v5049_v14 }
0x1971   :  { %v5214_v27 = vpop.permute.xlu0 %5213 }
0x1972   :  { %v5633_v15 = vpop.f32.mrb[54].mxu0 }
0x1973   :  { %v5871_v20 = vmul.f32 0.35355338, %v5633_v15  ;;  %v8496_v21 = vpop.f32.mrb[55].mxu0 }
0x1974   :  { %v8874_v23 = vpop.eup %8873 }
0x1975   :  { %v5057_v25 = vmul.f32 %v8874_v23, %v8870_v57  ;;  %v5875_v2 = vadd.f32 %v5871_v20, %v9230_v13 }
0x1976   :  { %v5711_v6 = vpop.f32.mrb[56].mxu0 }
0x1977   :  { %v5872_v30 = vmul.f32 0.35355338, %v5711_v6  ;;  %v8501_v31 = vpop.f32.mrb[57].mxu0  ;;  %v5879_v32 = vsel %vm432_vm15, %v5875_v2, -inf  ;;  %8459 = vmatmul.mubr.msk.f32.vlgmr.msra.gmra.mrb[62].mxu1 %vm432_vm15, %v5057_v25 }
0x1978   :  { %v8876_v52 = vpop.eup %8875  ;;  %5880 = vmax.xlane.f32.xlu1 %v5879_v32  ;;  %8467 = vmatpush3.msra.mxu1 %v5214_v27 }
0x1979   :  { %v5059_v34 = vmul.f32 %v8876_v52, %v8872_v61  ;;  %v5876_v39 = vadd.f32 %v5872_v30, %v9189_v28  ;;  %8468 = vmatprep.mubr.msk.f32.mxu1 %vm8945_vm14, %v8944_v29  ;;  %8476 = vmatprep.subr.mxu1 %v7783_v8 }
0x197a   :  { %v5789_v41 = vpop.f32.mrb[58].mxu0 }
0x197b   :  { %v5873_v42 = vmul.f32 0.35355338, %v5789_v41  ;;  %v8506_v22 = vpop.f32.mrb[59].mxu0  ;;  %v5882_v46 = vsel %vm432_vm15, %v5876_v39, -inf  ;;  %8469 = vmatmul.mubr.msk.f32.vlgmr.msra.gmra.mrb[64].mxu1 %vm432_vm15, %v5059_v34 }
0x197c   :  { %5883 = vmax.xlane.f32.xlu0 %v5882_v46  ;;  %8477 = vmatpush3.msra.mxu1 %v7783_v8 }
0x197d   :  { %v5877_v43 = vadd.f32 %v5873_v42, %v9207_v49  ;;  %8484 = vmatprep.subr.mxu1 %v7782_v55 }
0x197e   :  { %v5867_v60 = vpop.f32.mrb[60].mxu0 }
0x197f   :  { %v5874_v47 = vmul.f32 0.35355338, %v5867_v60  ;;  %v8511_v26 = vpop.f32.mrb[61].mxu0  ;;  %v5885_v50 = vsel %vm432_vm15, %v5877_v43, -inf }
0x1980   :  { %5886 = vmax.xlane.f32.xlu1 %v5885_v50 }
0x1981   :  { %v5878_v37 = vadd.f32 %v5874_v47, %v9193_v35 }
0x1983   :  { %v5888_v53 = vsel %vm432_vm15, %v5878_v37, -inf }
0x1984   :  { %5889 = vmax.xlane.f32.xlu0 %v5888_v53 }
0x1991   :  { %5923 = vrot.lane.b32.xlu1 %v9657_v48, %s8954_s29 }
0x1a05   :  { %v5881_v56 = vpop.xlane.xlu1 %5880 }
0x1a06   :  { %v5891_v57 = vsub.f32 %v5875_v2, %v5881_v56 }
0x1a08   :  { %v5895_v58 = vmul.f32 1.442695, %v5891_v57 }
0x1a09   :  { %v5884_v61 = vpop.xlane.xlu0 %5883 }
0x1a0a   :  { %8877 = vpow2.f32 %v5895_v58  ;;  %v5892_v63 = vsub.f32 %v5876_v39, %v5884_v61 }
0x1a0c   :  { %v5897_v59 = vmul.f32 1.442695, %v5892_v63 }
0x1a0d   :  { %v5887_v5 = vpop.xlane.xlu1 %5886 }
0x1a0e   :  { %8879 = vpow2.f32 %v5897_v59  ;;  %v5893_v11 = vsub.f32 %v5877_v43, %v5887_v5 }
0x1a10   :  { %v5899_v14 = vmul.f32 1.442695, %v5893_v11 }
0x1a11   :  { %v5890_v15 = vpop.xlane.xlu0 %5889  ;;  %v5924_v42 = vpop.permute.xlu1 %5923 }
0x1a12   :  { %8881 = vpow2.f32 %v5899_v14  ;;  %v5894_v20 = vsub.f32 %v5878_v37, %v5890_v15 }
0x1a14   :  { %v8878_v21 = vpop.eup %8877  ;;  %v5901_v23 = vmul.f32 1.442695, %v5894_v20 }
0x1a15   :  { %v5903_v25 = vsel %vm432_vm15, %v8878_v21, 0.0 }
0x1a16   :  { %8883 = vpow2.f32 %v5901_v23  ;;  %5904 = vadd.xlane.f32.xlu1 %v5903_v25 }
0x1a18   :  { %v8880_v6 = vpop.eup %8879 }
0x1a19   :  { %v5906_v2 = vsel %vm432_vm15, %v8880_v6, 0.0 }
0x1a1a   :  { %5907 = vadd.xlane.f32.xlu0 %v5906_v2 }
0x1a1c   :  { %v8882_v27 = vpop.eup %8881 }
0x1a1d   :  { %v5909_v30 = vsel %vm432_vm15, %v8882_v27, 0.0 }
0x1a1e   :  { %5910 = vadd.xlane.f32.xlu1 %v5909_v30 }
0x1a20   :  { %v9869_v31 = vpop.eup %8883 }
0x1a21   :  { %v5912_v32 = vsel %vm432_vm15, %v9869_v31, 0.0 }
0x1a22   :  { %5913 = vadd.xlane.f32.xlu0 %v5912_v32 }
0x1a2f   :  { %6075 = vrot.lane.b32.xlu1 %v9663_v51, %s8954_s29 }
0x1a33   :  { %6151 = vrot.lane.b32.xlu1 %v9661_v45, %s8954_s29 }
0x1a37   :  { %6328 = vrot.lane.b32.xlu1 %v9657_v48, %s8955_s0 }
0x1a38   :  { %5999 = vrot.lane.b32.xlu0 %v9653_v54, %s8954_s29 }
0x1a3b   :  { %6406 = vrot.lane.b32.xlu1 %v9653_v54, %s8955_s0 }
0x1a3c   :  { %6330 = vrot.lane.b32.xlu0 %v9657_v48, %s8956_s14 }
0x1a3f   :  { %6564 = vrot.lane.b32.xlu1 %v9661_v45, %s8956_s14 }
0x1a40   :  { %6408 = vrot.lane.b32.xlu0 %v9653_v54, %s8956_s14 }
0x1a43   :  { %6562 = vrot.lane.b32.xlu1 %v9661_v45, %s8955_s0 }
0x1a44   :  { %6486 = vrot.lane.b32.xlu0 %v9663_v51, %s8956_s14 }
0x1a48   :  { %6484 = vrot.lane.b32.xlu0 %v9663_v51, %s8955_s0 }
0x1a4a   :  { %v5133_v52 = vpop.f32.mrb[62].mxu1 }
0x1a4b   :  { %v8460_v34 = vpop.f32.mrb[63].mxu1  ;;  %8478 = vmatprep.mubr.msk.f32.mxu1 %vm432_vm15, %v5133_v52 }
0x1a4c   :  { %8479 = vmatmul.mubr.msk.f32.vlgmr.msra.gmra.mrb[66].mxu1 %vm432_vm15, %v9842_v1 }
0x1a4d   :  { %8485 = vmatpush3.msra.mxu1 %v7782_v55 }
0x1a4e   :  { %v5285_v39 = vpop.f32.mrb[64].mxu1  ;;  %8512 = vmatprep.subr.mxu1 %v8944_v29 }
0x1a4f   :  { %v8470_v41 = vpop.f32.mrb[65].mxu1  ;;  %8481 = vmatprep.mubr.msk.f32.mxu1 %vm432_vm15, %v5285_v39 }
0x1a50   :  { %8482 = vmatmul.mubr.msk.f32.gmra.mrb[68].mxu1 %vm432_vm15, %v9844_v62 }
0x1a51   :  { %8486 = vmatprep.mubr.msk.f32.mxu1 %vm432_vm15, %v9800_v0 }
0x1a54   :  { %8487 = vmatmul.mubr.msk.f32.vlgmr.msra.gmra.mrb[66].mxu1 %vm432_vm15, %v9752_v7 }
0x1a55   :  { %8513 = vmatpush3.msra.mxu1 %v5924_v42  ;;  %8489 = vmatprep.mubr.msk.f32.mxu1 %vm432_vm15, %v9802_v3  ;;  %v7784_v3 = vld [vmem:[%s10165_s6 + $0x30] sm:$0xff] }
0x1a56   :  { %8522 = vmatprep.subr.mxu1 %v8944_v29 }
0x1a58   :  { %8490 = vmatmul.mubr.msk.f32.gmra.mrb[68].mxu1 %vm432_vm15, %v9754_v16 }
0x1a59   :  { %8514 = vmatprep.mubr.msk.f32.mxu1 %vm8945_vm14, %v8944_v29 }
0x1aa3   :  { %v5905_v1 = vpop.xlane.xlu1 %5904 }
0x1aa4   :  { %8885 = vrcp.f32 %v5905_v1 }
0x1aa7   :  { %v5908_v62 = vpop.xlane.xlu0 %5907 }
0x1aa8   :  { %8887 = vrcp.f32 %v5908_v62 }
0x1aab   :  { %v5911_v0 = vpop.xlane.xlu1 %5910 }
0x1aac   :  { %8889 = vrcp.f32 %v5911_v0 }
0x1aae   :  { %v8886_v22 = vpop.eup %8885 }
0x1aaf   :  { %v5919_v7 = vmul.f32 %v8886_v22, %v8878_v21  ;;  %v5914_v46 = vpop.xlane.xlu0 %5913  ;;  %v6076_v43 = vpop.permute.xlu1 %6075 }
0x1ab0   :  { %8891 = vrcp.f32 %v5914_v46 }
0x1ab1   :  { %8515 = vmatmul.mubr.msk.f32.vlgmr.msra.gmra.mrb[70].mxu1 %vm432_vm15, %v5919_v7 }
0x1ab2   :  { %v8888_v16 = vpop.eup %8887  ;;  %8523 = vmatpush3.msra.mxu1 %v6076_v43  ;;  %8524 = vmatprep.mubr.msk.f32.mxu1 %vm8945_vm14, %v8944_v29 }
0x1ab3   :  { %v5920_v60 = vmul.f32 %v8888_v16, %v8880_v6  ;;  %v6000_v47 = vpop.permute.xlu0 %5999  ;;  %v6152_v26 = vpop.permute.xlu1 %6151  ;;  %8532 = vmatprep.subr.mxu1 %v7784_v3 }
0x1ab4   :  { %8518 = vmatpush3.msra.mxu0 %v6000_v47 }
0x1ab5   :  { %8520 = vmatmul.mubr.msk.f32.vlgmr.msra.gmra.mrb[62].mxu0 %vm432_vm15, %v5920_v60  ;;  %8527 = vmatprep.subr.mxu0 %v8944_v29 }
0x1ab6   :  { %v8890_v50 = vpop.eup %8889  ;;  %8528 = vmatpush3.msra.mxu0 %v6152_v26  ;;  %8529 = vmatprep.mubr.msk.f32.mxu0 %vm8945_vm14, %v8944_v29 }
0x1ab7   :  { %v5921_v37 = vmul.f32 %v8890_v50, %v8882_v27  ;;  %v6329_v53 = vpop.permute.xlu1 %6328  ;;  %8540 = vmatprep.subr.mxu0 %v8944_v29  ;;  %v6331_v56 = vpop.permute.xlu0 %6330 }
0x1ab9   :  { %8525 = vmatmul.mubr.msk.f32.vlgmr.msra.gmra.mrb[72].mxu1 %vm432_vm15, %v5921_v37 }
0x1aba   :  { %v8892_v8 = vpop.eup %8891  ;;  %8533 = vmatpush3.msra.mxu1 %v7784_v3 }
0x1abb   :  { %v5922_v55 = vmul.f32 %v8892_v8, %v9869_v31  ;;  %8550 = vmatprep.subr.mxu1 %v8944_v29  ;;  %v6407_v57 = vpop.permute.xlu1 %6406  ;;  %v6409_v58 = vpop.permute.xlu0 %6408 }
0x1abd   :  { %8530 = vmatmul.mubr.msk.f32.vlgmr.msra.gmra.mrb[64].mxu0 %vm432_vm15, %v5922_v55 }
0x1abe   :  { %8541 = vmatpush3.xpose.msk.msra.mxu0 %vm432_vm15, %v6331_v56  ;;  %8542 = vmatprep.mubr.msk.f32.mxu0 %vm8945_vm14, %v8944_v29 }
0x1abf   :  { %8545 = vmatprep.subr.mxu0 %v8944_v29  ;;  %v6565_v61 = vpop.permute.xlu1 %6564  ;;  %v6487_v14 = vpop.permute.xlu0 %6486 }
0x1ac1   :  { %8543 = vmatmul.mubr.msk.f32.vlgmr.msra.gmra.mrb[66].mxu0 %vm432_vm15, %v6329_v53 }
0x1ac2   :  { %8546 = vmatpush3.xpose.msk.msra.mxu0 %vm432_vm15, %v6409_v58  ;;  %8547 = vmatprep.mubr.msk.f32.mxu0 %vm8945_vm14, %v8944_v29 }
0x1ac3   :  { %8555 = vmatprep.subr.mxu0 %v8944_v29  ;;  %v6563_v63 = vpop.permute.xlu1 %6562  ;;  %v6485_v6 = vpop.permute.xlu0 %6484 }
0x1ac5   :  { %8548 = vmatmul.mubr.msk.f32.vlgmr.msra.gmra.mrb[68].mxu0 %vm432_vm15, %v6407_v57 }
0x1ac6   :  { %8556 = vmatpush3.xpose.msk.msra.mxu0 %vm432_vm15, %v6565_v61  ;;  %8557 = vmatprep.mubr.msk.f32.mxu0 %vm8945_vm14, %v8944_v29 }
0x1ac7   :  { %8565 = vmatprep.subr.mxu0 %v8944_v29 }
0x1ac9   :  { %8558 = vmatmul.mubr.msk.f32.vlgmr.msra.gmra.mrb[70].mxu0 %vm432_vm15, %v6563_v63 }
0x1aca   :  { %8567 = vmatprep.mubr.msk.f32.mxu0 %vm8945_vm14, %v8944_v29 }
0x1b84   :  { %v5995_v59 = vpop.f32.mrb[70].mxu1 }
0x1b85   :  { %v8516_v5 = vpop.f32.mrb[71].mxu1  ;;  %8534 = vmatprep.mubr.msk.f32.mxu1 %vm432_vm15, %v5995_v59 }
0x1b88   :  { %v6071_v11 = vpop.f32.mrb[62].mxu0 }
0x1b89   :  { %v8521_v15 = vpop.f32.mrb[63].mxu0  ;;  %8535 = vmatmul.mubr.msk.f32.vlgmr.msra.gmra.mrb[66].mxu1 %vm432_vm15, %v6071_v11 }
0x1b8a   :  { %8551 = vmatpush3.xpose.msk.msra.mxu1 %vm432_vm15, %v6487_v14 }
0x1b8b   :  { %8560 = vmatprep.subr.mxu1 %v8944_v29 }
0x1b8c   :  { %v6147_v20 = vpop.f32.mrb[72].mxu1 }
0x1b8d   :  { %v8526_v21 = vpop.f32.mrb[73].mxu1  ;;  %8537 = vmatprep.mubr.msk.f32.mxu1 %vm432_vm15, %v6147_v20 }
0x1b90   :  { %v6223_v23 = vpop.f32.mrb[64].mxu0 }
0x1b91   :  { %v8531_v25 = vpop.f32.mrb[65].mxu0  ;;  %8538 = vmatmul.mubr.msk.f32.gmra.mrb[68].mxu1 %vm432_vm15, %v6223_v23  ;;  %v7785_v23 = vld [vmem:[%s10165_s6 + $0x38] sm:$0xff] }
0x1b92   :  { %8552 = vmatprep.mubr.msk.f32.mxu1 %vm8945_vm14, %v8944_v29 }
0x1b94   :  { %v6402_v2 = vpop.f32.mrb[66].mxu0 }
0x1b95   :  { %v6640_v27 = vmul.f32 0.35355338, %v6402_v2  ;;  %v8544_v30 = vpop.f32.mrb[67].mxu0  ;;  %8553 = vmatmul.mubr.msk.f32.vlgmr.msra.gmra.mrb[74].mxu1 %vm432_vm15, %v6485_v6 }
0x1b96   :  { %8562 = vmatprep.mubr.msk.f32.mxu1 %vm8945_vm14, %v8944_v29 }
0x1b97   :  { %v6644_v31 = vadd.f32 %v6640_v27, %v9230_v13 }
0x1b98   :  { %v6480_v32 = vpop.f32.mrb[68].mxu0 }
0x1b99   :  { %v6641_v52 = vmul.f32 0.35355338, %v6480_v32  ;;  %v8549_v34 = vpop.f32.mrb[69].mxu0  ;;  %v6648_v39 = vsel %vm432_vm15, %v6644_v31, -inf }
0x1b9a   :  { %6649 = vmax.xlane.f32.xlu0 %v6648_v39 }
0x1b9b   :  { %v6645_v41 = vadd.f32 %v6641_v52, %v9189_v28 }
0x1b9c   :  { %v6636_v42 = vpop.f32.mrb[70].mxu0 }
0x1b9d   :  { %v8559_v1 = vpop.f32.mrb[71].mxu0  ;;  %v6651_v62 = vsel %vm432_vm15, %v6645_v41, -inf  ;;  %v6643_v60 = vmul.f32 0.35355338, %v6636_v42 }
0x1b9e   :  { %6652 = vmax.xlane.f32.xlu1 %v6651_v62 }
0x1b9f   :  { %v6647_v37 = vadd.f32 %v6643_v60, %v9193_v35 }
0x1c27   :  { %v6650_v0 = vpop.xlane.xlu0 %6649 }
0x1c28   :  { %v6660_v22 = vsub.f32 %v6644_v31, %v6650_v0 }
0x1c2a   :  { %v6664_v7 = vmul.f32 1.442695, %v6660_v22 }
0x1c2b   :  { %v6653_v28 = vpop.xlane.xlu1 %6652 }
0x1c2c   :  { %8893 = vpow2.f32 %v6664_v7  ;;  %v6661_v43 = vsub.f32 %v6645_v41, %v6653_v28  ;;  %v9996_v7 = vld [vmem:[%s10163_s9 + $0x8] sm:$0xff] }
0x1c2e   :  { %v6666_v3 = vmul.f32 1.442695, %v6661_v43 }
0x1c30   :  { %8895 = vpow2.f32 %v6666_v3 }
0x1c36   :  { %v8894_v46 = vpop.eup %8893 }
0x1c37   :  { %v6672_v13 = vsel %vm432_vm15, %v8894_v46, 0.0 }
0x1c38   :  { %6673 = vadd.xlane.f32.xlu1 %v6672_v13 }
0x1c3a   :  { %v8896_v8 = vpop.eup %8895 }
0x1c49   :  { %6692 = vrot.lane.b32.xlu1 %v9657_v48, %s8957_s17  ;;  %v6657_v48 = vsel %vm432_vm15, %v6647_v37, -inf }
0x1c4d   :  { %6844 = vrot.lane.b32.xlu1 %v9663_v51, %s8957_s17  ;;  %v6675_v51 = vsel %vm432_vm15, %v8896_v8, 0.0 }
0x1c68   :  { %v6558_v16 = vpop.f32.mrb[74].mxu1 }
0x1c69   :  { %v6642_v47 = vmul.f32 0.35355338, %v6558_v16  ;;  %v8554_v26 = vpop.f32.mrb[75].mxu1 }
0x1c6b   :  { %v6646_v50 = vadd.f32 %v6642_v47, %v9207_v49 }
0x1c6d   :  { %v6654_v53 = vsel %vm432_vm15, %v6646_v50, -inf }
0x1c6e   :  { %6655 = vmax.xlane.f32.xlu0 %v6654_v53 }
0x1c72   :  { %6658 = vmax.xlane.f32.xlu0 %v6657_v48 }
0x1c76   :  { %6676 = vadd.xlane.f32.xlu0 %v6675_v51 }
0x1cc5   :  { %v6674_v55 = vpop.xlane.xlu1 %6673 }
0x1cc6   :  { %8897 = vrcp.f32 %v6674_v55 }
0x1cc9   :  { %v6693_v56 = vpop.permute.xlu1 %6692 }
0x1cca   :  { %8561 = vmatpush3.msra.mxu1 %v6693_v56 }
0x1ccb   :  { %8570 = vmatprep.subr.mxu1 %v8944_v29 }
0x1ccd   :  { %v6845_v58 = vpop.permute.xlu1 %6844 }
0x1cd0   :  { %v8898_v57 = vpop.eup %8897 }
0x1cd1   :  { %v6688_v49 = vmul.f32 %v8898_v57, %v8894_v46  ;;  %v7100_v46 = vrot.slane %v9996_v7, %v9075_v38 }
0x1cd3   :  { %8563 = vmatmul.mubr.msk.f32.vlgmr.msra.gmra.mrb[76].mxu1 %vm432_vm15, %v6688_v49 }
0x1cd4   :  { %8571 = vmatpush3.msra.mxu1 %v6845_v58  ;;  %8572 = vmatprep.mubr.msk.f32.mxu1 %vm8945_vm14, %v8944_v29 }
0x1cd5   :  { %8580 = vmatprep.subr.mxu1 %v7785_v23 }
0x1cfb   :  { %v6656_v35 = vpop.xlane.xlu0 %6655 }
0x1cfc   :  { %v6662_v61 = vsub.f32 %v6646_v50, %v6656_v35 }
0x1cfe   :  { %v6668_v63 = vmul.f32 1.442695, %v6662_v61 }
0x1cff   :  { %v6659_v59 = vpop.xlane.xlu0 %6658 }
0x1d00   :  { %8899 = vpow2.f32 %v6668_v63  ;;  %v6663_v5 = vsub.f32 %v6647_v37, %v6659_v59 }
0x1d02   :  { %v6670_v11 = vmul.f32 1.442695, %v6663_v5 }
0x1d03   :  { %v6677_v25 = vpop.xlane.xlu0 %6676 }
0x1d04   :  { %8901 = vpow2.f32 %v6670_v11 }
0x1d05   :  { %8903 = vrcp.f32 %v6677_v25 }
0x1d0a   :  { %v8900_v14 = vpop.eup %8899 }
0x1d0b   :  { %v6678_v15 = vsel %vm432_vm15, %v8900_v14, 0.0 }
0x1d0c   :  { %6679 = vadd.xlane.f32.xlu1 %v6678_v15 }
0x1d0e   :  { %v8902_v20 = vpop.eup %8901 }
0x1d0f   :  { %v6681_v21 = vsel %vm432_vm15, %v8902_v20, 0.0  ;;  %v8904_v27 = vpop.eup %8903 }
0x1d10   :  { %6682 = vadd.xlane.f32.xlu0 %v6681_v21  ;;  %v6689_v30 = vmul.f32 %v8904_v27, %v8896_v8 }
0x1d1d   :  { %6920 = vrot.lane.b32.xlu1 %v9661_v45, %s8957_s17 }
0x1d26   :  { %6768 = vrot.lane.b32.xlu0 %v9653_v54, %s8957_s17 }
0x1d99   :  { %v6680_v6 = vpop.xlane.xlu1 %6679 }
0x1d9a   :  { %8905 = vrcp.f32 %v6680_v6  ;;  %v7858_v6 = vld [vmem:[%s10166_s7 + $0x20] sm:$0xff] }
0x1d9d   :  { %v6683_v2 = vpop.xlane.xlu0 %6682  ;;  %v6921_v32 = vpop.permute.xlu1 %6920 }
0x1d9e   :  { %8907 = vrcp.f32 %v6683_v2  ;;  %v7859_v2 = vld [vmem:[%s10166_s7 + $0x28] sm:$0xff] }
0x1d9f   :  { %v8680_v27 = vpack.c.bf16 %v7859_v2, %v7858_v6 }
0x1da1   :  { %v6769_v31 = vpop.permute.xlu0 %6768 }
0x1da2   :  { %8566 = vmatpush3.msra.mxu0 %v6769_v31  ;;  %v7861_v31 = vld [vmem:[%s10166_s7 + $0x38] sm:$0xff] }
0x1da3   :  { %8568 = vmatmul.mubr.msk.f32.vlgmr.msra.gmra.mrb[72].mxu0 %vm432_vm15, %v6689_v30  ;;  %8575 = vmatprep.subr.mxu0 %v8944_v29  ;;  %v7860_v30 = vld [vmem:[%s10166_s7 + $0x30] sm:$0xff] }
0x1da4   :  { %v8906_v54 = vpop.eup %8905  ;;  %8576 = vmatpush3.msra.mxu0 %v6921_v32  ;;  %8577 = vmatprep.mubr.msk.f32.mxu0 %vm8945_vm14, %v8944_v29  ;;  %v8684_v32 = vpack.c.bf16 %v7861_v31, %v7860_v30 }
0x1da5   :  { %v6690_v45 = vmul.f32 %v8906_v54, %v8900_v14  ;;  %8681 = vmatprep.subr.bf16.mxu0 %v8680_v27 }
0x1da6   :  { %v6764_v52 = vpop.f32.mrb[76].mxu1 }
0x1da7   :  { %v8564_v34 = vpop.f32.mrb[77].mxu1  ;;  %8573 = vmatmul.mubr.msk.f32.vlgmr.msra.gmra.mrb[78].mxu1 %vm432_vm15, %v6690_v45 }
0x1da8   :  { %v8908_v39 = vpop.eup %8907  ;;  %8582 = vmatprep.mubr.msk.f32.mxu1 %vm432_vm15, %v6764_v52  ;;  %8581 = vmatpush3.msra.mxu1 %v7785_v23 }
0x1da9   :  { %v6691_v41 = vmul.f32 %v8908_v39, %v8902_v20 }
0x1dab   :  { %8578 = vmatmul.mubr.msk.f32.vlgmr.msra.gmra.mrb[74].mxu0 %vm432_vm15, %v6691_v41 }
0x1dac   :  { %8683 = vmatpush3.bf16.msra.mxu0 %v8680_v27 }
0x1dad   :  { %8685 = vmatprep.subr.bf16.mxu0 %v8684_v32 }
0x1db0   :  { %8687 = vmatpush3.bf16.msra.mxu0 %v8684_v32 }
0x1e76   :  { %v6840_v42 = vpop.f32.mrb[72].mxu0 }
0x1e77   :  { %v8569_v1 = vpop.f32.mrb[73].mxu0  ;;  %8583 = vmatmul.mubr.msk.f32.vlgmr.msra.gmra.mrb[66].mxu1 %vm432_vm15, %v6840_v42 }
0x1e7a   :  { %v6916_v62 = vpop.f32.mrb[78].mxu1 }
0x1e7b   :  { %v8574_v0 = vpop.f32.mrb[79].mxu1  ;;  %8585 = vmatprep.mubr.msk.f32.mxu1 %vm432_vm15, %v6916_v62 }
0x1e7e   :  { %v6992_v29 = vpop.f32.mrb[74].mxu0 }
0x1e7f   :  { %v8579_v22 = vpop.f32.mrb[75].mxu0  ;;  %8586 = vmatmul.mubr.msk.f32.gmra.mrb[68].mxu1 %vm432_vm15, %v6992_v29 }
0x1e80   :  { %v7164_v22 = vrot.slane %v9996_v7, %v3584_v40 }
0x1f4a   :  { %v8584_v13 = vpop.f32.mrb[66].mxu1 }
0x1f4b   :  { %v7102_v28 = vadd.f32 %v8584_v13, %v7100_v46  ;;  %v7074_v43 = vpop.f32.mrb[67].mxu1 }
0x1f4c   :  { %v7101_v3 = vadd.f32 %v7100_v46, %v7074_v43 }
0x1f4d   :  { %v7106_v16 = vadd.f32 %v7102_v28, %v9633_v4 }
0x1f4e   :  { %v7105_v60 = vadd.f32 %v7101_v3, %v9631_v33 }
0x1f4f   :  { %v7112_v47 = vsel %vm219_vm13, %v7106_v16, 0.0 }
0x1f50   :  { %7113 = vadd.xlane.f32.xlu1 %v7112_v47  ;;  %v7109_v26 = vsel %vm219_vm13, %v7105_v60, 0.0 }
0x1f51   :  { %7110 = vadd.xlane.f32.xlu0 %v7109_v26 }
0x1f52   :  { %v8587_v50 = vpop.f32.mrb[68].mxu1 }
0x1f53   :  { %v7084_v37 = vpop.f32.mrb[69].mxu1  ;;  %v7104_v53 = vadd.f32 %v8587_v50, %v7100_v46 }
0x1f54   :  { %v7103_v48 = vadd.f32 %v7100_v46, %v7084_v37 }
0x1f55   :  { %v7108_v8 = vadd.f32 %v7104_v53, %v9641_v44 }
0x1f56   :  { %v7107_v38 = vadd.f32 %v7103_v48, %v9639_v24 }
0x1f57   :  { %v7118_v4 = vsel %vm219_vm13, %v7108_v8, 0.0 }
0x1f58   :  { %v7115_v51 = vsel %vm219_vm13, %v7107_v38, 0.0 }
0x1f59   :  { %7116 = vadd.xlane.f32.xlu0 %v7115_v51 }
0x1f5d   :  { %7119 = vadd.xlane.f32.xlu0 %v7118_v4  ;;  %v7866_v4 = vld [vmem:[%s10167_s8 + $0x40] sm:$0xff] }
0x1fdd   :  { %v7114_v33 = vpop.xlane.xlu1 %7113 }
0x1fde   :  { %v7122_v55 = vmul.f32 0.03125, %v7114_v33  ;;  %v7111_v56 = vpop.xlane.xlu0 %7110  ;;  %v7867_v33 = vld [vmem:[%s10167_s8 + $0x48] sm:$0xff] }
0x1fdf   :  { %v7121_v57 = vmul.f32 0.03125, %v7111_v56  ;;  %v7868_v56 = vld [vmem:[%s10167_s8 + $0x50] sm:$0xff] }
0x1fe0   :  { %v7126_v49 = vsub.f32 %v7106_v16, %v7122_v55  ;;  %v7172_v16 = vrot.slane %v9996_v7, %v3592_v18  ;;  %v8688_v55 = vpack.c.bf16 %v7867_v33, %v7866_v4 }
0x1fe1   :  { %v7125_v58 = vsub.f32 %v7105_v60, %v7121_v57  ;;  %v7869_v57 = vld [vmem:[%s10167_s8 + $0x58] sm:$0xff] }
0x1fe2   :  { %v7130_v35 = vmul.f32 %v7126_v49, %v7126_v49  ;;  %8689 = vmatprep.subr.bf16.mxu1 %v8688_v55 }
0x1fe3   :  { %v7129_v61 = vmul.f32 %v7125_v58, %v7125_v58  ;;  %8691 = vmatpush3.bf16.msra.mxu1 %v8688_v55 }
0x1fe4   :  { %v7136_v63 = vsel %vm219_vm13, %v7130_v35, 0.0  ;;  %v7871_v35 = vld [vmem:[%s10167_s8 + $0x68] sm:$0xff] }
0x1fe5   :  { %7137 = vadd.xlane.f32.xlu0 %v7136_v63  ;;  %v7133_v24 = vsel %vm219_vm13, %v7129_v61, 0.0  ;;  %v7872_v63 = vld [vmem:[%s10167_s8 + $0x70] sm:$0xff] }
0x1fe6   :  { %7134 = vadd.xlane.f32.xlu1 %v7133_v24  ;;  %v7117_v44 = vpop.xlane.xlu0 %7116  ;;  %v7873_v24 = vld [vmem:[%s10167_s8 + $0x78] sm:$0xff] }
0x1fe7   :  { %v7123_v59 = vmul.f32 0.03125, %v7117_v44  ;;  %v8700_v44 = vpack.c.bf16 %v7873_v24, %v7872_v63 }
0x1fe9   :  { %v7127_v5 = vsub.f32 %v7107_v38, %v7123_v59  ;;  %v7185_v59 = vrot.slane %v9996_v7, %v3604_v12 }
0x1fea   :  { %v7120_v11 = vpop.xlane.xlu0 %7119 }
0x1feb   :  { %v7124_v14 = vmul.f32 0.03125, %v7120_v11  ;;  %v7131_v15 = vmul.f32 %v7127_v5, %v7127_v5 }
0x1fed   :  { %v7128_v20 = vsub.f32 %v7108_v8, %v7124_v14  ;;  %v7139_v21 = vsel %vm219_vm13, %v7131_v15, 0.0 }
0x1fee   :  { %7140 = vadd.xlane.f32.xlu1 %v7139_v21 }
0x1fef   :  { %v7132_v23 = vmul.f32 %v7128_v20, %v7128_v20 }
0x1ff1   :  { %v7142_v25 = vsel %vm219_vm13, %v7132_v23, 0.0 }
0x1ff2   :  { %7143 = vadd.xlane.f32.xlu0 %v7142_v25 }
0x2072   :  { %v7138_v54 = vpop.xlane.xlu0 %7137 }
0x2073   :  { %v7146_v45 = vmul.f32 0.03125, %v7138_v54  ;;  %v7135_v52 = vpop.xlane.xlu1 %7134 }
0x2074   :  { %v7145_v34 = vmul.f32 0.03125, %v7135_v52 }
0x2075   :  { %v7150_v39 = vadd.f32 1e-12, %v7146_v45 }
0x2076   :  { %v7149_v41 = vadd.f32 1e-12, %v7145_v34 }
0x2077   :  { %8909 = vrsqrt.f32 %v7150_v39 }
0x2078   :  { %8911 = vrsqrt.f32 %v7149_v41 }
0x207b   :  { %v7141_v42 = vpop.xlane.xlu1 %7140 }
0x207c   :  { %v7147_v1 = vmul.f32 0.03125, %v7141_v42 }
0x207e   :  { %v7151_v62 = vadd.f32 1e-12, %v7147_v1 }
0x207f   :  { %v7144_v0 = vpop.xlane.xlu0 %7143 }
0x2080   :  { %8913 = vrsqrt.f32 %v7151_v62  ;;  %v7148_v29 = vmul.f32 0.03125, %v7144_v0 }
0x2081   :  { %v8910_v46 = vpop.eup %8909 }
0x2082   :  { %v8912_v13 = vpop.eup %8911  ;;  %v7158_v28 = vmul.f32 %v8910_v46, %v7126_v49  ;;  %v7152_v43 = vadd.f32 1e-12, %v7148_v29  ;;  %v8692_v49 = vpack.c.bf16 %v7869_v57, %v7868_v56 }
0x2083   :  { %v7157_v3 = vmul.f32 %v8912_v13, %v7125_v58  ;;  %v7870_v58 = vld [vmem:[%s10167_s8 + $0x60] sm:$0xff] }
0x2084   :  { %8915 = vrsqrt.f32 %v7152_v43  ;;  %v7166_v60 = vmul.f32 %v7164_v22, %v7158_v28  ;;  %8693 = vmatprep.subr.bf16.mxu1 %v8692_v49  ;;  %v8696_v61 = vpack.c.bf16 %v7871_v35, %v7870_v58 }
0x2085   :  { %v7165_v47 = vmul.f32 %v7164_v22, %v7157_v3  ;;  %8695 = vmatpush3.bf16.msra.mxu1 %v8692_v49  ;;  %v7331_v49 = vrot.slane %v9996_v7, %v3749_v10 }
0x2086   :  { %v10032_v50 = vadd.f32 %v7172_v16, %v7166_v60  ;;  %8697 = vmatprep.subr.bf16.mxu1 %v8696_v61 }
0x2087   :  { %v10030_v26 = vadd.f32 %v7172_v16, %v7165_v47 }
0x2089   :  { %8596 = vmatprep.mubr.msk.f32.mxu0 %vm219_vm13, %v10030_v26  ;;  %8699 = vmatpush3.bf16.msra.mxu1 %v8696_v61 }
0x208a   :  { %v8914_v40 = vpop.eup %8913  ;;  %8597 = vmatmul.mubr.msk.f32.vlgmr.msra.gmra.mrb[76].mxu0 %vm219_vm13, %v10032_v50  ;;  %8701 = vmatprep.subr.bf16.mxu1 %v8700_v44 }
0x208b   :  { %v7159_v37 = vmul.f32 %v8914_v40, %v7127_v5 }
0x208d   :  { %v7167_v53 = vmul.f32 %v7164_v22, %v7159_v37  ;;  %8703 = vmatpush3.bf16.msra.mxu1 %v8700_v44 }
0x208e   :  { %v8916_v48 = vpop.eup %8915 }
0x208f   :  { %v10038_v38 = vadd.f32 %v7172_v16, %v7167_v53  ;;  %v7160_v18 = vmul.f32 %v8916_v48, %v7128_v20 }
0x2091   :  { %8599 = vmatprep.mubr.msk.f32.mxu0 %vm219_vm13, %v10038_v38  ;;  %v7168_v8 = vmul.f32 %v7164_v22, %v7160_v18 }
0x2093   :  { %v10042_v51 = vadd.f32 %v7172_v16, %v7168_v8 }
0x2095   :  { %8600 = vmatmul.mubr.msk.f32.gmra.mrb[78].mxu0 %vm219_vm13, %v10042_v51 }
0x215d   :  { %v8598_v5 = vpop.f32.mrb[76].mxu0 }
0x215e   :  { %v7270_v11 = vadd.f32 %v8598_v5, %v7185_v59  ;;  %v7264_v14 = vpop.f32.mrb[77].mxu0 }
0x215f   :  { %v7265_v15 = vadd.f32 %v7264_v14, %v7185_v59 }
0x2160   :  { %v7288_v20 = vmul.f32 0.044715, %v7270_v11  ;;  %v7284_v60 = vmul.f32 0.5, %v7270_v11 }
0x2161   :  { %v7287_v21 = vmul.f32 0.044715, %v7265_v15  ;;  %v7283_v3 = vmul.f32 0.5, %v7265_v15 }
0x2162   :  { %v7292_v23 = vmul.f32 %v7288_v20, %v7270_v11 }
0x2163   :  { %v7291_v25 = vmul.f32 %v7287_v21, %v7265_v15 }
0x2164   :  { %v7296_v6 = vmul.f32 %v7292_v23, %v7270_v11 }
0x2165   :  { %v7295_v2 = vmul.f32 %v7291_v25, %v7265_v15 }
0x2166   :  { %v7300_v27 = vadd.f32 %v7296_v6, %v7270_v11 }
0x2167   :  { %v7299_v30 = vadd.f32 %v7295_v2, %v7265_v15 }
0x2168   :  { %v7304_v31 = vmul.f32 0.7978846, %v7300_v27  ;;  %v8601_v32 = vpop.f32.mrb[78].mxu0 }
0x2169   :  { %v7280_v54 = vadd.f32 %v8601_v32, %v7185_v59  ;;  %v7274_v45 = vpop.f32.mrb[79].mxu0  ;;  %v7303_v52 = vmul.f32 0.7978846, %v7299_v30 }
0x216a   :  { %8917 = vtanh.f32 %v7304_v31  ;;  %v7275_v34 = vadd.f32 %v7274_v45, %v7185_v59 }
0x216b   :  { %v7290_v12 = vmul.f32 0.044715, %v7280_v54  ;;  %8919 = vtanh.f32 %v7303_v52  ;;  %v7286_v4 = vmul.f32 0.5, %v7280_v54 }
0x216c   :  { %v7289_v39 = vmul.f32 0.044715, %v7275_v34  ;;  %v7285_v18 = vmul.f32 0.5, %v7275_v34 }
0x216d   :  { %v7294_v41 = vmul.f32 %v7290_v12, %v7280_v54 }
0x216e   :  { %v7293_v42 = vmul.f32 %v7289_v39, %v7275_v34 }
0x216f   :  { %v7298_v1 = vmul.f32 %v7294_v41, %v7280_v54  ;;  %v7503_v41 = vld [vmem:[%s10168_s2 + $0x10] sm:$0xff] }
0x2170   :  { %v7297_v62 = vmul.f32 %v7293_v42, %v7275_v34 }
0x2171   :  { %v7302_v0 = vadd.f32 %v7298_v1, %v7280_v54  ;;  %v7501_v1 = vld [vmem:[%s10168_s2] sm:$0xff] }
0x2172   :  { %v7301_v29 = vadd.f32 %v7297_v62, %v7275_v34 }
0x2173   :  { %v7306_v22 = vmul.f32 0.7978846, %v7302_v0  ;;  %v7502_v0 = vld [vmem:[%s10168_s2 + $0x8] sm:$0xff] }
0x2174   :  { %v8918_v46 = vpop.eup %8917  ;;  %v7305_v13 = vmul.f32 0.7978846, %v7301_v29 }
0x2175   :  { %v8920_v28 = vpop.eup %8919  ;;  %v7312_v43 = vadd.f32 1.0, %v8918_v46  ;;  %8921 = vtanh.f32 %v7306_v22 }
0x2176   :  { %v7311_v16 = vadd.f32 1.0, %v8920_v28  ;;  %8923 = vtanh.f32 %v7305_v13  ;;  %v7572_v13 = vsel %vm7557_vm0, %v7503_v41, 0.0 }
0x2177   :  { %v7316_v40 = vmul.f32 %v7312_v43, %v7284_v60  ;;  %v7573_v28 = vrot.slane %v7572_v13, 4  ;;  %v7558_v43 = vsel %vm7557_vm0, %v7501_v1, 0.0 }
0x2178   :  { %v7315_v47 = vmul.f32 %v7311_v16, %v7283_v3  ;;  %v7559_v60 = vrot.slane %v7558_v43, 4 }
0x2179   :  { %v7574_v16 = vadd.f32 %v7573_v28, %v7572_v13 }
0x217a   :  { %8618 = vmatprep.mubr.msk.f32.mxu1 %vm115_vm4, %v7315_v47  ;;  %v7565_v47 = vsel %vm7557_vm0, %v7502_v0, 0.0 }
0x217b   :  { %8619 = vmatmul.mubr.msk.f32.vlgmr.msra.gmra.mrb[80].mxu1 %vm115_vm4, %v7316_v40 }
0x217f   :  { %v8922_v37 = vpop.eup %8921 }
0x2180   :  { %v8924_v53 = vpop.eup %8923  ;;  %v7314_v48 = vadd.f32 1.0, %v8922_v37 }
0x2181   :  { %v7313_v8 = vadd.f32 1.0, %v8924_v53  ;;  %v7575_v53 = vrot.slane %v7574_v16, 2 }
0x2182   :  { %v7318_v55 = vmul.f32 %v7314_v48, %v7286_v4  ;;  %v7560_v48 = vadd.f32 %v7559_v60, %v7558_v43 }
0x2183   :  { %v7317_v33 = vmul.f32 %v7313_v8, %v7285_v18  ;;  %v7566_v18 = vrot.slane %v7565_v47, 4  ;;  %v7576_v4 = vadd.f32 %v7575_v53, %v7574_v16 }
0x2185   :  { %8621 = vmatprep.mubr.msk.f32.mxu1 %vm115_vm4, %v7317_v33  ;;  %v7561_v33 = vrot.slane %v7560_v48, 2 }
0x2186   :  { %8622 = vmatmul.mubr.msk.f32.gmra.mrb[82].mxu1 %vm115_vm4, %v7318_v55  ;;  %v7567_v55 = vadd.f32 %v7566_v18, %v7565_v47 }
0x224e   :  { %v8620_v56 = vpop.f32.mrb[80].mxu1 }
0x224f   :  { %v7410_v57 = vpop.f32.mrb[81].mxu1  ;;  %v7416_v35 = vadd.f32 %v8620_v56, %v7331_v49 }
0x2250   :  { %v7411_v24 = vadd.f32 %v7410_v57, %v7331_v49  ;;  %v7577_v57 = vrot.slane %v7576_v4, 1 }
0x2251   :  { %v7430_v11 = vadd.f32 %v7416_v35, %v10032_v50 }
0x2252   :  { %v7429_v15 = vadd.f32 %v7411_v24, %v10030_v26  ;;  %v7504_v26 = vld [vmem:[%s10168_s2 + $0x18] sm:$0xff]  ;;  %v7578_v24 = vadd.f32 %v7577_v57, %v7576_v4 }
0x2253   :  { %v7436_v10 = vsel %vm219_vm13, %v7430_v11, 0.0  ;;  %v7579_v54 = vsel %vm7557_vm0, %v7504_v26, 0.0 }
0x2254   :  { %v7433_v21 = vsel %vm219_vm13, %v7429_v15, 0.0  ;;  %v7580_v52 = vrot.slane %v7579_v54, 4 }
0x2256   :  { %v7581_v34 = vadd.f32 %v7580_v52, %v7579_v54  ;;  %v7488_v54 = vrot.slane %v9996_v7, %v3906_v9 }
0x2258   :  { %v7582_v12 = vrot.slane %v7581_v34, 2 }
0x2259   :  { %v8623_v58 = vpop.f32.mrb[82].mxu1 }
0x225a   :  { %v7426_v61 = vadd.f32 %v8623_v58, %v7331_v49  ;;  %v7420_v63 = vpop.f32.mrb[83].mxu1  ;;  %v7583_v39 = vadd.f32 %v7582_v12, %v7581_v34  ;;  %v7568_v58 = vrot.slane %v7567_v55, 2 }
0x225b   :  { %v7421_v44 = vadd.f32 %v7420_v63, %v7331_v49  ;;  %v7562_v49 = vadd.f32 %v7561_v33, %v7560_v48 }
0x225c   :  { %v7432_v59 = vadd.f32 %v7426_v61, %v10042_v51  ;;  %v7584_v42 = vrot.slane %v7583_v39, 1  ;;  %v7569_v63 = vadd.f32 %v7568_v58, %v7567_v55 }
0x225d   :  { %v7431_v5 = vadd.f32 %v7421_v44, %v10038_v38  ;;  %v7563_v61 = vrot.slane %v7562_v49, 1 }
0x225e   :  { %v7442_v14 = vsel %vm219_vm13, %v7432_v59, 0.0  ;;  %v7585_v62 = vadd.f32 %v7584_v42, %v7583_v39  ;;  %v7570_v44 = vrot.slane %v7569_v63, 1  ;;  %v7496_v39 = vrot.slane %v9996_v7, %v3914_v17 }
0x225f   :  { %7443 = vadd.xlane.f32.xlu0 %v7442_v14  ;;  %v7439_v20 = vsel %vm219_vm13, %v7431_v5, 0.0 }
0x2260   :  { %7440 = vadd.xlane.f32.xlu1 %v7439_v20  ;;  %v7589_v29 = vmax.f32 %v7585_v62, 1.0  ;;  %v7571_v14 = vadd.f32 %v7570_v44, %v7569_v63 }
0x2263   :  { %7437 = vadd.xlane.f32.xlu0 %v7436_v10 }
0x2264   :  { %7434 = vadd.xlane.f32.xlu1 %v7433_v21 }
0x22ec   :  { %v7444_v23 = vpop.xlane.xlu0 %7443 }
0x22ed   :  { %v7441_v51 = vpop.xlane.xlu1 %7440  ;;  %v7448_v22 = vmul.f32 0.03125, %v7444_v23 }
0x22ee   :  { %v7447_v37 = vmul.f32 0.03125, %v7441_v51 }
0x22ef   :  { %v10111_v46 = vsub.f32 %v7432_v59, %v7448_v22  ;;  %v7588_v59 = vmax.f32 %v7578_v24, 1.0 }
0x22f0   :  { %v7438_v25 = vpop.xlane.xlu0 %7437  ;;  %v10119_v8 = vsub.f32 %v7431_v5, %v7447_v37 }
0x22f1   :  { %v7446_v38 = vmul.f32 0.03125, %v7438_v25  ;;  %v7435_v6 = vpop.xlane.xlu1 %7434  ;;  %v7456_v3 = vmul.f32 %v10111_v46, %v10111_v46 }
0x22f2   :  { %v7445_v50 = vmul.f32 0.03125, %v7435_v6  ;;  %v7455_v56 = vmul.f32 %v10119_v8, %v10119_v8 }
0x22f3   :  { %v10088_v2 = vsub.f32 %v7430_v11, %v7446_v38  ;;  %v7466_v40 = vsel %vm219_vm13, %v7456_v3, 0.0  ;;  %v7564_v11 = vadd.f32 %v7563_v61, %v7562_v49 }
0x22f4   :  { %v10090_v27 = vsub.f32 %v7429_v15, %v7445_v50  ;;  %v7463_v35 = vsel %vm219_vm13, %v7455_v56, 0.0  ;;  %v7587_v15 = vmax.f32 %v7571_v14, 1.0 }
0x22f5   :  { %v7454_v30 = vmul.f32 %v10088_v2, %v10088_v2  ;;  %v7586_v5 = vmax.f32 %v7564_v11, 1.0 }
0x22f6   :  { %v7453_v31 = vmul.f32 %v10090_v27, %v10090_v27 }
0x22f7   :  { %v7460_v32 = vsel %vm219_vm13, %v7454_v30, 0.0 }
0x22f8   :  { %7461 = vadd.xlane.f32.xlu0 %v7460_v32  ;;  %v7457_v45 = vsel %vm219_vm13, %v7453_v31, 0.0 }
0x22f9   :  { %7458 = vadd.xlane.f32.xlu1 %v7457_v45 }
0x230a   :  { %7517 = vperm.xlu1 %8748, %v7503_v41  }
0x230e   :  { %7522 = vperm.xlu0 %8747, %v7504_v26   ;;  %7507 = vperm.xlu1 %8748, %v7501_v1  }
0x2312   :  { %7512 = vperm.xlu1 %8748, %v7502_v0  }
0x2316   :  { %7607 = vperm.xlu1 %8748, %v7589_v29  }
0x232d   :  { %7467 = vadd.xlane.f32.xlu0 %v7466_v40 }
0x233a   :  { %7464 = vadd.xlane.f32.xlu1 %v7463_v35 }
0x2343   :  { %7602 = vperm.xlu0 %8747, %v7588_v59  }
0x2347   :  { %7592 = vperm.xlu0 %8747, %v7586_v5  }
0x234b   :  { %7597 = vperm.xlu1 %8748, %v7587_v15  }
0x2385   :  { %v7462_v20 = vpop.xlane.xlu0 %7461 }
0x2386   :  { %v7459_v10 = vpop.xlane.xlu1 %7458  ;;  %v7470_v21 = vmul.f32 0.03125, %v7462_v20 }
0x2387   :  { %v7469_v23 = vmul.f32 0.03125, %v7459_v10 }
0x2388   :  { %v7474_v51 = vadd.f32 1e-12, %v7470_v21 }
0x2389   :  { %v7473_v25 = vadd.f32 1e-12, %v7469_v23 }
0x238a   :  { %8925 = vrsqrt.f32 %v7474_v51  ;;  %v7518_v38 = vpop.permute.xlu1 %7517 }
0x238b   :  { %8927 = vrsqrt.f32 %v7473_v25 }
0x238d   :  { %v7523_v6 = vpop.permute.xlu0 %7522 }
0x238e   :  { %v7508_v50 = vpop.permute.xlu1 %7507 }
0x2392   :  { %v7513_v52 = vpop.permute.xlu1 %7512 }
0x2394   :  { %v8926_v26 = vpop.eup %8925 }
0x2395   :  { %v8928_v32 = vpop.eup %8927  ;;  %v7482_v45 = vmul.f32 %v8926_v26, %v10088_v2 }
0x2396   :  { %v7481_v12 = vmul.f32 %v8928_v32, %v10090_v27  ;;  %v7608_v1 = vpop.permute.xlu1 %7607 }
0x2397   :  { %v7490_v41 = vmul.f32 %v7488_v54, %v7482_v45 }
0x2398   :  { %v7489_v42 = vmul.f32 %v7488_v54, %v7481_v12  ;;  %v7879_v12 = vld [vmem:[%s10161_s4 + $0x4d] ss:$0 sm:$0xff] }
0x2399   :  { %v7498_v62 = vadd.f32 %v7496_v39, %v7490_v41 }
0x239a   :  { %v7497_v0 = vadd.f32 %v7496_v39, %v7489_v42 }
0x239b   :  { %v7526_v9 = vmul.f32 %v7513_v52, %v7498_v62 }
0x239c   :  { %v7525_v43 = vmul.f32 %v7508_v50, %v7497_v0 }
0x239d   :  { %v7536_v27 = vsel %vm219_vm13, %v7526_v9, 0.0 }
0x239e   :  { %v7529_v17 = vsel %vm219_vm13, %v7525_v43, 0.0  ;;  %v7537_v7 = vrot.slane %v7536_v27, 4 }
0x239f   :  { %v7530_v60 = vrot.slane %v7529_v17, 4 }
0x23a0   :  { %v7538_v37 = vadd.f32 %v7537_v7, %v7536_v27  ;;  %v7881_v7 = vld [vmem:[%s10161_s4 + $0x4f] ss:$0 sm:$0xff] }
0x23a1   :  { %v7531_v18 = vadd.f32 %v7530_v60, %v7529_v17 }
0x23a2   :  { %v7539_v33 = vrot.slane %v7538_v37, 2 }
0x23a3   :  { %v7532_v49 = vrot.slane %v7531_v18, 2 }
0x23a4   :  { %v7540_v35 = vadd.f32 %v7539_v33, %v7538_v37 }
0x23a5   :  { %v7533_v24 = vadd.f32 %v7532_v49, %v7531_v18 }
0x23a6   :  { %v7541_v59 = vrot.slane %v7540_v35, 1 }
0x23a8   :  { %v7542_v20 = vadd.f32 %v7541_v59, %v7540_v35 }
0x23ba   :  { %v7468_v30 = vpop.xlane.xlu0 %7467 }
0x23bb   :  { %v7472_v31 = vmul.f32 0.03125, %v7468_v30 }
0x23bd   :  { %v7476_v34 = vadd.f32 1e-12, %v7472_v31 }
0x23bf   :  { %8929 = vrsqrt.f32 %v7476_v34  ;;  %v7878_v34 = vld [vmem:[%s10161_s4 + $0x4c] ss:$0 sm:$0xff] }
0x23c2   :  { %v7603_v40 = vpop.permute.xlu0 %7602 }
0x23c6   :  { %v7593_v55 = vpop.permute.xlu0 %7592 }
0x23c7   :  { %v7465_v29 = vpop.xlane.xlu1 %7464 }
0x23c8   :  { %v7471_v22 = vmul.f32 0.03125, %v7465_v29 }
0x23c9   :  { %v8930_v13 = vpop.eup %8929 }
0x23ca   :  { %v7484_v2 = vmul.f32 %v8930_v13, %v10111_v46  ;;  %v7475_v28 = vadd.f32 1e-12, %v7471_v22 }
0x23cb   :  { %v7598_v46 = vpop.permute.xlu1 %7597 }
0x23cc   :  { %v7492_v3 = vmul.f32 %v7488_v54, %v7484_v2  ;;  %8931 = vrsqrt.f32 %v7475_v28 }
0x23cd   :  { %8933 = vrcp.f32 %v7598_v46 }
0x23ce   :  { %v7500_v36 = vadd.f32 %v7496_v39, %v7492_v3  ;;  %8935 = vrcp.f32 %v7593_v55 }
0x23cf   :  { %8937 = vrcp.f32 %v7608_v1  ;;  %v7880_v1 = vld [vmem:[%s10161_s4 + $0x4e] ss:$0 sm:$0xff] }
0x23d0   :  { %v7528_v16 = vmul.f32 %v7523_v6, %v7500_v36  ;;  %8939 = vrcp.f32 %v7603_v40 }
0x23d2   :  { %v7550_v47 = vsel %vm219_vm13, %v7528_v16, 0.0 }
0x23d3   :  { %v7551_v53 = vrot.slane %v7550_v47, 4 }
0x23d5   :  { %v7552_v56 = vadd.f32 %v7551_v53, %v7550_v47 }
0x23d6   :  { %v8932_v48 = vpop.eup %8931 }
0x23d7   :  { %v7483_v4 = vmul.f32 %v8932_v48, %v10119_v8  ;;  %v7553_v61 = vrot.slane %v7552_v56, 2  ;;  %v7534_v8 = vrot.slane %v7533_v24, 1  ;;  %v8934_v15 = vpop.eup %8933 }
0x23d8   :  { %v8936_v23 = vpop.eup %8935  ;;  %v7613_v25 = vmul.f32 %v8934_v15, %v7542_v20 }
0x23d9   :  { %v7491_v57 = vmul.f32 %v7488_v54, %v7483_v4  ;;  %v7554_v5 = vadd.f32 %v7553_v61, %v7552_v56  ;;  %v7535_v51 = vadd.f32 %v7534_v8, %v7533_v24  ;;  %v8938_v30 = vpop.eup %8937 }
0x23da   :  { %v8940_v54 = vpop.eup %8939  ;;  %v7632_v62 = vmul.f32 %v7879_v12, %v7613_v25 }
0x23db   :  { %v7499_v58 = vadd.f32 %v7496_v39, %v7491_v57  ;;  %v7555_v21 = vrot.slane %v7554_v5, 1  ;;  %v7611_v50 = vmul.f32 %v8936_v23, %v7535_v51 }
0x23dd   :  { %v7527_v63 = vmul.f32 %v7518_v38, %v7499_v58  ;;  %v7556_v26 = vadd.f32 %v7555_v21, %v7554_v5  ;;  %v7636_v32 = vsub.f32 %v7611_v50, %v7613_v25  ;;  %v7626_v22 = vmul.f32 %v7878_v34, %v7611_v50 }
0x23df   :  { %v7543_v44 = vsel %vm219_vm13, %v7527_v63, 0.0  ;;  %v7617_v52 = vmul.f32 %v8938_v30, %v7556_v26  ;;  %v7638_v42 = vand.u32 2147483647, %v7636_v32  ;;  %v7634_v28 = vadd.f32 %v7632_v62, %v7626_v22 }
0x23e0   :  { %v7544_v11 = vrot.slane %v7543_v44, 4 }
0x23e1   :  { %v7633_v0 = vmul.f32 %v7879_v12, %v7617_v52  ;;  %v7644_v9 = vmul.f32 %v7880_v1, %v7638_v42 }
0x23e2   :  { %v7545_v14 = vadd.f32 %v7544_v11, %v7543_v44 }
0x23e3   :  { %v7646_v3 = vadd.f32 %v7644_v9, %v7634_v28 }
0x23e4   :  { %v7546_v10 = vrot.slane %v7545_v14, 2 }
0x23e6   :  { %v7547_v6 = vadd.f32 %v7546_v10, %v7545_v14 }
0x23e8   :  { %v7548_v38 = vrot.slane %v7547_v6, 1 }
0x23ea   :  { %v7549_v31 = vadd.f32 %v7548_v38, %v7547_v6 }
0x23ec   :  { %v7615_v45 = vmul.f32 %v8940_v54, %v7549_v31 }
0x23ee   :  { %v7627_v39 = vmul.f32 %v7878_v34, %v7615_v45  ;;  %v7637_v41 = vsub.f32 %v7615_v45, %v7617_v52 }
0x23f0   :  { %v7639_v29 = vand.u32 2147483647, %v7637_v41  ;;  %v7635_v13 = vadd.f32 %v7633_v0, %v7627_v39 }
0x23f2   :  { %v7645_v2 = vmul.f32 %v7880_v1, %v7639_v29 }
0x23f4   :  { %v7647_v43 = vadd.f32 %v7645_v2, %v7635_v13 }
0x23f6   :  { %v7650_v27 = vrot.slane %v7647_v43, 7 }
0x23f8   :  { %v7652_v36 = vsel %vm7651_vm1, %v7650_v27, %v7646_v3 }
0x23f9   :  { %v7655_v17 = vsel %vm7654_vm2, %v7652_v36, 0.0 }
0x23fa   :  { %7656 = vadd.xlane.f32.xlu0 %v7655_v17 }
0x2487   :  { %v7657_v16 = vpop.xlane.xlu0 %7656 }
0x2488   :  { %v7662_v60 = vadd.f32 %v7881_v7, %v7657_v16 }
0x248a   :  { %v7670_v47 = vrot.slane %v7662_v60, %v9184_v19 }
0x248c   :  { %v7671_v40 = vcombine.high %v7670_v47, %v7670_v47  ;;  %v7678_v37 = vrot.slane %v7670_v47, %v9184_v19 }
0x248e   :  { %v7685_v53 = vrot.slane %v7671_v40, %v9184_v19  ;;  %7689 = vst.msk [vmem:[%s10169_s10] sm:$0x1] %vm7688_vm3, %v7678_v37 }
0x2490   :  { %7690 = vst.msk [vmem:[%s10169_s10 + $0x1] sm:$0x1] %vm7688_vm3, %v7685_v53 }

</bundles_post_ra>
